<compile_context>
chip_gen: v6e
topology: v6e:2x2x1
jax: 0.10.0
libtpu: 0.0.40
codegen_flags: <defaults>
</compile_context>

<pallas_src>
import functools

import jax
import jax.numpy as jnp
from jax import lax
from jax.experimental import pallas as pl
from jax.experimental.pallas import tpu as pltpu


HIDDEN_DIM = 70
N_LAYERS = 2
LANE = 128


def _round_up(v, m):
    return (v + m - 1) // m * m


def _pad_gate_cols(w, H, Hp):
    """(in_dim, 3*H) -> (in_dim, 3*Hp); gate g occupies columns [g*Hp, g*Hp+H)."""
    out = jnp.zeros((w.shape[0], 3 * Hp), jnp.float32)
    for g in range(3):
        out = out.at[:, g * Hp:g * Hp + H].set(w[:, g * H:(g + 1) * H])
    return out


def _pad_rows(w, rows_to):
    return jnp.pad(w, ((0, rows_to - w.shape[0]), (0, 0)))


def _choose_time_chunk(T, B, G, itemsize, budget=8 << 20):
    """Largest Tc whose streamed (Tc, B, G) block fits the VMEM budget.

    Accounts for sublane padding of the (B, G) slab (8 rows for f32, 16 for
    bf16) and the x2 double-buffering done by BlockSpec pipelining.
    """
    sub = 8 * (4 // itemsize)               # f32 -> 8, bf16 -> 16
    per_step = _round_up(B, sub) * G * itemsize * 2
    return max(1, min(T, budget // max(per_step, 1)))


def _gru_fc_kernel(T_total,                       # static: true sequence length
                   gi0_ref,                       # (Tc, B, 3*Hp) bf16 streamed input proj
                   bh0_ref,                       # layer-0 recurrent bias
                   w01_ref,                       # (Hp, 6*Hp) bf16 = [wh0 | wi1]
                   bi1_ref, wh1_ref, bh1_ref,     # layer-1 params
                   wfc_ref, bfc_ref,              # final Linear params (f32)
                   out_ref,                       # (B, Ncp)
                   h0_ref, h1_ref, gh0_ref):      # VMEM carry across grid steps
    t_blk = pl.program_id(0)
    Tc, B, G = gi0_ref.shape                      # G = 3*Hp, gate offsets 0/Hp/2Hp
    Hp = G // 3
    t_start = t_blk * Tc

    @pl.when(t_blk == 0)
    def _():
        h0_ref[...] = jnp.zeros_like(h0_ref)
        h1_ref[...] = jnp.zeros_like(h1_ref)
        gh0_ref[...] = jnp.zeros_like(gh0_ref)    # h0 @ wh0 with h0 = 0

    # Only the small biases are hoisted/broadcast once (JAX does not CSE
    # broadcast_in_dim inside the loop).  Weight tiles are read straight from
    # their VMEM refs inside the loop body (48-vreg values would spill anyway).
    bh0 = jnp.broadcast_to(bh0_ref[...], (B, G))
    bi1 = jnp.broadcast_to(bi1_ref[...], (B, G))
    bh1 = jnp.broadcast_to(bh1_ref[...], (B, G))

    def gru_gates(gi, gh, h_prev):
        r = jax.nn.sigmoid(gi[:, 0:Hp] + gh[:, 0:Hp])
        z = jax.nn.sigmoid(gi[:, Hp:2 * Hp] + gh[:, Hp:2 * Hp])
        n = jnp.tanh(gi[:, 2 * Hp:3 * Hp] + r * gh[:, 2 * Hp:3 * Hp])
        return (1.0 - z) * n + z * h_prev

    def step(t, carry):
        h0, h1, gh0 = carry
        # Layer 0: gh0 (= h0 @ wh0, no bias) was produced by the previous
        # step's fused matmul, so it is off this step's critical path.
        h0n = gru_gates(gi0_ref[t], gh0 + bh0, h0)
        # Fused matmul sharing LHS h0n: lanes [0:G) = gh0 for step t+1,
        # lanes [G:2G) = gi1 for this step.  Split points are lane-aligned.
        fused = jnp.dot(h0n.astype(jnp.bfloat16), w01_ref[...],
                        preferred_element_type=jnp.float32)
        gh0n = fused[:, 0:G]
        gi1 = fused[:, G:2 * G] + bi1
        # Layer 1.
        gh1 = jnp.dot(h1.astype(jnp.bfloat16), wh1_ref[...],
                      preferred_element_type=jnp.float32) + bh1
        h1n = gru_gates(gi1, gh1, h1)
        # Tail masking: grid is cdiv(T, Tc); steps past T are no-ops.
        keep = (t_start + t) < T_total
        return (jnp.where(keep, h0n, h0),
                jnp.where(keep, h1n, h1),
                jnp.where(keep, gh0n, gh0))

    # Hidden state carried in vregs; unrolled so the LLO scheduler can co-issue
    # EUP/VPU/MXU work of adjacent time steps.
    unroll = True if Tc <= 32 else 8
    h0, h1, gh0 = lax.fori_loop(
        0, Tc, step, (h0_ref[...], h1_ref[...], gh0_ref[...]), unroll=unroll)
    h0_ref[...] = h0
    h1_ref[...] = h1
    gh0_ref[...] = gh0

    @pl.when(t_blk == pl.num_programs(0) - 1)
    def _():
        logits = jnp.dot(h1, wfc_ref[...],
                         preferred_element_type=jnp.float32) + bfc_ref[...]
        out_ref[...] = jnp.maximum(logits, 0.0)


def prepare_params(params):
    """One-off padding / fusion / casting of weights (off the per-call path).

    Gate boundaries are padded to lane-tile boundaries (H=70 -> Hp=128) and
    padded hidden lanes provably stay exactly zero (zero rows / zero gate
    columns / zero bias).  wh0 and wi1 are concatenated along N so the per-step
    recurrence issues one fused matmul for both.
    """
    H = HIDDEN_DIM
    Hp = _round_up(H, LANE)
    n_classes = params["wfc"].shape[1]
    Ncp = _round_up(n_classes, LANE)
    f32, bf16 = jnp.float32, jnp.bfloat16

    wi0 = _pad_gate_cols(params["wi0"].astype(f32), H, Hp)                 # (C, G) f32
    bi0 = _pad_gate_cols(params["bi0"].astype(f32), H, Hp)                 # (1, G)
    wh0 = _pad_rows(_pad_gate_cols(params["wh0"].astype(f32), H, Hp), Hp)  # (Hp, G)
    wi1 = _pad_rows(_pad_gate_cols(params["wi1"].astype(f32), H, Hp), Hp)  # (Hp, G)
    w01 = jnp.concatenate([wh0, wi1], axis=1).astype(bf16)                 # (Hp, 6*Hp)
    wh1 = _pad_rows(_pad_gate_cols(params["wh1"].astype(f32), H, Hp), Hp).astype(bf16)
    bh0 = _pad_gate_cols(params["bh0"].astype(f32), H, Hp)
    bi1 = _pad_gate_cols(params["bi1"].astype(f32), H, Hp)
    bh1 = _pad_gate_cols(params["bh1"].astype(f32), H, Hp)
    wfc = jnp.pad(params["wfc"].astype(f32),
                  ((0, Hp - H), (0, Ncp - n_classes)))                     # (Hp, Ncp) f32
    bfc = jnp.pad(params["bfc"].astype(f32), ((0, 0), (0, Ncp - n_classes)))

    return {"wi0": wi0, "bi0": bi0, "bh0": bh0, "w01": w01, "bi1": bi1,
            "wh1": wh1, "bh1": bh1, "wfc": wfc, "bfc": bfc,
            "n_classes": n_classes, "Hp": Hp, "Ncp": Ncp}


def network_forward(x, p):
    """x: (B, T, C) float32, p: prepare_params() output -> (B, n_classes)."""
    B, T, C = x.shape
    Hp = p["Hp"]
    Ncp = p["Ncp"]
    G = 3 * Hp

    # Hoisted layer-0 input projection: one lane-dense (T*B, C) @ (C, 3*Hp)
    # matmul (input bias folded in), streamed to the kernel as bf16.
    x_tbc = jnp.transpose(x, (1, 0, 2)).astype(jnp.float32)                # (T, B, C)
    gi0_all = (jnp.dot(x_tbc.reshape(T * B, C), p["wi0"],
                       preferred_element_type=jnp.float32) + p["bi0"]
               ).reshape(T, B, G).astype(jnp.bfloat16)

    Tc = _choose_time_chunk(T, B, G, itemsize=2)
    n_blk = pl.cdiv(T, Tc)
    const2 = lambda t: (0, 0)

    grid_spec = pltpu.PrefetchScalarGridSpec(
        num_scalar_prefetch=0,
        grid=(n_blk,),
        in_specs=[
            pl.BlockSpec((Tc, B, G), lambda t: (t, 0, 0)),   # streamed input proj
            pl.BlockSpec((1, G), const2),                    # bh0
            pl.BlockSpec((Hp, 2 * G), const2),               # w01 = [wh0 | wi1] bf16
            pl.BlockSpec((1, G), const2),                    # bi1
            pl.BlockSpec((Hp, G), const2),                   # wh1 bf16
            pl.BlockSpec((1, G), const2),                    # bh1
            pl.BlockSpec((Hp, Ncp), const2),                 # wfc f32
            pl.BlockSpec((1, Ncp), const2),                  # bfc
        ],
        out_specs=pl.BlockSpec((B, Ncp), const2),
        scratch_shapes=[
            pltpu.VMEM((B, Hp), jnp.float32),                # h0 across time chunks
            pltpu.VMEM((B, Hp), jnp.float32),                # h1 across time chunks
            pltpu.VMEM((B, G), jnp.float32),                 # gh0 = h0 @ wh0 carry
        ],
    )

    out_padded = pl.pallas_call(
        functools.partial(_gru_fc_kernel, T),
        out_shape=jax.ShapeDtypeStruct((B, Ncp), jnp.float32),
        grid_spec=grid_spec,
        compiler_params=pltpu.CompilerParams(
            dimension_semantics=("arbitrary",),   # time recurrence is sequential
            vmem_limit_bytes=32 * 1024 * 1024,    # safe on v5e/v6e/v7x
        ),
    )(gi0_all, p["bh0"], p["w01"], p["bi1"], p["wh1"], p["bh1"],
      p["wfc"], p["bfc"])

    return out_padded[:, :p["n_classes"]]


def init_params(key, n_channels, n_classes):
    """Deterministic init; torch.nn.GRU/Linear-style shapes, weights stored
    pre-transposed so the forward does x @ W. Unpadded (H=70), f32."""
    H = HIDDEN_DIM
    k = 1.0 / jnp.sqrt(H)
    keys = jax.random.split(key, 11)

    def u(kk, shape):
        return jax.random.uniform(kk, shape, jnp.float32, -k, k)

    return {
        "wi0": u(keys[0], (n_channels, 3 * H)),
        "wh0": u(keys[1], (H, 3 * H)),
        "bi0": u(keys[2], (1, 3 * H)),
        "bh0": u(keys[3], (1, 3 * H)),
        "wi1": u(keys[4], (H, 3 * H)),
        "wh1": u(keys[5], (H, 3 * H)),
        "bi1": u(keys[6], (1, 3 * H)),
        "bh1": u(keys[7], (1, 3 * H)),
        "wfc": u(keys[8], (H, n_classes)),
        "bfc": u(keys[9], (1, n_classes)),
    }


def reference_forward(x, params):
    """Pure-JAX f32 reference mirroring torch GRU (eval mode) + Linear + ReLU."""
    H = HIDDEN_DIM
    B = x.shape[0]

    def cell(x_t, h_prev, wi, wh, bi, bh):
        gi = x_t @ wi + bi
        gh = h_prev @ wh + bh
        r = jax.nn.sigmoid(gi[:, 0:H] + gh[:, 0:H])
        z = jax.nn.sigmoid(gi[:, H:2 * H] + gh[:, H:2 * H])
        n = jnp.tanh(gi[:, 2 * H:3 * H] + r * gh[:, 2 * H:3 * H])
        return (1.0 - z) * n + z * h_prev

    h0 = jnp.zeros((B, H), jnp.float32)
    h1 = jnp.zeros((B, H), jnp.float32)
    for t in range(x.shape[1]):
        h0 = cell(x[:, t, :], h0, params["wi0"], params["wh0"],
                  params["bi0"], params["bh0"])
        h1 = cell(h0, h1, params["wi1"], params["wh1"],
                  params["bi1"], params["bh1"])
    out = h1 @ params["wfc"] + params["bfc"]
    return jnp.maximum(out, 0.0)


if __name__ == "__main__":
    n_channels = 4
    n_classes = 10
    batch, seq = 2, 8

    key = jax.random.PRNGKey(0)
    kx, kp = jax.random.split(key)
    x = jax.random.normal(kx, (batch, seq, n_channels), jnp.float32)
    params = init_params(kp, n_channels, n_classes)
    prepped = prepare_params(params)          # one-off padding/fusion/bf16 cast

    out = network_forward(x, prepped)
    out = jax.block_until_ready(out)

    ref = reference_forward(x, params)
    assert out.shape == (batch, n_classes)
    # bf16 recurrent weights / stream with f32 accumulation: relaxed tolerance
    # vs. the pure-f32 reference (observed error ~1e-2 absolute worst case).
    assert jnp.allclose(out, ref, atol=3e-2, rtol=3e-2), (out, ref)

    print("KERNEL_OK")
</pallas_src>

<mosaic_0001>
module attributes {stable_mosaic.version = 11 : i64} {
  func.func @_gru_fc_kernel(%arg0: i32, %arg1: memref<8x2x384xbf16, #tpu.memory_space<vmem>>, %arg2: memref<1x384xf32, #tpu.memory_space<vmem>>, %arg3: memref<128x768xbf16, #tpu.memory_space<vmem>>, %arg4: memref<1x384xf32, #tpu.memory_space<vmem>>, %arg5: memref<128x384xbf16, #tpu.memory_space<vmem>>, %arg6: memref<1x384xf32, #tpu.memory_space<vmem>>, %arg7: memref<128x128xf32, #tpu.memory_space<vmem>>, %arg8: memref<1x128xf32, #tpu.memory_space<vmem>>, %arg9: memref<2x128xf32, #tpu.memory_space<vmem>>, %arg10: memref<2x128xf32, #tpu.memory_space<vmem>>, %arg11: memref<2x128xf32, #tpu.memory_space<vmem>>, %arg12: memref<2x384xf32, #tpu.memory_space<vmem>>) attributes {dimension_semantics = [#tpu.dimension_semantics<arbitrary>], iteration_bounds = array<i64: 1>, scalar_prefetch = 0 : i64, scratch_operands = 3 : i64, tpu.core_type = #tpu.core_type<tc>, window_params = [{transform_indices = @transform_0, window_bounds = array<i64: 8, 2, 384>}, {pipeline_mode = #tpu.pipeline_mode<synchronous>, transform_indices = @transform_1, window_bounds = array<i64: 1, 384>}, {pipeline_mode = #tpu.pipeline_mode<synchronous>, transform_indices = @transform_2, window_bounds = array<i64: 128, 768>}, {pipeline_mode = #tpu.pipeline_mode<synchronous>, transform_indices = @transform_3, window_bounds = array<i64: 1, 384>}, {pipeline_mode = #tpu.pipeline_mode<synchronous>, transform_indices = @transform_4, window_bounds = array<i64: 128, 384>}, {pipeline_mode = #tpu.pipeline_mode<synchronous>, transform_indices = @transform_5, window_bounds = array<i64: 1, 384>}, {pipeline_mode = #tpu.pipeline_mode<synchronous>, transform_indices = @transform_6, window_bounds = array<i64: 128, 128>}, {pipeline_mode = #tpu.pipeline_mode<synchronous>, transform_indices = @transform_7, window_bounds = array<i64: 1, 128>}, {pipeline_mode = #tpu.pipeline_mode<synchronous>, transform_indices = @transform_8, window_bounds = array<i64: 2, 128>}]} {
    %c8_i32 = arith.constant 8 : i32
    %0 = arith.muli %arg0, %c8_i32 : i32
    %c0_i32 = arith.constant 0 : i32
    %1 = arith.cmpi eq, %arg0, %c0_i32 : i32
    %2 = arith.extui %1 : i1 to i32
    %c0_i32_0 = arith.constant 0 : i32
    %3 = arith.cmpi ne, %2, %c0_i32_0 : i32
    scf.if %3 {
      %cst_141 = arith.constant 0.000000e+00 : f32
      %614 = vector.broadcast %cst_141 : f32 to vector<2x128xf32>
      %c0_142 = arith.constant 0 : index
      %c0_143 = arith.constant 0 : index
      %615 = vector.load %arg10[%c0_142, %c0_143] : memref<2x128xf32, #tpu.memory_space<vmem>>, vector<2x128xf32>
      tpu.vector_store %arg10[%c0_142, %c0_143], %614 {strides = array<i32>} : memref<2x128xf32, #tpu.memory_space<vmem>>, vector<2x128xf32>,
      %cst_144 = arith.constant 0.000000e+00 : f32
      %616 = vector.broadcast %cst_144 : f32 to vector<2x128xf32>
      %c0_145 = arith.constant 0 : index
      %c0_146 = arith.constant 0 : index
      %617 = vector.load %arg11[%c0_145, %c0_146] : memref<2x128xf32, #tpu.memory_space<vmem>>, vector<2x128xf32>
      tpu.vector_store %arg11[%c0_145, %c0_146], %616 {strides = array<i32>} : memref<2x128xf32, #tpu.memory_space<vmem>>, vector<2x128xf32>,
      %cst_147 = arith.constant 0.000000e+00 : f32
      %618 = vector.broadcast %cst_147 : f32 to vector<2x384xf32>
      %c0_148 = arith.constant 0 : index
      %c0_149 = arith.constant 0 : index
      %619 = vector.load %arg12[%c0_148, %c0_149] : memref<2x384xf32, #tpu.memory_space<vmem>>, vector<2x384xf32>
      tpu.vector_store %arg12[%c0_148, %c0_149], %618 {strides = array<i32>} : memref<2x384xf32, #tpu.memory_space<vmem>>, vector<2x384xf32>,
    } else {
    }
    %c0 = arith.constant 0 : index
    %c0_1 = arith.constant 0 : index
    %4 = vector.load %arg2[%c0, %c0_1] : memref<1x384xf32, #tpu.memory_space<vmem>>, vector<1x384xf32>
    %5 = vector.shape_cast %4 : vector<1x384xf32> to vector<1x384xf32>
    %6 = vector.broadcast %5 : vector<1x384xf32> to vector<2x384xf32>
    %c0_2 = arith.constant 0 : index
    %c0_3 = arith.constant 0 : index
    %7 = vector.load %arg4[%c0_2, %c0_3] : memref<1x384xf32, #tpu.memory_space<vmem>>, vector<1x384xf32>
    %8 = vector.shape_cast %7 : vector<1x384xf32> to vector<1x384xf32>
    %9 = vector.broadcast %8 : vector<1x384xf32> to vector<2x384xf32>
    %c0_4 = arith.constant 0 : index
    %c0_5 = arith.constant 0 : index
    %10 = vector.load %arg6[%c0_4, %c0_5] : memref<1x384xf32, #tpu.memory_space<vmem>>, vector<1x384xf32>
    %11 = vector.shape_cast %10 : vector<1x384xf32> to vector<1x384xf32>
    %12 = vector.broadcast %11 : vector<1x384xf32> to vector<2x384xf32>
    %c0_6 = arith.constant 0 : index
    %c0_7 = arith.constant 0 : index
    %13 = vector.load %arg10[%c0_6, %c0_7] : memref<2x128xf32, #tpu.memory_space<vmem>>, vector<2x128xf32>
    %c0_8 = arith.constant 0 : index
    %c0_9 = arith.constant 0 : index
    %14 = vector.load %arg11[%c0_8, %c0_9] : memref<2x128xf32, #tpu.memory_space<vmem>>, vector<2x128xf32>
    %c0_10 = arith.constant 0 : index
    %c0_11 = arith.constant 0 : index
    %15 = vector.load %arg12[%c0_10, %c0_11] : memref<2x384xf32, #tpu.memory_space<vmem>>, vector<2x384xf32>
    %c0_i32_12 = arith.constant 0 : i32
    %16 = arith.index_cast %c0_i32_12 : i32 to index
    %c0_13 = arith.constant 0 : index
    %c0_14 = arith.constant 0 : index
    %17 = vector.load %arg1[%16, %c0_13, %c0_14] : memref<8x2x384xbf16, #tpu.memory_space<vmem>>, vector<1x2x384xbf16>
    %18 = vector.shape_cast %17 : vector<1x2x384xbf16> to vector<2x384xbf16>
    %19 = arith.addf %15, %6 : vector<2x384xf32>
    %20 = vector.extract_strided_slice %18 {offsets = [0, 0], sizes = [2, 128], strides = [1, 1]} : vector<2x384xbf16> to vector<2x128xbf16>
    %21 = vector.extract_strided_slice %19 {offsets = [0, 0], sizes = [2, 128], strides = [1, 1]} : vector<2x384xf32> to vector<2x128xf32>
    %22 = arith.extf %20 : vector<2x128xbf16> to vector<2x128xf32>
    %23 = arith.addf %22, %21 : vector<2x128xf32>
    %24 = arith.negf %23 : vector<2x128xf32>
    %25 = math.exp %24 : vector<2x128xf32>
    %cst = arith.constant 1.000000e+00 : f32
    %26 = vector.broadcast %cst : f32 to vector<2x128xf32>
    %27 = arith.addf %26, %25 : vector<2x128xf32>
    %28 = arith.divf %26, %27 : vector<2x128xf32>
    %29 = vector.extract_strided_slice %18 {offsets = [0, 128], sizes = [2, 128], strides = [1, 1]} : vector<2x384xbf16> to vector<2x128xbf16>
    %30 = vector.extract_strided_slice %19 {offsets = [0, 128], sizes = [2, 128], strides = [1, 1]} : vector<2x384xf32> to vector<2x128xf32>
    %31 = arith.extf %29 : vector<2x128xbf16> to vector<2x128xf32>
    %32 = arith.addf %31, %30 : vector<2x128xf32>
    %33 = arith.negf %32 : vector<2x128xf32>
    %34 = math.exp %33 : vector<2x128xf32>
    %cst_15 = arith.constant 1.000000e+00 : f32
    %35 = vector.broadcast %cst_15 : f32 to vector<2x128xf32>
    %36 = arith.addf %35, %34 : vector<2x128xf32>
    %37 = arith.divf %35, %36 : vector<2x128xf32>
    %38 = vector.extract_strided_slice %18 {offsets = [0, 256], sizes = [2, 128], strides = [1, 1]} : vector<2x384xbf16> to vector<2x128xbf16>
    %39 = vector.extract_strided_slice %19 {offsets = [0, 256], sizes = [2, 128], strides = [1, 1]} : vector<2x384xf32> to vector<2x128xf32>
    %40 = arith.mulf %28, %39 : vector<2x128xf32>
    %41 = arith.extf %38 : vector<2x128xbf16> to vector<2x128xf32>
    %42 = arith.addf %41, %40 : vector<2x128xf32>
    %43 = math.tanh %42 : vector<2x128xf32>
    %cst_16 = arith.constant 1.000000e+00 : f32
    %44 = vector.broadcast %cst_16 : f32 to vector<2x128xf32>
    %45 = arith.subf %44, %37 : vector<2x128xf32>
    %46 = arith.mulf %45, %43 : vector<2x128xf32>
    %47 = arith.mulf %37, %13 : vector<2x128xf32>
    %48 = arith.addf %46, %47 : vector<2x128xf32>
    %49 = arith.truncf %48 : vector<2x128xf32> to vector<2x128xbf16>
    %c0_17 = arith.constant 0 : index
    %c0_18 = arith.constant 0 : index
    %50 = vector.load %arg3[%c0_17, %c0_18] : memref<128x768xbf16, #tpu.memory_space<vmem>>, vector<128x768xbf16>
    %cst_19 = arith.constant dense<0.000000e+00> : vector<2x768xf32>
    %51 = tpu.matmul %49, %50, %cst_19 {dimension_numbers = #tpu.dot_dimension_numbers<[1], [0], [0], [1], [0, 0, 1, 1], [], []>} : vector<2x128xbf16>, vector<128x768xbf16>, vector<2x768xf32> -> vector<2x768xf32>
    %52 = vector.extract_strided_slice %51 {offsets = [0, 0], sizes = [2, 384], strides = [1, 1]} : vector<2x768xf32> to vector<2x384xf32>
    %53 = vector.extract_strided_slice %51 {offsets = [0, 384], sizes = [2, 384], strides = [1, 1]} : vector<2x768xf32> to vector<2x384xf32>
    %54 = arith.addf %53, %9 : vector<2x384xf32>
    %55 = arith.truncf %14 : vector<2x128xf32> to vector<2x128xbf16>
    %c0_20 = arith.constant 0 : index
    %c0_21 = arith.constant 0 : index
    %56 = vector.load %arg5[%c0_20, %c0_21] : memref<128x384xbf16, #tpu.memory_space<vmem>>, vector<128x384xbf16>
    %cst_22 = arith.constant dense<0.000000e+00> : vector<2x384xf32>
    %57 = tpu.matmul %55, %56, %cst_22 {dimension_numbers = #tpu.dot_dimension_numbers<[1], [0], [0], [1], [0, 0, 1, 1], [], []>} : vector<2x128xbf16>, vector<128x384xbf16>, vector<2x384xf32> -> vector<2x384xf32>
    %58 = arith.addf %57, %12 : vector<2x384xf32>
    %59 = vector.extract_strided_slice %54 {offsets = [0, 0], sizes = [2, 128], strides = [1, 1]} : vector<2x384xf32> to vector<2x128xf32>
    %60 = vector.extract_strided_slice %58 {offsets = [0, 0], sizes = [2, 128], strides = [1, 1]} : vector<2x384xf32> to vector<2x128xf32>
    %61 = arith.addf %59, %60 : vector<2x128xf32>
    %62 = arith.negf %61 : vector<2x128xf32>
    %63 = math.exp %62 : vector<2x128xf32>
    %cst_23 = arith.constant 1.000000e+00 : f32
    %64 = vector.broadcast %cst_23 : f32 to vector<2x128xf32>
    %65 = arith.addf %64, %63 : vector<2x128xf32>
    %66 = arith.divf %64, %65 : vector<2x128xf32>
    %67 = vector.extract_strided_slice %54 {offsets = [0, 128], sizes = [2, 128], strides = [1, 1]} : vector<2x384xf32> to vector<2x128xf32>
    %68 = vector.extract_strided_slice %58 {offsets = [0, 128], sizes = [2, 128], strides = [1, 1]} : vector<2x384xf32> to vector<2x128xf32>
    %69 = arith.addf %67, %68 : vector<2x128xf32>
    %70 = arith.negf %69 : vector<2x128xf32>
    %71 = math.exp %70 : vector<2x128xf32>
    %cst_24 = arith.constant 1.000000e+00 : f32
    %72 = vector.broadcast %cst_24 : f32 to vector<2x128xf32>
    %73 = arith.addf %72, %71 : vector<2x128xf32>
    %74 = arith.divf %72, %73 : vector<2x128xf32>
    %75 = vector.extract_strided_slice %54 {offsets = [0, 256], sizes = [2, 128], strides = [1, 1]} : vector<2x384xf32> to vector<2x128xf32>
    %76 = vector.extract_strided_slice %58 {offsets = [0, 256], sizes = [2, 128], strides = [1, 1]} : vector<2x384xf32> to vector<2x128xf32>
    %77 = arith.mulf %66, %76 : vector<2x128xf32>
    %78 = arith.addf %75, %77 : vector<2x128xf32>
    %79 = math.tanh %78 : vector<2x128xf32>
    %cst_25 = arith.constant 1.000000e+00 : f32
    %80 = vector.broadcast %cst_25 : f32 to vector<2x128xf32>
    %81 = arith.subf %80, %74 : vector<2x128xf32>
    %82 = arith.mulf %81, %79 : vector<2x128xf32>
    %83 = arith.mulf %74, %14 : vector<2x128xf32>
    %84 = arith.addf %82, %83 : vector<2x128xf32>
    %85 = arith.addi %0, %c0_i32_12 : i32
    %c8_i32_26 = arith.constant 8 : i32
    %86 = arith.cmpi slt, %85, %c8_i32_26 : i32
    %87 = arith.select %86, %48, %13 : vector<2x128xf32>
    %88 = arith.select %86, %84, %14 : vector<2x128xf32>
    %89 = arith.select %86, %52, %15 : vector<2x384xf32>
    %c1_i32 = arith.constant 1 : i32
    %90 = arith.index_cast %c1_i32 : i32 to index
    %c0_27 = arith.constant 0 : index
    %c0_28 = arith.constant 0 : index
    %91 = vector.load %arg1[%90, %c0_27, %c0_28] : memref<8x2x384xbf16, #tpu.memory_space<vmem>>, vector<1x2x384xbf16>
    %92 = vector.shape_cast %91 : vector<1x2x384xbf16> to vector<2x384xbf16>
    %93 = arith.addf %89, %6 : vector<2x384xf32>
    %94 = vector.extract_strided_slice %92 {offsets = [0, 0], sizes = [2, 128], strides = [1, 1]} : vector<2x384xbf16> to vector<2x128xbf16>
    %95 = vector.extract_strided_slice %93 {offsets = [0, 0], sizes = [2, 128], strides = [1, 1]} : vector<2x384xf32> to vector<2x128xf32>
    %96 = arith.extf %94 : vector<2x128xbf16> to vector<2x128xf32>
    %97 = arith.addf %96, %95 : vector<2x128xf32>
    %98 = arith.negf %97 : vector<2x128xf32>
    %99 = math.exp %98 : vector<2x128xf32>
    %cst_29 = arith.constant 1.000000e+00 : f32
    %100 = vector.broadcast %cst_29 : f32 to vector<2x128xf32>
    %101 = arith.addf %100, %99 : vector<2x128xf32>
    %102 = arith.divf %100, %101 : vector<2x128xf32>
    %103 = vector.extract_strided_slice %92 {offsets = [0, 128], sizes = [2, 128], strides = [1, 1]} : vector<2x384xbf16> to vector<2x128xbf16>
    %104 = vector.extract_strided_slice %93 {offsets = [0, 128], sizes = [2, 128], strides = [1, 1]} : vector<2x384xf32> to vector<2x128xf32>
    %105 = arith.extf %103 : vector<2x128xbf16> to vector<2x128xf32>
    %106 = arith.addf %105, %104 : vector<2x128xf32>
    %107 = arith.negf %106 : vector<2x128xf32>
    %108 = math.exp %107 : vector<2x128xf32>
    %cst_30 = arith.constant 1.000000e+00 : f32
    %109 = vector.broadcast %cst_30 : f32 to vector<2x128xf32>
    %110 = arith.addf %109, %108 : vector<2x128xf32>
    %111 = arith.divf %109, %110 : vector<2x128xf32>
    %112 = vector.extract_strided_slice %92 {offsets = [0, 256], sizes = [2, 128], strides = [1, 1]} : vector<2x384xbf16> to vector<2x128xbf16>
    %113 = vector.extract_strided_slice %93 {offsets = [0, 256], sizes = [2, 128], strides = [1, 1]} : vector<2x384xf32> to vector<2x128xf32>
    %114 = arith.mulf %102, %113 : vector<2x128xf32>
    %115 = arith.extf %112 : vector<2x128xbf16> to vector<2x128xf32>
    %116 = arith.addf %115, %114 : vector<2x128xf32>
    %117 = math.tanh %116 : vector<2x128xf32>
    %cst_31 = arith.constant 1.000000e+00 : f32
    %118 = vector.broadcast %cst_31 : f32 to vector<2x128xf32>
    %119 = arith.subf %118, %111 : vector<2x128xf32>
    %120 = arith.mulf %119, %117 : vector<2x128xf32>
    %121 = arith.mulf %111, %87 : vector<2x128xf32>
    %122 = arith.addf %120, %121 : vector<2x128xf32>
    %123 = arith.truncf %122 : vector<2x128xf32> to vector<2x128xbf16>
    %c0_32 = arith.constant 0 : index
    %c0_33 = arith.constant 0 : index
    %124 = vector.load %arg3[%c0_32, %c0_33] : memref<128x768xbf16, #tpu.memory_space<vmem>>, vector<128x768xbf16>
    %cst_34 = arith.constant dense<0.000000e+00> : vector<2x768xf32>
    %125 = tpu.matmul %123, %124, %cst_34 {dimension_numbers = #tpu.dot_dimension_numbers<[1], [0], [0], [1], [0, 0, 1, 1], [], []>} : vector<2x128xbf16>, vector<128x768xbf16>, vector<2x768xf32> -> vector<2x768xf32>
    %126 = vector.extract_strided_slice %125 {offsets = [0, 0], sizes = [2, 384], strides = [1, 1]} : vector<2x768xf32> to vector<2x384xf32>
    %127 = vector.extract_strided_slice %125 {offsets = [0, 384], sizes = [2, 384], strides = [1, 1]} : vector<2x768xf32> to vector<2x384xf32>
    %128 = arith.addf %127, %9 : vector<2x384xf32>
    %129 = arith.truncf %88 : vector<2x128xf32> to vector<2x128xbf16>
    %c0_35 = arith.constant 0 : index
    %c0_36 = arith.constant 0 : index
    %130 = vector.load %arg5[%c0_35, %c0_36] : memref<128x384xbf16, #tpu.memory_space<vmem>>, vector<128x384xbf16>
    %cst_37 = arith.constant dense<0.000000e+00> : vector<2x384xf32>
    %131 = tpu.matmul %129, %130, %cst_37 {dimension_numbers = #tpu.dot_dimension_numbers<[1], [0], [0], [1], [0, 0, 1, 1], [], []>} : vector<2x128xbf16>, vector<128x384xbf16>, vector<2x384xf32> -> vector<2x384xf32>
    %132 = arith.addf %131, %12 : vector<2x384xf32>
    %133 = vector.extract_strided_slice %128 {offsets = [0, 0], sizes = [2, 128], strides = [1, 1]} : vector<2x384xf32> to vector<2x128xf32>
    %134 = vector.extract_strided_slice %132 {offsets = [0, 0], sizes = [2, 128], strides = [1, 1]} : vector<2x384xf32> to vector<2x128xf32>
    %135 = arith.addf %133, %134 : vector<2x128xf32>
    %136 = arith.negf %135 : vector<2x128xf32>
    %137 = math.exp %136 : vector<2x128xf32>
    %cst_38 = arith.constant 1.000000e+00 : f32
    %138 = vector.broadcast %cst_38 : f32 to vector<2x128xf32>
    %139 = arith.addf %138, %137 : vector<2x128xf32>
    %140 = arith.divf %138, %139 : vector<2x128xf32>
    %141 = vector.extract_strided_slice %128 {offsets = [0, 128], sizes = [2, 128], strides = [1, 1]} : vector<2x384xf32> to vector<2x128xf32>
    %142 = vector.extract_strided_slice %132 {offsets = [0, 128], sizes = [2, 128], strides = [1, 1]} : vector<2x384xf32> to vector<2x128xf32>
    %143 = arith.addf %141, %142 : vector<2x128xf32>
    %144 = arith.negf %143 : vector<2x128xf32>
    %145 = math.exp %144 : vector<2x128xf32>
    %cst_39 = arith.constant 1.000000e+00 : f32
    %146 = vector.broadcast %cst_39 : f32 to vector<2x128xf32>
    %147 = arith.addf %146, %145 : vector<2x128xf32>
    %148 = arith.divf %146, %147 : vector<2x128xf32>
    %149 = vector.extract_strided_slice %128 {offsets = [0, 256], sizes = [2, 128], strides = [1, 1]} : vector<2x384xf32> to vector<2x128xf32>
    %150 = vector.extract_strided_slice %132 {offsets = [0, 256], sizes = [2, 128], strides = [1, 1]} : vector<2x384xf32> to vector<2x128xf32>
    %151 = arith.mulf %140, %150 : vector<2x128xf32>
    %152 = arith.addf %149, %151 : vector<2x128xf32>
    %153 = math.tanh %152 : vector<2x128xf32>
    %cst_40 = arith.constant 1.000000e+00 : f32
    %154 = vector.broadcast %cst_40 : f32 to vector<2x128xf32>
    %155 = arith.subf %154, %148 : vector<2x128xf32>
    %156 = arith.mulf %155, %153 : vector<2x128xf32>
    %157 = arith.mulf %148, %88 : vector<2x128xf32>
    %158 = arith.addf %156, %157 : vector<2x128xf32>
    %159 = arith.addi %0, %c1_i32 : i32
    %c8_i32_41 = arith.constant 8 : i32
    %160 = arith.cmpi slt, %159, %c8_i32_41 : i32
    %161 = arith.select %160, %122, %87 : vector<2x128xf32>
    %162 = arith.select %160, %158, %88 : vector<2x128xf32>
    %163 = arith.select %160, %126, %89 : vector<2x384xf32>
    %c2_i32 = arith.constant 2 : i32
    %164 = arith.index_cast %c2_i32 : i32 to index
    %c0_42 = arith.constant 0 : index
    %c0_43 = arith.constant 0 : index
    %165 = vector.load %arg1[%164, %c0_42, %c0_43] : memref<8x2x384xbf16, #tpu.memory_space<vmem>>, vector<1x2x384xbf16>
    %166 = vector.shape_cast %165 : vector<1x2x384xbf16> to vector<2x384xbf16>
    %167 = arith.addf %163, %6 : vector<2x384xf32>
    %168 = vector.extract_strided_slice %166 {offsets = [0, 0], sizes = [2, 128], strides = [1, 1]} : vector<2x384xbf16> to vector<2x128xbf16>
    %169 = vector.extract_strided_slice %167 {offsets = [0, 0], sizes = [2, 128], strides = [1, 1]} : vector<2x384xf32> to vector<2x128xf32>
    %170 = arith.extf %168 : vector<2x128xbf16> to vector<2x128xf32>
    %171 = arith.addf %170, %169 : vector<2x128xf32>
    %172 = arith.negf %171 : vector<2x128xf32>
    %173 = math.exp %172 : vector<2x128xf32>
    %cst_44 = arith.constant 1.000000e+00 : f32
    %174 = vector.broadcast %cst_44 : f32 to vector<2x128xf32>
    %175 = arith.addf %174, %173 : vector<2x128xf32>
    %176 = arith.divf %174, %175 : vector<2x128xf32>
    %177 = vector.extract_strided_slice %166 {offsets = [0, 128], sizes = [2, 128], strides = [1, 1]} : vector<2x384xbf16> to vector<2x128xbf16>
    %178 = vector.extract_strided_slice %167 {offsets = [0, 128], sizes = [2, 128], strides = [1, 1]} : vector<2x384xf32> to vector<2x128xf32>
    %179 = arith.extf %177 : vector<2x128xbf16> to vector<2x128xf32>
    %180 = arith.addf %179, %178 : vector<2x128xf32>
    %181 = arith.negf %180 : vector<2x128xf32>
    %182 = math.exp %181 : vector<2x128xf32>
    %cst_45 = arith.constant 1.000000e+00 : f32
    %183 = vector.broadcast %cst_45 : f32 to vector<2x128xf32>
    %184 = arith.addf %183, %182 : vector<2x128xf32>
    %185 = arith.divf %183, %184 : vector<2x128xf32>
    %186 = vector.extract_strided_slice %166 {offsets = [0, 256], sizes = [2, 128], strides = [1, 1]} : vector<2x384xbf16> to vector<2x128xbf16>
    %187 = vector.extract_strided_slice %167 {offsets = [0, 256], sizes = [2, 128], strides = [1, 1]} : vector<2x384xf32> to vector<2x128xf32>
    %188 = arith.mulf %176, %187 : vector<2x128xf32>
    %189 = arith.extf %186 : vector<2x128xbf16> to vector<2x128xf32>
    %190 = arith.addf %189, %188 : vector<2x128xf32>
    %191 = math.tanh %190 : vector<2x128xf32>
    %cst_46 = arith.constant 1.000000e+00 : f32
    %192 = vector.broadcast %cst_46 : f32 to vector<2x128xf32>
    %193 = arith.subf %192, %185 : vector<2x128xf32>
    %194 = arith.mulf %193, %191 : vector<2x128xf32>
    %195 = arith.mulf %185, %161 : vector<2x128xf32>
    %196 = arith.addf %194, %195 : vector<2x128xf32>
    %197 = arith.truncf %196 : vector<2x128xf32> to vector<2x128xbf16>
    %c0_47 = arith.constant 0 : index
    %c0_48 = arith.constant 0 : index
    %198 = vector.load %arg3[%c0_47, %c0_48] : memref<128x768xbf16, #tpu.memory_space<vmem>>, vector<128x768xbf16>
    %cst_49 = arith.constant dense<0.000000e+00> : vector<2x768xf32>
    %199 = tpu.matmul %197, %198, %cst_49 {dimension_numbers = #tpu.dot_dimension_numbers<[1], [0], [0], [1], [0, 0, 1, 1], [], []>} : vector<2x128xbf16>, vector<128x768xbf16>, vector<2x768xf32> -> vector<2x768xf32>
    %200 = vector.extract_strided_slice %199 {offsets = [0, 0], sizes = [2, 384], strides = [1, 1]} : vector<2x768xf32> to vector<2x384xf32>
    %201 = vector.extract_strided_slice %199 {offsets = [0, 384], sizes = [2, 384], strides = [1, 1]} : vector<2x768xf32> to vector<2x384xf32>
    %202 = arith.addf %201, %9 : vector<2x384xf32>
    %203 = arith.truncf %162 : vector<2x128xf32> to vector<2x128xbf16>
    %c0_50 = arith.constant 0 : index
    %c0_51 = arith.constant 0 : index
    %204 = vector.load %arg5[%c0_50, %c0_51] : memref<128x384xbf16, #tpu.memory_space<vmem>>, vector<128x384xbf16>
    %cst_52 = arith.constant dense<0.000000e+00> : vector<2x384xf32>
    %205 = tpu.matmul %203, %204, %cst_52 {dimension_numbers = #tpu.dot_dimension_numbers<[1], [0], [0], [1], [0, 0, 1, 1], [], []>} : vector<2x128xbf16>, vector<128x384xbf16>, vector<2x384xf32> -> vector<2x384xf32>
    %206 = arith.addf %205, %12 : vector<2x384xf32>
    %207 = vector.extract_strided_slice %202 {offsets = [0, 0], sizes = [2, 128], strides = [1, 1]} : vector<2x384xf32> to vector<2x128xf32>
    %208 = vector.extract_strided_slice %206 {offsets = [0, 0], sizes = [2, 128], strides = [1, 1]} : vector<2x384xf32> to vector<2x128xf32>
    %209 = arith.addf %207, %208 : vector<2x128xf32>
    %210 = arith.negf %209 : vector<2x128xf32>
    %211 = math.exp %210 : vector<2x128xf32>
    %cst_53 = arith.constant 1.000000e+00 : f32
    %212 = vector.broadcast %cst_53 : f32 to vector<2x128xf32>
    %213 = arith.addf %212, %211 : vector<2x128xf32>
    %214 = arith.divf %212, %213 : vector<2x128xf32>
    %215 = vector.extract_strided_slice %202 {offsets = [0, 128], sizes = [2, 128], strides = [1, 1]} : vector<2x384xf32> to vector<2x128xf32>
    %216 = vector.extract_strided_slice %206 {offsets = [0, 128], sizes = [2, 128], strides = [1, 1]} : vector<2x384xf32> to vector<2x128xf32>
    %217 = arith.addf %215, %216 : vector<2x128xf32>
    %218 = arith.negf %217 : vector<2x128xf32>
    %219 = math.exp %218 : vector<2x128xf32>
    %cst_54 = arith.constant 1.000000e+00 : f32
    %220 = vector.broadcast %cst_54 : f32 to vector<2x128xf32>
    %221 = arith.addf %220, %219 : vector<2x128xf32>
    %222 = arith.divf %220, %221 : vector<2x128xf32>
    %223 = vector.extract_strided_slice %202 {offsets = [0, 256], sizes = [2, 128], strides = [1, 1]} : vector<2x384xf32> to vector<2x128xf32>
    %224 = vector.extract_strided_slice %206 {offsets = [0, 256], sizes = [2, 128], strides = [1, 1]} : vector<2x384xf32> to vector<2x128xf32>
    %225 = arith.mulf %214, %224 : vector<2x128xf32>
    %226 = arith.addf %223, %225 : vector<2x128xf32>
    %227 = math.tanh %226 : vector<2x128xf32>
    %cst_55 = arith.constant 1.000000e+00 : f32
    %228 = vector.broadcast %cst_55 : f32 to vector<2x128xf32>
    %229 = arith.subf %228, %222 : vector<2x128xf32>
    %230 = arith.mulf %229, %227 : vector<2x128xf32>
    %231 = arith.mulf %222, %162 : vector<2x128xf32>
    %232 = arith.addf %230, %231 : vector<2x128xf32>
    %233 = arith.addi %0, %c2_i32 : i32
    %c8_i32_56 = arith.constant 8 : i32
    %234 = arith.cmpi slt, %233, %c8_i32_56 : i32
    %235 = arith.select %234, %196, %161 : vector<2x128xf32>
    %236 = arith.select %234, %232, %162 : vector<2x128xf32>
    %237 = arith.select %234, %200, %163 : vector<2x384xf32>
    %c3_i32 = arith.constant 3 : i32
    %238 = arith.index_cast %c3_i32 : i32 to index
    %c0_57 = arith.constant 0 : index
    %c0_58 = arith.constant 0 : index
    %239 = vector.load %arg1[%238, %c0_57, %c0_58] : memref<8x2x384xbf16, #tpu.memory_space<vmem>>, vector<1x2x384xbf16>
    %240 = vector.shape_cast %239 : vector<1x2x384xbf16> to vector<2x384xbf16>
    %241 = arith.addf %237, %6 : vector<2x384xf32>
    %242 = vector.extract_strided_slice %240 {offsets = [0, 0], sizes = [2, 128], strides = [1, 1]} : vector<2x384xbf16> to vector<2x128xbf16>
    %243 = vector.extract_strided_slice %241 {offsets = [0, 0], sizes = [2, 128], strides = [1, 1]} : vector<2x384xf32> to vector<2x128xf32>
    %244 = arith.extf %242 : vector<2x128xbf16> to vector<2x128xf32>
    %245 = arith.addf %244, %243 : vector<2x128xf32>
    %246 = arith.negf %245 : vector<2x128xf32>
    %247 = math.exp %246 : vector<2x128xf32>
    %cst_59 = arith.constant 1.000000e+00 : f32
    %248 = vector.broadcast %cst_59 : f32 to vector<2x128xf32>
    %249 = arith.addf %248, %247 : vector<2x128xf32>
    %250 = arith.divf %248, %249 : vector<2x128xf32>
    %251 = vector.extract_strided_slice %240 {offsets = [0, 128], sizes = [2, 128], strides = [1, 1]} : vector<2x384xbf16> to vector<2x128xbf16>
    %252 = vector.extract_strided_slice %241 {offsets = [0, 128], sizes = [2, 128], strides = [1, 1]} : vector<2x384xf32> to vector<2x128xf32>
    %253 = arith.extf %251 : vector<2x128xbf16> to vector<2x128xf32>
    %254 = arith.addf %253, %252 : vector<2x128xf32>
    %255 = arith.negf %254 : vector<2x128xf32>
    %256 = math.exp %255 : vector<2x128xf32>
    %cst_60 = arith.constant 1.000000e+00 : f32
    %257 = vector.broadcast %cst_60 : f32 to vector<2x128xf32>
    %258 = arith.addf %257, %256 : vector<2x128xf32>
    %259 = arith.divf %257, %258 : vector<2x128xf32>
    %260 = vector.extract_strided_slice %240 {offsets = [0, 256], sizes = [2, 128], strides = [1, 1]} : vector<2x384xbf16> to vector<2x128xbf16>
    %261 = vector.extract_strided_slice %241 {offsets = [0, 256], sizes = [2, 128], strides = [1, 1]} : vector<2x384xf32> to vector<2x128xf32>
    %262 = arith.mulf %250, %261 : vector<2x128xf32>
    %263 = arith.extf %260 : vector<2x128xbf16> to vector<2x128xf32>
    %264 = arith.addf %263, %262 : vector<2x128xf32>
    %265 = math.tanh %264 : vector<2x128xf32>
    %cst_61 = arith.constant 1.000000e+00 : f32
    %266 = vector.broadcast %cst_61 : f32 to vector<2x128xf32>
    %267 = arith.subf %266, %259 : vector<2x128xf32>
    %268 = arith.mulf %267, %265 : vector<2x128xf32>
    %269 = arith.mulf %259, %235 : vector<2x128xf32>
    %270 = arith.addf %268, %269 : vector<2x128xf32>
    %271 = arith.truncf %270 : vector<2x128xf32> to vector<2x128xbf16>
    %c0_62 = arith.constant 0 : index
    %c0_63 = arith.constant 0 : index
    %272 = vector.load %arg3[%c0_62, %c0_63] : memref<128x768xbf16, #tpu.memory_space<vmem>>, vector<128x768xbf16>
    %cst_64 = arith.constant dense<0.000000e+00> : vector<2x768xf32>
    %273 = tpu.matmul %271, %272, %cst_64 {dimension_numbers = #tpu.dot_dimension_numbers<[1], [0], [0], [1], [0, 0, 1, 1], [], []>} : vector<2x128xbf16>, vector<128x768xbf16>, vector<2x768xf32> -> vector<2x768xf32>
    %274 = vector.extract_strided_slice %273 {offsets = [0, 0], sizes = [2, 384], strides = [1, 1]} : vector<2x768xf32> to vector<2x384xf32>
    %275 = vector.extract_strided_slice %273 {offsets = [0, 384], sizes = [2, 384], strides = [1, 1]} : vector<2x768xf32> to vector<2x384xf32>
    %276 = arith.addf %275, %9 : vector<2x384xf32>
    %277 = arith.truncf %236 : vector<2x128xf32> to vector<2x128xbf16>
    %c0_65 = arith.constant 0 : index
    %c0_66 = arith.constant 0 : index
    %278 = vector.load %arg5[%c0_65, %c0_66] : memref<128x384xbf16, #tpu.memory_space<vmem>>, vector<128x384xbf16>
    %cst_67 = arith.constant dense<0.000000e+00> : vector<2x384xf32>
    %279 = tpu.matmul %277, %278, %cst_67 {dimension_numbers = #tpu.dot_dimension_numbers<[1], [0], [0], [1], [0, 0, 1, 1], [], []>} : vector<2x128xbf16>, vector<128x384xbf16>, vector<2x384xf32> -> vector<2x384xf32>
    %280 = arith.addf %279, %12 : vector<2x384xf32>
    %281 = vector.extract_strided_slice %276 {offsets = [0, 0], sizes = [2, 128], strides = [1, 1]} : vector<2x384xf32> to vector<2x128xf32>
    %282 = vector.extract_strided_slice %280 {offsets = [0, 0], sizes = [2, 128], strides = [1, 1]} : vector<2x384xf32> to vector<2x128xf32>
    %283 = arith.addf %281, %282 : vector<2x128xf32>
    %284 = arith.negf %283 : vector<2x128xf32>
    %285 = math.exp %284 : vector<2x128xf32>
    %cst_68 = arith.constant 1.000000e+00 : f32
    %286 = vector.broadcast %cst_68 : f32 to vector<2x128xf32>
    %287 = arith.addf %286, %285 : vector<2x128xf32>
    %288 = arith.divf %286, %287 : vector<2x128xf32>
    %289 = vector.extract_strided_slice %276 {offsets = [0, 128], sizes = [2, 128], strides = [1, 1]} : vector<2x384xf32> to vector<2x128xf32>
    %290 = vector.extract_strided_slice %280 {offsets = [0, 128], sizes = [2, 128], strides = [1, 1]} : vector<2x384xf32> to vector<2x128xf32>
    %291 = arith.addf %289, %290 : vector<2x128xf32>
    %292 = arith.negf %291 : vector<2x128xf32>
    %293 = math.exp %292 : vector<2x128xf32>
    %cst_69 = arith.constant 1.000000e+00 : f32
    %294 = vector.broadcast %cst_69 : f32 to vector<2x128xf32>
    %295 = arith.addf %294, %293 : vector<2x128xf32>
    %296 = arith.divf %294, %295 : vector<2x128xf32>
    %297 = vector.extract_strided_slice %276 {offsets = [0, 256], sizes = [2, 128], strides = [1, 1]} : vector<2x384xf32> to vector<2x128xf32>
    %298 = vector.extract_strided_slice %280 {offsets = [0, 256], sizes = [2, 128], strides = [1, 1]} : vector<2x384xf32> to vector<2x128xf32>
    %299 = arith.mulf %288, %298 : vector<2x128xf32>
    %300 = arith.addf %297, %299 : vector<2x128xf32>
    %301 = math.tanh %300 : vector<2x128xf32>
    %cst_70 = arith.constant 1.000000e+00 : f32
    %302 = vector.broadcast %cst_70 : f32 to vector<2x128xf32>
    %303 = arith.subf %302, %296 : vector<2x128xf32>
    %304 = arith.mulf %303, %301 : vector<2x128xf32>
    %305 = arith.mulf %296, %236 : vector<2x128xf32>
    %306 = arith.addf %304, %305 : vector<2x128xf32>
    %307 = arith.addi %0, %c3_i32 : i32
    %c8_i32_71 = arith.constant 8 : i32
    %308 = arith.cmpi slt, %307, %c8_i32_71 : i32
    %309 = arith.select %308, %270, %235 : vector<2x128xf32>
    %310 = arith.select %308, %306, %236 : vector<2x128xf32>
    %311 = arith.select %308, %274, %237 : vector<2x384xf32>
    %c4_i32 = arith.constant 4 : i32
    %312 = arith.index_cast %c4_i32 : i32 to index
    %c0_72 = arith.constant 0 : index
    %c0_73 = arith.constant 0 : index
    %313 = vector.load %arg1[%312, %c0_72, %c0_73] : memref<8x2x384xbf16, #tpu.memory_space<vmem>>, vector<1x2x384xbf16>
    %314 = vector.shape_cast %313 : vector<1x2x384xbf16> to vector<2x384xbf16>
    %315 = arith.addf %311, %6 : vector<2x384xf32>
    %316 = vector.extract_strided_slice %314 {offsets = [0, 0], sizes = [2, 128], strides = [1, 1]} : vector<2x384xbf16> to vector<2x128xbf16>
    %317 = vector.extract_strided_slice %315 {offsets = [0, 0], sizes = [2, 128], strides = [1, 1]} : vector<2x384xf32> to vector<2x128xf32>
    %318 = arith.extf %316 : vector<2x128xbf16> to vector<2x128xf32>
    %319 = arith.addf %318, %317 : vector<2x128xf32>
    %320 = arith.negf %319 : vector<2x128xf32>
    %321 = math.exp %320 : vector<2x128xf32>
    %cst_74 = arith.constant 1.000000e+00 : f32
    %322 = vector.broadcast %cst_74 : f32 to vector<2x128xf32>
    %323 = arith.addf %322, %321 : vector<2x128xf32>
    %324 = arith.divf %322, %323 : vector<2x128xf32>
    %325 = vector.extract_strided_slice %314 {offsets = [0, 128], sizes = [2, 128], strides = [1, 1]} : vector<2x384xbf16> to vector<2x128xbf16>
    %326 = vector.extract_strided_slice %315 {offsets = [0, 128], sizes = [2, 128], strides = [1, 1]} : vector<2x384xf32> to vector<2x128xf32>
    %327 = arith.extf %325 : vector<2x128xbf16> to vector<2x128xf32>
    %328 = arith.addf %327, %326 : vector<2x128xf32>
    %329 = arith.negf %328 : vector<2x128xf32>
    %330 = math.exp %329 : vector<2x128xf32>
    %cst_75 = arith.constant 1.000000e+00 : f32
    %331 = vector.broadcast %cst_75 : f32 to vector<2x128xf32>
    %332 = arith.addf %331, %330 : vector<2x128xf32>
    %333 = arith.divf %331, %332 : vector<2x128xf32>
    %334 = vector.extract_strided_slice %314 {offsets = [0, 256], sizes = [2, 128], strides = [1, 1]} : vector<2x384xbf16> to vector<2x128xbf16>
    %335 = vector.extract_strided_slice %315 {offsets = [0, 256], sizes = [2, 128], strides = [1, 1]} : vector<2x384xf32> to vector<2x128xf32>
    %336 = arith.mulf %324, %335 : vector<2x128xf32>
    %337 = arith.extf %334 : vector<2x128xbf16> to vector<2x128xf32>
    %338 = arith.addf %337, %336 : vector<2x128xf32>
    %339 = math.tanh %338 : vector<2x128xf32>
    %cst_76 = arith.constant 1.000000e+00 : f32
    %340 = vector.broadcast %cst_76 : f32 to vector<2x128xf32>
    %341 = arith.subf %340, %333 : vector<2x128xf32>
    %342 = arith.mulf %341, %339 : vector<2x128xf32>
    %343 = arith.mulf %333, %309 : vector<2x128xf32>
    %344 = arith.addf %342, %343 : vector<2x128xf32>
    %345 = arith.truncf %344 : vector<2x128xf32> to vector<2x128xbf16>
    %c0_77 = arith.constant 0 : index
    %c0_78 = arith.constant 0 : index
    %346 = vector.load %arg3[%c0_77, %c0_78] : memref<128x768xbf16, #tpu.memory_space<vmem>>, vector<128x768xbf16>
    %cst_79 = arith.constant dense<0.000000e+00> : vector<2x768xf32>
    %347 = tpu.matmul %345, %346, %cst_79 {dimension_numbers = #tpu.dot_dimension_numbers<[1], [0], [0], [1], [0, 0, 1, 1], [], []>} : vector<2x128xbf16>, vector<128x768xbf16>, vector<2x768xf32> -> vector<2x768xf32>
    %348 = vector.extract_strided_slice %347 {offsets = [0, 0], sizes = [2, 384], strides = [1, 1]} : vector<2x768xf32> to vector<2x384xf32>
    %349 = vector.extract_strided_slice %347 {offsets = [0, 384], sizes = [2, 384], strides = [1, 1]} : vector<2x768xf32> to vector<2x384xf32>
    %350 = arith.addf %349, %9 : vector<2x384xf32>
    %351 = arith.truncf %310 : vector<2x128xf32> to vector<2x128xbf16>
    %c0_80 = arith.constant 0 : index
    %c0_81 = arith.constant 0 : index
    %352 = vector.load %arg5[%c0_80, %c0_81] : memref<128x384xbf16, #tpu.memory_space<vmem>>, vector<128x384xbf16>
    %cst_82 = arith.constant dense<0.000000e+00> : vector<2x384xf32>
    %353 = tpu.matmul %351, %352, %cst_82 {dimension_numbers = #tpu.dot_dimension_numbers<[1], [0], [0], [1], [0, 0, 1, 1], [], []>} : vector<2x128xbf16>, vector<128x384xbf16>, vector<2x384xf32> -> vector<2x384xf32>
    %354 = arith.addf %353, %12 : vector<2x384xf32>
    %355 = vector.extract_strided_slice %350 {offsets = [0, 0], sizes = [2, 128], strides = [1, 1]} : vector<2x384xf32> to vector<2x128xf32>
    %356 = vector.extract_strided_slice %354 {offsets = [0, 0], sizes = [2, 128], strides = [1, 1]} : vector<2x384xf32> to vector<2x128xf32>
    %357 = arith.addf %355, %356 : vector<2x128xf32>
    %358 = arith.negf %357 : vector<2x128xf32>
    %359 = math.exp %358 : vector<2x128xf32>
    %cst_83 = arith.constant 1.000000e+00 : f32
    %360 = vector.broadcast %cst_83 : f32 to vector<2x128xf32>
    %361 = arith.addf %360, %359 : vector<2x128xf32>
    %362 = arith.divf %360, %361 : vector<2x128xf32>
    %363 = vector.extract_strided_slice %350 {offsets = [0, 128], sizes = [2, 128], strides = [1, 1]} : vector<2x384xf32> to vector<2x128xf32>
    %364 = vector.extract_strided_slice %354 {offsets = [0, 128], sizes = [2, 128], strides = [1, 1]} : vector<2x384xf32> to vector<2x128xf32>
    %365 = arith.addf %363, %364 : vector<2x128xf32>
    %366 = arith.negf %365 : vector<2x128xf32>
    %367 = math.exp %366 : vector<2x128xf32>
    %cst_84 = arith.constant 1.000000e+00 : f32
    %368 = vector.broadcast %cst_84 : f32 to vector<2x128xf32>
    %369 = arith.addf %368, %367 : vector<2x128xf32>
    %370 = arith.divf %368, %369 : vector<2x128xf32>
    %371 = vector.extract_strided_slice %350 {offsets = [0, 256], sizes = [2, 128], strides = [1, 1]} : vector<2x384xf32> to vector<2x128xf32>
    %372 = vector.extract_strided_slice %354 {offsets = [0, 256], sizes = [2, 128], strides = [1, 1]} : vector<2x384xf32> to vector<2x128xf32>
    %373 = arith.mulf %362, %372 : vector<2x128xf32>
    %374 = arith.addf %371, %373 : vector<2x128xf32>
    %375 = math.tanh %374 : vector<2x128xf32>
    %cst_85 = arith.constant 1.000000e+00 : f32
    %376 = vector.broadcast %cst_85 : f32 to vector<2x128xf32>
    %377 = arith.subf %376, %370 : vector<2x128xf32>
    %378 = arith.mulf %377, %375 : vector<2x128xf32>
    %379 = arith.mulf %370, %310 : vector<2x128xf32>
    %380 = arith.addf %378, %379 : vector<2x128xf32>
    %381 = arith.addi %0, %c4_i32 : i32
    %c8_i32_86 = arith.constant 8 : i32
    %382 = arith.cmpi slt, %381, %c8_i32_86 : i32
    %383 = arith.select %382, %344, %309 : vector<2x128xf32>
    %384 = arith.select %382, %380, %310 : vector<2x128xf32>
    %385 = arith.select %382, %348, %311 : vector<2x384xf32>
    %c5_i32 = arith.constant 5 : i32
    %386 = arith.index_cast %c5_i32 : i32 to index
    %c0_87 = arith.constant 0 : index
    %c0_88 = arith.constant 0 : index
    %387 = vector.load %arg1[%386, %c0_87, %c0_88] : memref<8x2x384xbf16, #tpu.memory_space<vmem>>, vector<1x2x384xbf16>
    %388 = vector.shape_cast %387 : vector<1x2x384xbf16> to vector<2x384xbf16>
    %389 = arith.addf %385, %6 : vector<2x384xf32>
    %390 = vector.extract_strided_slice %388 {offsets = [0, 0], sizes = [2, 128], strides = [1, 1]} : vector<2x384xbf16> to vector<2x128xbf16>
    %391 = vector.extract_strided_slice %389 {offsets = [0, 0], sizes = [2, 128], strides = [1, 1]} : vector<2x384xf32> to vector<2x128xf32>
    %392 = arith.extf %390 : vector<2x128xbf16> to vector<2x128xf32>
    %393 = arith.addf %392, %391 : vector<2x128xf32>
    %394 = arith.negf %393 : vector<2x128xf32>
    %395 = math.exp %394 : vector<2x128xf32>
    %cst_89 = arith.constant 1.000000e+00 : f32
    %396 = vector.broadcast %cst_89 : f32 to vector<2x128xf32>
    %397 = arith.addf %396, %395 : vector<2x128xf32>
    %398 = arith.divf %396, %397 : vector<2x128xf32>
    %399 = vector.extract_strided_slice %388 {offsets = [0, 128], sizes = [2, 128], strides = [1, 1]} : vector<2x384xbf16> to vector<2x128xbf16>
    %400 = vector.extract_strided_slice %389 {offsets = [0, 128], sizes = [2, 128], strides = [1, 1]} : vector<2x384xf32> to vector<2x128xf32>
    %401 = arith.extf %399 : vector<2x128xbf16> to vector<2x128xf32>
    %402 = arith.addf %401, %400 : vector<2x128xf32>
    %403 = arith.negf %402 : vector<2x128xf32>
    %404 = math.exp %403 : vector<2x128xf32>
    %cst_90 = arith.constant 1.000000e+00 : f32
    %405 = vector.broadcast %cst_90 : f32 to vector<2x128xf32>
    %406 = arith.addf %405, %404 : vector<2x128xf32>
    %407 = arith.divf %405, %406 : vector<2x128xf32>
    %408 = vector.extract_strided_slice %388 {offsets = [0, 256], sizes = [2, 128], strides = [1, 1]} : vector<2x384xbf16> to vector<2x128xbf16>
    %409 = vector.extract_strided_slice %389 {offsets = [0, 256], sizes = [2, 128], strides = [1, 1]} : vector<2x384xf32> to vector<2x128xf32>
    %410 = arith.mulf %398, %409 : vector<2x128xf32>
    %411 = arith.extf %408 : vector<2x128xbf16> to vector<2x128xf32>
    %412 = arith.addf %411, %410 : vector<2x128xf32>
    %413 = math.tanh %412 : vector<2x128xf32>
    %cst_91 = arith.constant 1.000000e+00 : f32
    %414 = vector.broadcast %cst_91 : f32 to vector<2x128xf32>
    %415 = arith.subf %414, %407 : vector<2x128xf32>
    %416 = arith.mulf %415, %413 : vector<2x128xf32>
    %417 = arith.mulf %407, %383 : vector<2x128xf32>
    %418 = arith.addf %416, %417 : vector<2x128xf32>
    %419 = arith.truncf %418 : vector<2x128xf32> to vector<2x128xbf16>
    %c0_92 = arith.constant 0 : index
    %c0_93 = arith.constant 0 : index
    %420 = vector.load %arg3[%c0_92, %c0_93] : memref<128x768xbf16, #tpu.memory_space<vmem>>, vector<128x768xbf16>
    %cst_94 = arith.constant dense<0.000000e+00> : vector<2x768xf32>
    %421 = tpu.matmul %419, %420, %cst_94 {dimension_numbers = #tpu.dot_dimension_numbers<[1], [0], [0], [1], [0, 0, 1, 1], [], []>} : vector<2x128xbf16>, vector<128x768xbf16>, vector<2x768xf32> -> vector<2x768xf32>
    %422 = vector.extract_strided_slice %421 {offsets = [0, 0], sizes = [2, 384], strides = [1, 1]} : vector<2x768xf32> to vector<2x384xf32>
    %423 = vector.extract_strided_slice %421 {offsets = [0, 384], sizes = [2, 384], strides = [1, 1]} : vector<2x768xf32> to vector<2x384xf32>
    %424 = arith.addf %423, %9 : vector<2x384xf32>
    %425 = arith.truncf %384 : vector<2x128xf32> to vector<2x128xbf16>
    %c0_95 = arith.constant 0 : index
    %c0_96 = arith.constant 0 : index
    %426 = vector.load %arg5[%c0_95, %c0_96] : memref<128x384xbf16, #tpu.memory_space<vmem>>, vector<128x384xbf16>
    %cst_97 = arith.constant dense<0.000000e+00> : vector<2x384xf32>
    %427 = tpu.matmul %425, %426, %cst_97 {dimension_numbers = #tpu.dot_dimension_numbers<[1], [0], [0], [1], [0, 0, 1, 1], [], []>} : vector<2x128xbf16>, vector<128x384xbf16>, vector<2x384xf32> -> vector<2x384xf32>
    %428 = arith.addf %427, %12 : vector<2x384xf32>
    %429 = vector.extract_strided_slice %424 {offsets = [0, 0], sizes = [2, 128], strides = [1, 1]} : vector<2x384xf32> to vector<2x128xf32>
    %430 = vector.extract_strided_slice %428 {offsets = [0, 0], sizes = [2, 128], strides = [1, 1]} : vector<2x384xf32> to vector<2x128xf32>
    %431 = arith.addf %429, %430 : vector<2x128xf32>
    %432 = arith.negf %431 : vector<2x128xf32>
    %433 = math.exp %432 : vector<2x128xf32>
    %cst_98 = arith.constant 1.000000e+00 : f32
    %434 = vector.broadcast %cst_98 : f32 to vector<2x128xf32>
    %435 = arith.addf %434, %433 : vector<2x128xf32>
    %436 = arith.divf %434, %435 : vector<2x128xf32>
    %437 = vector.extract_strided_slice %424 {offsets = [0, 128], sizes = [2, 128], strides = [1, 1]} : vector<2x384xf32> to vector<2x128xf32>
    %438 = vector.extract_strided_slice %428 {offsets = [0, 128], sizes = [2, 128], strides = [1, 1]} : vector<2x384xf32> to vector<2x128xf32>
    %439 = arith.addf %437, %438 : vector<2x128xf32>
    %440 = arith.negf %439 : vector<2x128xf32>
    %441 = math.exp %440 : vector<2x128xf32>
    %cst_99 = arith.constant 1.000000e+00 : f32
    %442 = vector.broadcast %cst_99 : f32 to vector<2x128xf32>
    %443 = arith.addf %442, %441 : vector<2x128xf32>
    %444 = arith.divf %442, %443 : vector<2x128xf32>
    %445 = vector.extract_strided_slice %424 {offsets = [0, 256], sizes = [2, 128], strides = [1, 1]} : vector<2x384xf32> to vector<2x128xf32>
    %446 = vector.extract_strided_slice %428 {offsets = [0, 256], sizes = [2, 128], strides = [1, 1]} : vector<2x384xf32> to vector<2x128xf32>
    %447 = arith.mulf %436, %446 : vector<2x128xf32>
    %448 = arith.addf %445, %447 : vector<2x128xf32>
    %449 = math.tanh %448 : vector<2x128xf32>
    %cst_100 = arith.constant 1.000000e+00 : f32
    %450 = vector.broadcast %cst_100 : f32 to vector<2x128xf32>
    %451 = arith.subf %450, %444 : vector<2x128xf32>
    %452 = arith.mulf %451, %449 : vector<2x128xf32>
    %453 = arith.mulf %444, %384 : vector<2x128xf32>
    %454 = arith.addf %452, %453 : vector<2x128xf32>
    %455 = arith.addi %0, %c5_i32 : i32
    %c8_i32_101 = arith.constant 8 : i32
    %456 = arith.cmpi slt, %455, %c8_i32_101 : i32
    %457 = arith.select %456, %418, %383 : vector<2x128xf32>
    %458 = arith.select %456, %454, %384 : vector<2x128xf32>
    %459 = arith.select %456, %422, %385 : vector<2x384xf32>
    %c6_i32 = arith.constant 6 : i32
    %460 = arith.index_cast %c6_i32 : i32 to index
    %c0_102 = arith.constant 0 : index
    %c0_103 = arith.constant 0 : index
    %461 = vector.load %arg1[%460, %c0_102, %c0_103] : memref<8x2x384xbf16, #tpu.memory_space<vmem>>, vector<1x2x384xbf16>
    %462 = vector.shape_cast %461 : vector<1x2x384xbf16> to vector<2x384xbf16>
    %463 = arith.addf %459, %6 : vector<2x384xf32>
    %464 = vector.extract_strided_slice %462 {offsets = [0, 0], sizes = [2, 128], strides = [1, 1]} : vector<2x384xbf16> to vector<2x128xbf16>
    %465 = vector.extract_strided_slice %463 {offsets = [0, 0], sizes = [2, 128], strides = [1, 1]} : vector<2x384xf32> to vector<2x128xf32>
    %466 = arith.extf %464 : vector<2x128xbf16> to vector<2x128xf32>
    %467 = arith.addf %466, %465 : vector<2x128xf32>
    %468 = arith.negf %467 : vector<2x128xf32>
    %469 = math.exp %468 : vector<2x128xf32>
    %cst_104 = arith.constant 1.000000e+00 : f32
    %470 = vector.broadcast %cst_104 : f32 to vector<2x128xf32>
    %471 = arith.addf %470, %469 : vector<2x128xf32>
    %472 = arith.divf %470, %471 : vector<2x128xf32>
    %473 = vector.extract_strided_slice %462 {offsets = [0, 128], sizes = [2, 128], strides = [1, 1]} : vector<2x384xbf16> to vector<2x128xbf16>
    %474 = vector.extract_strided_slice %463 {offsets = [0, 128], sizes = [2, 128], strides = [1, 1]} : vector<2x384xf32> to vector<2x128xf32>
    %475 = arith.extf %473 : vector<2x128xbf16> to vector<2x128xf32>
    %476 = arith.addf %475, %474 : vector<2x128xf32>
    %477 = arith.negf %476 : vector<2x128xf32>
    %478 = math.exp %477 : vector<2x128xf32>
    %cst_105 = arith.constant 1.000000e+00 : f32
    %479 = vector.broadcast %cst_105 : f32 to vector<2x128xf32>
    %480 = arith.addf %479, %478 : vector<2x128xf32>
    %481 = arith.divf %479, %480 : vector<2x128xf32>
    %482 = vector.extract_strided_slice %462 {offsets = [0, 256], sizes = [2, 128], strides = [1, 1]} : vector<2x384xbf16> to vector<2x128xbf16>
    %483 = vector.extract_strided_slice %463 {offsets = [0, 256], sizes = [2, 128], strides = [1, 1]} : vector<2x384xf32> to vector<2x128xf32>
    %484 = arith.mulf %472, %483 : vector<2x128xf32>
    %485 = arith.extf %482 : vector<2x128xbf16> to vector<2x128xf32>
    %486 = arith.addf %485, %484 : vector<2x128xf32>
    %487 = math.tanh %486 : vector<2x128xf32>
    %cst_106 = arith.constant 1.000000e+00 : f32
    %488 = vector.broadcast %cst_106 : f32 to vector<2x128xf32>
    %489 = arith.subf %488, %481 : vector<2x128xf32>
    %490 = arith.mulf %489, %487 : vector<2x128xf32>
    %491 = arith.mulf %481, %457 : vector<2x128xf32>
    %492 = arith.addf %490, %491 : vector<2x128xf32>
    %493 = arith.truncf %492 : vector<2x128xf32> to vector<2x128xbf16>
    %c0_107 = arith.constant 0 : index
    %c0_108 = arith.constant 0 : index
    %494 = vector.load %arg3[%c0_107, %c0_108] : memref<128x768xbf16, #tpu.memory_space<vmem>>, vector<128x768xbf16>
    %cst_109 = arith.constant dense<0.000000e+00> : vector<2x768xf32>
    %495 = tpu.matmul %493, %494, %cst_109 {dimension_numbers = #tpu.dot_dimension_numbers<[1], [0], [0], [1], [0, 0, 1, 1], [], []>} : vector<2x128xbf16>, vector<128x768xbf16>, vector<2x768xf32> -> vector<2x768xf32>
    %496 = vector.extract_strided_slice %495 {offsets = [0, 0], sizes = [2, 384], strides = [1, 1]} : vector<2x768xf32> to vector<2x384xf32>
    %497 = vector.extract_strided_slice %495 {offsets = [0, 384], sizes = [2, 384], strides = [1, 1]} : vector<2x768xf32> to vector<2x384xf32>
    %498 = arith.addf %497, %9 : vector<2x384xf32>
    %499 = arith.truncf %458 : vector<2x128xf32> to vector<2x128xbf16>
    %c0_110 = arith.constant 0 : index
    %c0_111 = arith.constant 0 : index
    %500 = vector.load %arg5[%c0_110, %c0_111] : memref<128x384xbf16, #tpu.memory_space<vmem>>, vector<128x384xbf16>
    %cst_112 = arith.constant dense<0.000000e+00> : vector<2x384xf32>
    %501 = tpu.matmul %499, %500, %cst_112 {dimension_numbers = #tpu.dot_dimension_numbers<[1], [0], [0], [1], [0, 0, 1, 1], [], []>} : vector<2x128xbf16>, vector<128x384xbf16>, vector<2x384xf32> -> vector<2x384xf32>
    %502 = arith.addf %501, %12 : vector<2x384xf32>
    %503 = vector.extract_strided_slice %498 {offsets = [0, 0], sizes = [2, 128], strides = [1, 1]} : vector<2x384xf32> to vector<2x128xf32>
    %504 = vector.extract_strided_slice %502 {offsets = [0, 0], sizes = [2, 128], strides = [1, 1]} : vector<2x384xf32> to vector<2x128xf32>
    %505 = arith.addf %503, %504 : vector<2x128xf32>
    %506 = arith.negf %505 : vector<2x128xf32>
    %507 = math.exp %506 : vector<2x128xf32>
    %cst_113 = arith.constant 1.000000e+00 : f32
    %508 = vector.broadcast %cst_113 : f32 to vector<2x128xf32>
    %509 = arith.addf %508, %507 : vector<2x128xf32>
    %510 = arith.divf %508, %509 : vector<2x128xf32>
    %511 = vector.extract_strided_slice %498 {offsets = [0, 128], sizes = [2, 128], strides = [1, 1]} : vector<2x384xf32> to vector<2x128xf32>
    %512 = vector.extract_strided_slice %502 {offsets = [0, 128], sizes = [2, 128], strides = [1, 1]} : vector<2x384xf32> to vector<2x128xf32>
    %513 = arith.addf %511, %512 : vector<2x128xf32>
    %514 = arith.negf %513 : vector<2x128xf32>
    %515 = math.exp %514 : vector<2x128xf32>
    %cst_114 = arith.constant 1.000000e+00 : f32
    %516 = vector.broadcast %cst_114 : f32 to vector<2x128xf32>
    %517 = arith.addf %516, %515 : vector<2x128xf32>
    %518 = arith.divf %516, %517 : vector<2x128xf32>
    %519 = vector.extract_strided_slice %498 {offsets = [0, 256], sizes = [2, 128], strides = [1, 1]} : vector<2x384xf32> to vector<2x128xf32>
    %520 = vector.extract_strided_slice %502 {offsets = [0, 256], sizes = [2, 128], strides = [1, 1]} : vector<2x384xf32> to vector<2x128xf32>
    %521 = arith.mulf %510, %520 : vector<2x128xf32>
    %522 = arith.addf %519, %521 : vector<2x128xf32>
    %523 = math.tanh %522 : vector<2x128xf32>
    %cst_115 = arith.constant 1.000000e+00 : f32
    %524 = vector.broadcast %cst_115 : f32 to vector<2x128xf32>
    %525 = arith.subf %524, %518 : vector<2x128xf32>
    %526 = arith.mulf %525, %523 : vector<2x128xf32>
    %527 = arith.mulf %518, %458 : vector<2x128xf32>
    %528 = arith.addf %526, %527 : vector<2x128xf32>
    %529 = arith.addi %0, %c6_i32 : i32
    %c8_i32_116 = arith.constant 8 : i32
    %530 = arith.cmpi slt, %529, %c8_i32_116 : i32
    %531 = arith.select %530, %492, %457 : vector<2x128xf32>
    %532 = arith.select %530, %528, %458 : vector<2x128xf32>
    %533 = arith.select %530, %496, %459 : vector<2x384xf32>
    %c7_i32 = arith.constant 7 : i32
    %534 = arith.index_cast %c7_i32 : i32 to index
    %c0_117 = arith.constant 0 : index
    %c0_118 = arith.constant 0 : index
    %535 = vector.load %arg1[%534, %c0_117, %c0_118] : memref<8x2x384xbf16, #tpu.memory_space<vmem>>, vector<1x2x384xbf16>
    %536 = vector.shape_cast %535 : vector<1x2x384xbf16> to vector<2x384xbf16>
    %537 = arith.addf %533, %6 : vector<2x384xf32>
    %538 = vector.extract_strided_slice %536 {offsets = [0, 0], sizes = [2, 128], strides = [1, 1]} : vector<2x384xbf16> to vector<2x128xbf16>
    %539 = vector.extract_strided_slice %537 {offsets = [0, 0], sizes = [2, 128], strides = [1, 1]} : vector<2x384xf32> to vector<2x128xf32>
    %540 = arith.extf %538 : vector<2x128xbf16> to vector<2x128xf32>
    %541 = arith.addf %540, %539 : vector<2x128xf32>
    %542 = arith.negf %541 : vector<2x128xf32>
    %543 = math.exp %542 : vector<2x128xf32>
    %cst_119 = arith.constant 1.000000e+00 : f32
    %544 = vector.broadcast %cst_119 : f32 to vector<2x128xf32>
    %545 = arith.addf %544, %543 : vector<2x128xf32>
    %546 = arith.divf %544, %545 : vector<2x128xf32>
    %547 = vector.extract_strided_slice %536 {offsets = [0, 128], sizes = [2, 128], strides = [1, 1]} : vector<2x384xbf16> to vector<2x128xbf16>
    %548 = vector.extract_strided_slice %537 {offsets = [0, 128], sizes = [2, 128], strides = [1, 1]} : vector<2x384xf32> to vector<2x128xf32>
    %549 = arith.extf %547 : vector<2x128xbf16> to vector<2x128xf32>
    %550 = arith.addf %549, %548 : vector<2x128xf32>
    %551 = arith.negf %550 : vector<2x128xf32>
    %552 = math.exp %551 : vector<2x128xf32>
    %cst_120 = arith.constant 1.000000e+00 : f32
    %553 = vector.broadcast %cst_120 : f32 to vector<2x128xf32>
    %554 = arith.addf %553, %552 : vector<2x128xf32>
    %555 = arith.divf %553, %554 : vector<2x128xf32>
    %556 = vector.extract_strided_slice %536 {offsets = [0, 256], sizes = [2, 128], strides = [1, 1]} : vector<2x384xbf16> to vector<2x128xbf16>
    %557 = vector.extract_strided_slice %537 {offsets = [0, 256], sizes = [2, 128], strides = [1, 1]} : vector<2x384xf32> to vector<2x128xf32>
    %558 = arith.mulf %546, %557 : vector<2x128xf32>
    %559 = arith.extf %556 : vector<2x128xbf16> to vector<2x128xf32>
    %560 = arith.addf %559, %558 : vector<2x128xf32>
    %561 = math.tanh %560 : vector<2x128xf32>
    %cst_121 = arith.constant 1.000000e+00 : f32
    %562 = vector.broadcast %cst_121 : f32 to vector<2x128xf32>
    %563 = arith.subf %562, %555 : vector<2x128xf32>
    %564 = arith.mulf %563, %561 : vector<2x128xf32>
    %565 = arith.mulf %555, %531 : vector<2x128xf32>
    %566 = arith.addf %564, %565 : vector<2x128xf32>
    %567 = arith.truncf %566 : vector<2x128xf32> to vector<2x128xbf16>
    %c0_122 = arith.constant 0 : index
    %c0_123 = arith.constant 0 : index
    %568 = vector.load %arg3[%c0_122, %c0_123] : memref<128x768xbf16, #tpu.memory_space<vmem>>, vector<128x768xbf16>
    %cst_124 = arith.constant dense<0.000000e+00> : vector<2x768xf32>
    %569 = tpu.matmul %567, %568, %cst_124 {dimension_numbers = #tpu.dot_dimension_numbers<[1], [0], [0], [1], [0, 0, 1, 1], [], []>} : vector<2x128xbf16>, vector<128x768xbf16>, vector<2x768xf32> -> vector<2x768xf32>
    %570 = vector.extract_strided_slice %569 {offsets = [0, 0], sizes = [2, 384], strides = [1, 1]} : vector<2x768xf32> to vector<2x384xf32>
    %571 = vector.extract_strided_slice %569 {offsets = [0, 384], sizes = [2, 384], strides = [1, 1]} : vector<2x768xf32> to vector<2x384xf32>
    %572 = arith.addf %571, %9 : vector<2x384xf32>
    %573 = arith.truncf %532 : vector<2x128xf32> to vector<2x128xbf16>
    %c0_125 = arith.constant 0 : index
    %c0_126 = arith.constant 0 : index
    %574 = vector.load %arg5[%c0_125, %c0_126] : memref<128x384xbf16, #tpu.memory_space<vmem>>, vector<128x384xbf16>
    %cst_127 = arith.constant dense<0.000000e+00> : vector<2x384xf32>
    %575 = tpu.matmul %573, %574, %cst_127 {dimension_numbers = #tpu.dot_dimension_numbers<[1], [0], [0], [1], [0, 0, 1, 1], [], []>} : vector<2x128xbf16>, vector<128x384xbf16>, vector<2x384xf32> -> vector<2x384xf32>
    %576 = arith.addf %575, %12 : vector<2x384xf32>
    %577 = vector.extract_strided_slice %572 {offsets = [0, 0], sizes = [2, 128], strides = [1, 1]} : vector<2x384xf32> to vector<2x128xf32>
    %578 = vector.extract_strided_slice %576 {offsets = [0, 0], sizes = [2, 128], strides = [1, 1]} : vector<2x384xf32> to vector<2x128xf32>
    %579 = arith.addf %577, %578 : vector<2x128xf32>
    %580 = arith.negf %579 : vector<2x128xf32>
    %581 = math.exp %580 : vector<2x128xf32>
    %cst_128 = arith.constant 1.000000e+00 : f32
    %582 = vector.broadcast %cst_128 : f32 to vector<2x128xf32>
    %583 = arith.addf %582, %581 : vector<2x128xf32>
    %584 = arith.divf %582, %583 : vector<2x128xf32>
    %585 = vector.extract_strided_slice %572 {offsets = [0, 128], sizes = [2, 128], strides = [1, 1]} : vector<2x384xf32> to vector<2x128xf32>
    %586 = vector.extract_strided_slice %576 {offsets = [0, 128], sizes = [2, 128], strides = [1, 1]} : vector<2x384xf32> to vector<2x128xf32>
    %587 = arith.addf %585, %586 : vector<2x128xf32>
    %588 = arith.negf %587 : vector<2x128xf32>
    %589 = math.exp %588 : vector<2x128xf32>
    %cst_129 = arith.constant 1.000000e+00 : f32
    %590 = vector.broadcast %cst_129 : f32 to vector<2x128xf32>
    %591 = arith.addf %590, %589 : vector<2x128xf32>
    %592 = arith.divf %590, %591 : vector<2x128xf32>
    %593 = vector.extract_strided_slice %572 {offsets = [0, 256], sizes = [2, 128], strides = [1, 1]} : vector<2x384xf32> to vector<2x128xf32>
    %594 = vector.extract_strided_slice %576 {offsets = [0, 256], sizes = [2, 128], strides = [1, 1]} : vector<2x384xf32> to vector<2x128xf32>
    %595 = arith.mulf %584, %594 : vector<2x128xf32>
    %596 = arith.addf %593, %595 : vector<2x128xf32>
    %597 = math.tanh %596 : vector<2x128xf32>
    %cst_130 = arith.constant 1.000000e+00 : f32
    %598 = vector.broadcast %cst_130 : f32 to vector<2x128xf32>
    %599 = arith.subf %598, %592 : vector<2x128xf32>
    %600 = arith.mulf %599, %597 : vector<2x128xf32>
    %601 = arith.mulf %592, %532 : vector<2x128xf32>
    %602 = arith.addf %600, %601 : vector<2x128xf32>
    %603 = arith.addi %0, %c7_i32 : i32
    %c8_i32_131 = arith.constant 8 : i32
    %604 = arith.cmpi slt, %603, %c8_i32_131 : i32
    %605 = arith.select %604, %566, %531 : vector<2x128xf32>
    %606 = arith.select %604, %602, %532 : vector<2x128xf32>
    %607 = arith.select %604, %570, %533 : vector<2x384xf32>
    %c8_i32_132 = arith.constant 8 : i32
    %c0_133 = arith.constant 0 : index
    %c0_134 = arith.constant 0 : index
    %608 = vector.load %arg10[%c0_133, %c0_134] : memref<2x128xf32, #tpu.memory_space<vmem>>, vector<2x128xf32>
    tpu.vector_store %arg10[%c0_133, %c0_134], %605 {strides = array<i32>} : memref<2x128xf32, #tpu.memory_space<vmem>>, vector<2x128xf32>,
    %c0_135 = arith.constant 0 : index
    %c0_136 = arith.constant 0 : index
    %609 = vector.load %arg11[%c0_135, %c0_136] : memref<2x128xf32, #tpu.memory_space<vmem>>, vector<2x128xf32>
    tpu.vector_store %arg11[%c0_135, %c0_136], %606 {strides = array<i32>} : memref<2x128xf32, #tpu.memory_space<vmem>>, vector<2x128xf32>,
    %c0_137 = arith.constant 0 : index
    %c0_138 = arith.constant 0 : index
    %610 = vector.load %arg12[%c0_137, %c0_138] : memref<2x384xf32, #tpu.memory_space<vmem>>, vector<2x384xf32>
    tpu.vector_store %arg12[%c0_137, %c0_138], %607 {strides = array<i32>} : memref<2x384xf32, #tpu.memory_space<vmem>>, vector<2x384xf32>,
    %c0_i32_139 = arith.constant 0 : i32
    %611 = arith.cmpi eq, %arg0, %c0_i32_139 : i32
    %612 = arith.extui %611 : i1 to i32
    %c0_i32_140 = arith.constant 0 : i32
    %613 = arith.cmpi ne, %612, %c0_i32_140 : i32
    scf.if %613 {
      %c0_141 = arith.constant 0 : index
      %c0_142 = arith.constant 0 : index
      %614 = vector.load %arg7[%c0_141, %c0_142] : memref<128x128xf32, #tpu.memory_space<vmem>>, vector<128x128xf32>
      %cst_143 = arith.constant dense<0.000000e+00> : vector<2x128xf32>
      %615 = tpu.matmul %606, %614, %cst_143 {dimension_numbers = #tpu.dot_dimension_numbers<[1], [0], [0], [1], [0, 0, 1, 1], [], []>} : vector<2x128xf32>, vector<128x128xf32>, vector<2x128xf32> -> vector<2x128xf32>
      %c0_144 = arith.constant 0 : index
      %c0_145 = arith.constant 0 : index
      %616 = vector.load %arg8[%c0_144, %c0_145] : memref<1x128xf32, #tpu.memory_space<vmem>>, vector<1x128xf32>
      %617 = vector.broadcast %616 : vector<1x128xf32> to vector<2x128xf32>
      %618 = arith.addf %615, %617 : vector<2x128xf32>
      %cst_146 = arith.constant 0.000000e+00 : f32
      %619 = vector.broadcast %cst_146 : f32 to vector<2x128xf32>
      %620 = arith.maximumf %618, %619 : vector<2x128xf32>
      %c0_147 = arith.constant 0 : index
      %c0_148 = arith.constant 0 : index
      %621 = vector.load %arg9[%c0_147, %c0_148] : memref<2x128xf32, #tpu.memory_space<vmem>>, vector<2x128xf32>
      tpu.vector_store %arg9[%c0_147, %c0_148], %620 {strides = array<i32>} : memref<2x128xf32, #tpu.memory_space<vmem>>, vector<2x128xf32>,
    } else {
    }
    return
  }
  func.func @transform_0(%arg0: i32) -> (i32, i32, i32) {
    %c0_i32 = arith.constant 0 : i32
    %c0_i32_0 = arith.constant 0 : i32
    %c0_i32_1 = arith.constant 0 : i32
    return %arg0, %c0_i32, %c0_i32_0 : i32, i32, i32
  }
  func.func @transform_1(%arg0: i32) -> (i32, i32) {
    %c0_i32 = arith.constant 0 : i32
    %c0_i32_0 = arith.constant 0 : i32
    %c0_i32_1 = arith.constant 0 : i32
    return %c0_i32, %c0_i32_0 : i32, i32
  }
  func.func @transform_2(%arg0: i32) -> (i32, i32) {
    %c0_i32 = arith.constant 0 : i32
    %c0_i32_0 = arith.constant 0 : i32
    %c0_i32_1 = arith.constant 0 : i32
    return %c0_i32, %c0_i32_0 : i32, i32
  }
  func.func @transform_3(%arg0: i32) -> (i32, i32) {
    %c0_i32 = arith.constant 0 : i32
    %c0_i32_0 = arith.constant 0 : i32
    %c0_i32_1 = arith.constant 0 : i32
    return %c0_i32, %c0_i32_0 : i32, i32
  }
  func.func @transform_4(%arg0: i32) -> (i32, i32) {
    %c0_i32 = arith.constant 0 : i32
    %c0_i32_0 = arith.constant 0 : i32
    %c0_i32_1 = arith.constant 0 : i32
    return %c0_i32, %c0_i32_0 : i32, i32
  }
  func.func @transform_5(%arg0: i32) -> (i32, i32) {
    %c0_i32 = arith.constant 0 : i32
    %c0_i32_0 = arith.constant 0 : i32
    %c0_i32_1 = arith.constant 0 : i32
    return %c0_i32, %c0_i32_0 : i32, i32
  }
  func.func @transform_6(%arg0: i32) -> (i32, i32) {
    %c0_i32 = arith.constant 0 : i32
    %c0_i32_0 = arith.constant 0 : i32
    %c0_i32_1 = arith.constant 0 : i32
    return %c0_i32, %c0_i32_0 : i32, i32
  }
  func.func @transform_7(%arg0: i32) -> (i32, i32) {
    %c0_i32 = arith.constant 0 : i32
    %c0_i32_0 = arith.constant 0 : i32
    %c0_i32_1 = arith.constant 0 : i32
    return %c0_i32, %c0_i32_0 : i32, i32
  }
  func.func @transform_8(%arg0: i32) -> (i32, i32) {
    %c0_i32 = arith.constant 0 : i32
    %c0_i32_0 = arith.constant 0 : i32
    %c0_i32_1 = arith.constant 0 : i32
    return %c0_i32, %c0_i32_0 : i32, i32
  }
}

</mosaic_0001>

<bundles_post_ra>
// kernel: tpu_custom_call.1
= control target key start
LH: loop header
LB: loop body
LE: loop exit
PB: predicated region body
PF: predicated region fallthrough
CT: control target
= control target key end

     0   :  { %13 = vsyncpa [#allocation6], 0  ;;  %s5350_s0 = inlined_call_operand.hbm [shape: bf16[8,2,384], index: 0, kind: input, shape index: {}]   ;;  %s5351_s1 = inlined_call_operand.hbm [shape: f32[1,384], index: 1, kind: input, shape index: {}]   ;;  %s5352_s2 = inlined_call_operand.hbm [shape: bf16[128,768], index: 2, kind: input, shape index: {}]   ;;  %s5353_s3 = inlined_call_operand.vmem [shape: f32[1,384], index: 3, kind: input, shape index: {}]   ;;  %s5354_s4 = inlined_call_operand.hbm [shape: bf16[128,384], index: 4, kind: input, shape index: {}]   ;;  %s5355_s5 = inlined_call_operand.vmem [shape: f32[1,384], index: 5, kind: input, shape index: {}]   ;;  %s5356_s6 = inlined_call_operand.hbm [shape: f32[128,128], index: 6, kind: input, shape index: {}]   ;;  %s5357_s7 = inlined_call_operand.vmem [shape: f32[1,128], index: 7, kind: input, shape index: {}]   ;;  %s5358_s8 = inlined_call_operand.hbm [shape: f32[2,128], index: 8, kind: output, shape index: {}]  }
   0x1   :  { %14 = vsyncpa [#allocation9], 0 }
   0x2   :  { %15 = vsyncpa [#allocation12], 0 }
   0x3   :  { %16 = vsyncpa [#allocation7], 0  ;;  %s3918_s27 = smov [#allocation8]   ;;  %s3919_s29 = smov [#allocation11]  }
   0x4   :  { %s35_s28 = sshll.u32 %s3918_s27, 4  ;;  %s58_s30 = sshll.u32 %s3919_s29, 4  ;;  %s36_s28 = int_to_ptr.vmem [resolvable:$true] %s35_s28  ;;  %s59_s30 = int_to_ptr.vmem [resolvable:$true] %s58_s30 }
   0x5   :  { %s3798_s9 = scalar_lea.vmem %s36_s28, 48  ;;  %s3802_s10 = scalar_lea.vmem %s36_s28, 64 }
   0x6   :  { %p3799_p0 = scmp.ne.s32.totalorder %s36_s28, %s3798_s9  ;;  %p3803_p1 = scmp.lt.s32.totalorder %s36_s28, %s36_s28 }
   0x7   :  { %p3804_p2 = scmp.lt.s32.totalorder %s3802_s10, %s3798_s9 }
   0x9   :  { %p3805_p3 = por %p3804_p2, %p3803_p1 }
   0xb   :  { %p3806_p4 = pnand %p3805_p3, %p3799_p0 }
   0xd   :  { %3809 = shalt.err (!%p3806_p4)
}
   0xe   :  { %38 = dma.hbm_to_vmem [thread:$0]  %s5351_s1, 48, %s36_s28, [#allocation9]  }
   0xf   :  { %s3818_s13 = scalar_lea.vmem %s59_s30, 3072  ;;  %p3823_p6 = scmp.lt.s32.totalorder %s59_s30, %s59_s30 }
  0x10   :  { %p3819_p5 = scmp.ne.s32.totalorder %s59_s30, %s3818_s13  ;;  %p3824_p7 = scmp.lt.s32.totalorder %s3818_s13, %s3818_s13 }
  0x12   :  { %p3825_p8 = por %p3824_p7, %p3823_p6 }
  0x14   :  { %p3826_p9 = pnand %p3825_p8, %p3819_p5 }
  0x16   :  { %3829 = shalt.err (!%p3826_p9)
}
  0x17   :  { %s3920_s14 = smov 192   ;;  %s3921_s15 = smov 12  }
  0x18   :  { %64 = dma.hbm_to_vmem [thread:$0]  %s5354_s4, 3072, %s59_s30, [#allocation12], %s3920_s14, %s3920_s14, %s3921_s15  }
  0x19   :  { %s3922_s18 = smov [#allocation5]  }
  0x1a   :  { %s22_s19 = sshll.u32 %s3922_s18, 4  ;;  %s23_s19 = int_to_ptr.vmem [resolvable:$true] %s22_s19 }
  0x1b   :  { %s3838_s20 = scalar_lea.vmem %s23_s19, 384  ;;  %p3843_p11 = scmp.lt.s32.totalorder %s23_s19, %s23_s19 }
  0x1c   :  { %p3839_p10 = scmp.ne.s32.totalorder %s23_s19, %s3838_s20  ;;  %p3844_p12 = scmp.lt.s32.totalorder %s3838_s20, %s3838_s20 }
  0x1e   :  { %p3845_p13 = por %p3844_p12, %p3843_p11 }
  0x20   :  { %p3846_p0 = pnand %p3845_p13, %p3839_p10 }
  0x22   :  { %3849 = shalt.err (!%p3846_p0)
}
  0x23   :  { %s3923_s1 = smov 48   ;;  %s3924_s21 = smov 3  }
  0x24   :  { %28 = dma.hbm_to_vmem [thread:$0]  %s5350_s0, 384, %s23_s19, [#allocation6], %s3923_s1, %s3923_s1, %s3924_s21  }
  0x25   :  { %s3925_s24 = smov [#allocation10]  }
  0x26   :  { %s44_s25 = sshll.u32 %s3925_s24, 4  ;;  %s45_s25 = int_to_ptr.vmem [resolvable:$true] %s44_s25 }
  0x27   :  { %s3858_s4 = scalar_lea.vmem %s45_s25, 6144  ;;  %p3863_p2 = scmp.lt.s32.totalorder %s45_s25, %s45_s25 }
  0x28   :  { %p3859_p1 = scmp.ne.s32.totalorder %s45_s25, %s3858_s4  ;;  %p3864_p3 = scmp.lt.s32.totalorder %s3858_s4, %s3858_s4 }
  0x2a   :  { %p3865_p4 = por %p3864_p3, %p3863_p2 }
  0x2c   :  { %p3866_p5 = pnand %p3865_p4, %p3859_p1 }
  0x2e   :  { %3869 = shalt.err (!%p3866_p5)
}
  0x2f   :  { %s3926_s26 = smov 384   ;;  %s3927_s27 = smov 24  }
  0x30   :  { %50 = dma.hbm_to_vmem [thread:$0]  %s5352_s2, 6144, %s45_s25, [#allocation9], %s3926_s26, %s3926_s26, %s3927_s27  }
  0x31   :  { %s3928_s30 = smov [#allocation13]  }
  0x32   :  { %s72_s9 = sshll.u32 %s3928_s30, 4  ;;  %s73_s9 = int_to_ptr.vmem [resolvable:$true] %s72_s9 }
  0x33   :  { %s3878_s0 = scalar_lea.vmem %s73_s9, 2048  ;;  %p3883_p7 = scmp.lt.s32.totalorder %s73_s9, %s73_s9 }
  0x34   :  { %p3879_p6 = scmp.ne.s32.totalorder %s73_s9, %s3878_s0  ;;  %p3884_p8 = scmp.lt.s32.totalorder %s3878_s0, %s3878_s0 }
  0x36   :  { %p3885_p9 = por %p3884_p8, %p3883_p7 }
  0x38   :  { %p3886_p10 = pnand %p3885_p9, %p3879_p6 }
  0x3a   :  { %3889 = shalt.err (!%p3886_p10)
}
  0x3b   :  { %s3929_s10 = smov 128   ;;  %s3930_s11 = smov 8  }
  0x3c   :  { %78 = dma.hbm_to_vmem [thread:$0]  %s5356_s6, 2048, %s73_s9, [#allocation12], %s3929_s10, %s3929_s10, %s3930_s11  }
  0x3d   :  { %3910 = dma.done.wait [#allocation6], 384  }
  0x3e   :  { %3911 = vsyncadd [#allocation6], 4294966912 }
  0x3f   :  { %3912 = dma.done.wait [#allocation9], 6192  }
  0x40   :  { %3913 = vsyncadd [#allocation9], 4294961104 }
  0x41   :  { %3914 = dma.done.wait [#allocation12], 5120  }
  0x42   :  { %3915 = vsyncadd [#allocation12], 4294962176  ;;  %v5359_v0 = vmov 0   ;;  %v5361_v1 = vmov 0.0   ;;  %v4001_v2 = vld [vmem:[#allocation10 + $0x154] ss:$24 sps:$4 sm:$0xff]   ;;  %v107_v17 = vlaneseq }
  0x43   :  { %533 = vmatprep.mubr.bf16.mxu0 %v5359_v0  ;;  %574 = vmatprep.mubr.bf16.mxu1 %v5359_v0  ;;  %102 = vst [vmem:[#allocation2] sm:$0x3] %v5361_v1  ;;  %104 = vst [vmem:[#allocation4] sm:$0x3f] %v5361_v1  ;;  %v4003_v3 = vld [vmem:[#allocation10 + $0x15c] ss:$24 sps:$4 sm:$0xff]  }
  0x44   :  { %103 = vst [vmem:[#allocation3] sm:$0x3] %v5361_v1  ;;  %5524 = vst [vmem:[#allocation19_spill] sm:$0xff] %v4003_v3  ;;  %501 = vmatprep.subr.bf16.mxu0 %v4001_v2  ;;  %v4006_v4 = vld [vmem:[#allocation10 + $0x150] ss:$24 sps:$4 sm:$0xff]   ;;  %542 = vmatprep.subr.bf16.mxu1 %v4003_v3  ;;  %v108_v25 = vshrl.u32 %v107_v17, 7 }
  0x45   :  { %v4008_v5 = vld [vmem:[#allocation10 + $0x158] ss:$24 sps:$4 sm:$0xff]   ;;  %v4011_v6 = vld [vmem:[#allocation10 + $0x124] ss:$24 sps:$4 sm:$0xff]   ;;  %502 = vmatpush1.bf16.msra.mxu0 %v4006_v4  ;;  %v4020_v9 = vld [vmem:[#allocation10 + $0x128] ss:$24 sps:$4 sm:$0xff]  }
  0x46   :  { %5525 = vst [vmem:[#allocation20_spill] sm:$0xff] %v4008_v5  ;;  %543 = vmatpush1.bf16.msra.mxu1 %v4008_v5  ;;  %v4015_v7 = vld [vmem:[#allocation10 + $0x12c] ss:$24 sps:$4 sm:$0xff]   ;;  %v4017_v8 = vld [vmem:[#allocation10 + $0x120] ss:$24 sps:$4 sm:$0xff]   ;;  %503 = vmatprep.subr.bf16.mxu0 %v4011_v6  ;;  %5527 = vst [vmem:[#allocation22_spill] sm:$0xff] %v4020_v9 }
  0x47   :  { %5526 = vst [vmem:[#allocation21_spill] sm:$0xff] %v4015_v7  ;;  %544 = vmatprep.subr.bf16.mxu1 %v4015_v7  ;;  %v4023_v10 = vld [vmem:[#allocation10 + $0xf4] ss:$24 sps:$4 sm:$0xff]   ;;  %v4027_v12 = vld [vmem:[#allocation10 + $0xf0] ss:$24 sps:$4 sm:$0xff]   ;;  %v4065_v30 = vsub.s32 0, %v108_v25 }
  0x48   :  { %v4025_v11 = vld [vmem:[#allocation10 + $0xfc] ss:$24 sps:$4 sm:$0xff]   ;;  %v4029_v13 = vld [vmem:[#allocation10 + $0xf8] ss:$24 sps:$4 sm:$0xff]   ;;  %v4037_v15 = vld [vmem:[#allocation10 + $0xcc] ss:$24 sps:$4 sm:$0xff]  }
  0x49   :  { %5528 = vst [vmem:[#allocation23_spill] sm:$0xff] %v4025_v11  ;;  %5529 = vst [vmem:[#allocation24_spill] sm:$0xff] %v4029_v13  ;;  %504 = vmatpush1.bf16.msra.mxu0 %v4017_v8  ;;  %v4033_v14 = vld [vmem:[#allocation10 + $0xc4] ss:$24 sps:$4 sm:$0xff]   ;;  %v4039_v16 = vld [vmem:[#allocation10 + $0xc0] ss:$24 sps:$4 sm:$0xff]  }
  0x4a   :  { %545 = vmatpush1.bf16.msra.mxu1 %v4020_v9  ;;  %505 = vmatprep.subr.bf16.mxu0 %v4023_v10  ;;  %5530 = vst [vmem:[#allocation25_spill] sm:$0xff] %v4037_v15  ;;  %v4043_v18 = vld [vmem:[#allocation10 + $0xc8] ss:$24 sps:$4 sm:$0xff]   ;;  %v4045_v19 = vld [vmem:[#allocation10 + $0x94] ss:$24 sps:$4 sm:$0xff]   ;;  %v4067_v31 = vsub.s32 1, %v108_v25 }
  0x4b   :  { %546 = vmatprep.subr.bf16.mxu1 %v4025_v11  ;;  %5531 = vst [vmem:[#allocation26_spill] sm:$0xff] %v4043_v18  ;;  %v4049_v20 = vld [vmem:[#allocation10 + $0x9c] ss:$24 sps:$4 sm:$0xff]   ;;  %v3933_v21 = vmov 1983009808   ;;  %v4075_v34 = vsub.s32 2, %v108_v25 }
  0x4c   :  { %5532 = vst [vmem:[#allocation27_spill] sm:$0xff] %v4049_v20  ;;  %v162_v22 = vunpack.c.l.s4 %v3933_v21  ;;  %v4051_v23 = vld [vmem:[#allocation10 + $0x90] ss:$24 sps:$4 sm:$0xff]   ;;  %v4057_v26 = vld [vmem:[#allocation10 + $0x64] ss:$24 sps:$4 sm:$0xff]   ;;  %vm3934_vm0 = vmmov 0  }
  0x4d   :  { %506 = vmatpush1.bf16.msra.mxu0 %v4027_v12  ;;  %v4053_v24 = vld [vmem:[#allocation10 + $0x98] ss:$24 sps:$4 sm:$0xff]   ;;  %v4061_v27 = vld [vmem:[#allocation10 + $0x6c] ss:$24 sps:$4 sm:$0xff]   ;;  %v4071_v32 = vld [vmem:[#allocation10 + $0x68] ss:$24 sps:$4 sm:$0xff]  }
  0x4e   :  { %547 = vmatpush1.bf16.msra.mxu1 %v4029_v13  ;;  %507 = vmatprep.subr.bf16.mxu0 %v4033_v14  ;;  %5533 = vst [vmem:[#allocation28_spill] sm:$0xff] %v4053_v24  ;;  %5534 = vst [vmem:[#allocation29_spill] sm:$0xff] %v4061_v27  ;;  %v163_v28 = vunpack.c.0.s8 %v162_v22  ;;  %v4063_v29 = vld [vmem:[#allocation10 + $0x60] ss:$24 sps:$4 sm:$0xff]   ;;  %v4073_v33 = vld [vmem:[#allocation10 + $0x34] ss:$24 sps:$4 sm:$0xff]  }
  0x4f   :  { %548 = vmatprep.subr.bf16.mxu1 %v4037_v15  ;;  %5535 = vst [vmem:[#allocation30_spill] sm:$0xff] %v4071_v32  ;;  %v4079_v35 = vld [vmem:[#allocation10 + $0x3c] ss:$24 sps:$4 sm:$0xff]   ;;  %v4085_v38 = vld [vmem:[#allocation10 + $0x30] ss:$24 sps:$4 sm:$0xff]   ;;  %s3935_s16 = smov [#allocation14]  }
  0x50   :  { %5536 = vst [vmem:[#allocation31_spill] sm:$0xff] %v4079_v35  ;;  %v4081_v36 = vsub.s32 %v163_v28, %v108_v25  ;;  %v105_v37 = vld [vmem:[#allocation8] sm:$0x7]  ;;  %5538 = vst [vmem:[#allocation33_spill] sm:$0xff] %v4085_v38  ;;  %v4087_v39 = vld [vmem:[#allocation10 + $0x38] ss:$24 sps:$4 sm:$0xff]  }
  0x51   :  { %508 = vmatpush1.bf16.msra.mxu0 %v4039_v16  ;;  %5539 = vst [vmem:[#allocation34_spill] sm:$0xff] %v4087_v39  ;;  %v4089_v40 = vld [vmem:[#allocation10 + $0x4] ss:$24 sps:$4 sm:$0xff]   ;;  %v4092_v41 = vrot.slane %v105_v37, %v4065_v30  ;;  %v4095_v42 = vrot.slane %v105_v37, %v4067_v31  ;;  %v4098_v43 = vrot.slane %v105_v37, %v4075_v34  ;;  %v4104_v45 = vld [vmem:[#allocation10] ss:$24 sps:$4 sm:$0xff]   ;;  %s2964_s17 = sshll.u32 %s3935_s16, 4  ;;  %s2965_s17 = int_to_ptr.vmem [resolvable:$true] %s2964_s17 }
  0x52   :  { %549 = vmatpush1.bf16.msra.mxu1 %v4043_v18  ;;  %509 = vmatprep.subr.bf16.mxu0 %v4045_v19  ;;  %5537 = vst [vmem:[#allocation32_spill] sm:$0xff] %v4081_v36  ;;  %5540 = vst [vmem:[#allocation35_spill] sm:$0xff] %v4089_v40  ;;  %v4102_v44 = vld [vmem:[#allocation10 + $0xc] ss:$24 sps:$4 sm:$0xff]   ;;  %v4110_v48 = vld [vmem:[#allocation10 + $0x8] ss:$24 sps:$4 sm:$0xff]   ;;  %p3895_p12 = scmp.lt.s32.totalorder %s2965_s17, %s2965_s17 }
  0x53   :  { %550 = vmatprep.subr.bf16.mxu1 %v4049_v20  ;;  %5541 = vst [vmem:[#allocation36_spill] sm:$0xff] %v4092_v41  ;;  %5542 = vst [vmem:[#allocation37_spill] sm:$0xff] %v4095_v42  ;;  %v160_v46 = vcombine.low %v4092_v41, %v4095_v42  ;;  %v174_v47 = vrot.slane %v4098_v43, %v4081_v36  ;;  %v4112_v49 = vld [vmem:[#allocation10 + $0x164] ss:$24 sps:$4 sm:$0xff]   ;;  %v4116_v51 = vld [vmem:[#allocation11 + $0xac] ss:$12 sps:$4 sm:$0xff]  }
  0x54   :  { %5543 = vst [vmem:[#allocation38_spill] sm:$0xff] %v4102_v44  ;;  %5544 = vst [vmem:[#allocation39_spill] sm:$0xff] %v4104_v45  ;;  %v159_v50 = vld [vmem:[#allocation5] sm:$0x7]  ;;  %v158_v53 = vld [vmem:[#allocation4] sm:$0x3f] }
  0x55   :  { %510 = vmatpush1.bf16.msra.mxu0 %v4051_v23  ;;  %5545 = vst [vmem:[#allocation40_spill] sm:$0xff] %v4110_v48  ;;  %5546 = vst [vmem:[#allocation41_spill] sm:$0xff] %v4112_v49  ;;  %v167_v52 = vrot.slane %v160_v46, %v4081_v36  ;;  %v178_v55 = vunpack.c.l.bf16 %v159_v50  ;;  %v187_v56 = vrot.slane %v159_v50, 1  ;;  %v203_v28 = vrot.slane %v159_v50, 2  ;;  %v4193_v1 = vld [vmem:[#allocation10 + $0x70] ss:$24 sps:$4 sm:$0xff]  }
  0x56   :  { %551 = vmatpush1.bf16.msra.mxu1 %v4053_v24  ;;  %511 = vmatprep.subr.bf16.mxu0 %v4057_v26  ;;  %5547 = vst [vmem:[#allocation42_spill] sm:$0xff] %v4116_v51  ;;  %5555 = vst [vmem:[#allocation50_spill] sm:$0xff] %v4193_v1  ;;  %v4195_v36 = vld [vmem:[#allocation11 + $0x30] ss:$12 sps:$4 sm:$0xff]   ;;  %s3890_s18 = scalar_lea.vmem %s2965_s17, 32 }
  0x57   :  { %552 = vmatprep.subr.bf16.mxu1 %v4061_v27  ;;  %v175_v54 = vcombine.low %v167_v52, %v174_v47  ;;  %v189_v59 = vunpack.c.l.bf16 %v187_v56  ;;  %v205_v46 = vunpack.c.l.bf16 %v203_v28  ;;  %v4151_v28 = vld [vmem:[#allocation11 + $0x7c] ss:$12 sps:$4 sm:$0xff]   ;;  %5556 = vst [vmem:[#allocation51_spill] sm:$0xff] %v4195_v36  ;;  %p3891_p11 = scmp.ne.s32.totalorder %s2965_s17, %s3890_s18  ;;  %p3896_p13 = scmp.lt.s32.totalorder %s3890_s18, %s3890_s18 }
  0x59   :  { %512 = vmatpush1.bf16.msra.mxu0 %v4063_v29  ;;  %v177_v57 = vadd.f32 %v175_v54, %v158_v53  ;;  %p3897_p0 = por %p3896_p13, %p3895_p12 }
  0x5a   :  { %553 = vmatpush1.bf16.msra.mxu1 %v4071_v32  ;;  %513 = vmatprep.subr.bf16.mxu0 %v4073_v33 }
  0x5b   :  { %554 = vmatprep.subr.bf16.mxu1 %v4079_v35  ;;  %v179_v58 = vadd.f32 %v178_v55, %v177_v57  ;;  %v191_v60 = vrot.slane %v177_v57, 2  ;;  %v200_v37 = vrot.slane %v177_v57, 4  ;;  %v156_v55 = vld [vmem:[#allocation2] sm:$0x3]  ;;  %v4135_v57 = vld [vmem:[#allocation10 + $0x134] ss:$24 sps:$4 sm:$0xff]   ;;  %p3898_p1 = pnand %p3897_p0, %p3891_p11 }
  0x5d   :  { %514 = vmatpush1.bf16.msra.mxu0 %v4085_v38  ;;  %v2975_v61 = vmul.f32 -1.442695, %v179_v58  ;;  %v193_v62 = vadd.f32 %v191_v60, %v189_v59 }
  0x5e   :  { %555 = vmatpush1.bf16.msra.mxu1 %v4087_v39  ;;  %515 = vmatprep.subr.bf16.mxu0 %v4089_v40 }
  0x5f   :  { %556 = vmatprep.subr.bf16.mxu1 %v4102_v44  ;;  %3486 = vpow2.f32 %v2975_v61  ;;  %v2976_v63 = vmul.f32 -1.442695, %v193_v62  ;;  %v4127_v62 = vld [vmem:[#allocation10 + $0x160] ss:$24 sps:$4 sm:$0xff]  }
  0x61   :  { %516 = vmatpush1.bf16.msra.mxu0 %v4104_v45  ;;  %3488 = vpow2.f32 %v2976_v63  ;;  %v4129_v63 = vld [vmem:[#allocation11 + $0xa8] ss:$12 sps:$4 sm:$0xff]  }
  0x62   :  { %557 = vmatpush1.bf16.msra.mxu1 %v4110_v48  ;;  %583 = vmatprep.subr.bf16.mxu0 %v4112_v49 }
  0x63   :  { %788 = vmatprep.subr.bf16.mxu1 %v4116_v51 }
  0x6c   :  { %v3487_v17 = vpop.eup %3486 }
  0x6d   :  { %v183_v21 = vadd.f32 1.0, %v3487_v17  ;;  %v4137_v17 = vld [vmem:[#allocation11 + $0x94] ss:$12 sps:$4 sm:$0xff]  }
  0x6e   :  { %v3489_v22 = vpop.eup %3488 }
  0x6f   :  { %3490 = vrcp.f32 %v183_v21  ;;  %v197_v25 = vadd.f32 1.0, %v3489_v22  ;;  %v4143_v21 = vld [vmem:[#allocation10 + $0x130] ss:$24 sps:$4 sm:$0xff]  }
  0x70   :  { %v4145_v22 = vld [vmem:[#allocation11 + $0x90] ss:$12 sps:$4 sm:$0xff]  }
  0x71   :  { %3492 = vrcp.f32 %v197_v25  ;;  %v4149_v25 = vld [vmem:[#allocation10 + $0x104] ss:$24 sps:$4 sm:$0xff]  }
  0x7c   :  { %v3491_v47 = vpop.eup %3490 }
  0x7d   :  { %v202_v52 = vmul.f32 %v3491_v47, %v200_v37  ;;  %v4157_v37 = vld [vmem:[#allocation10 + $0x100] ss:$24 sps:$4 sm:$0xff]   ;;  %v4163_v47 = vld [vmem:[#allocation10 + $0xd4] ss:$24 sps:$4 sm:$0xff]  }
  0x7e   :  { %v3493_v54 = vpop.eup %3492 }
  0x7f   :  { %v206_v53 = vadd.f32 %v205_v46, %v202_v52  ;;  %v208_v56 = vsub.f32 1.0, %v3493_v54  ;;  %v210_v58 = vmul.f32 %v3493_v54, %v156_v55  ;;  %v4159_v46 = vld [vmem:[#allocation11 + $0x78] ss:$12 sps:$4 sm:$0xff]   ;;  %v4171_v54 = vld [vmem:[#allocation11 + $0x60] ss:$12 sps:$4 sm:$0xff]  }
  0x80   :  { %v4165_v52 = vld [vmem:[#allocation11 + $0x64] ss:$12 sps:$4 sm:$0xff]   ;;  %5548 = vst [vmem:[#allocation43_spill] sm:$0xff] %v4171_v54 }
  0x81   :  { %3494 = vtanh.f32 %v206_v53  ;;  %v4169_v53 = vld [vmem:[#allocation10 + $0xd0] ss:$24 sps:$4 sm:$0xff]   ;;  %v4175_v55 = vld [vmem:[#allocation10 + $0xa4] ss:$24 sps:$4 sm:$0xff]  }
  0x82   :  { %5549 = vst [vmem:[#allocation44_spill] sm:$0xff] %v4175_v55 }
  0x8e   :  { %v3495_v59 = vpop.eup %3494 }
  0x8f   :  { %v209_v60 = vmul.f32 %v3495_v59, %v208_v56  ;;  %v4177_v56 = vld [vmem:[#allocation11 + $0x4c] ss:$12 sps:$4 sm:$0xff]   ;;  %v4183_v59 = vld [vmem:[#allocation11 + $0x48] ss:$12 sps:$4 sm:$0xff]  }
  0x90   :  { %5550 = vst [vmem:[#allocation45_spill] sm:$0xff] %v4177_v56  ;;  %5552 = vst [vmem:[#allocation47_spill] sm:$0xff] %v4183_v59 }
  0x91   :  { %v4125_v61 = vadd.f32 %v210_v58, %v209_v60  ;;  %v4181_v58 = vld [vmem:[#allocation10 + $0xa0] ss:$24 sps:$4 sm:$0xff]   ;;  %v4187_v60 = vld [vmem:[#allocation10 + $0x74] ss:$24 sps:$4 sm:$0xff]  }
  0x92   :  { %5551 = vst [vmem:[#allocation46_spill] sm:$0xff] %v4181_v58  ;;  %5553 = vst [vmem:[#allocation48_spill] sm:$0xff] %v4187_v60 }
  0x93   :  { %v4133_v50 = vpack.c.bf16 %v4125_v61, %v4125_v61 }
  0x95   :  { %534 = vmatmul.mubr.bf16.vlgmr.msra.gmra.mxu0 %v4133_v50  ;;  %575 = vmatmul.mubr.bf16.vlgmr.msra.gmra.mxu1 %v4133_v50 }
  0x96   :  { %584 = vmatpush1.bf16.msra.mxu0 %v4127_v62  ;;  %789 = vmatpush1.bf16.msra.mxu1 %v4129_v63 }
  0x97   :  { %585 = vmatprep.subr.bf16.mxu0 %v4135_v57  ;;  %790 = vmatprep.subr.bf16.mxu1 %v4137_v17 }
  0x98   :  { %615 = vmatprep.mubr.bf16.mxu0 %v5359_v0  ;;  %820 = vmatprep.mubr.bf16.mxu1 %v5359_v0  ;;  %v4189_v0 = vld [vmem:[#allocation11 + $0x34] ss:$12 sps:$4 sm:$0xff]  }
  0x99   :  { %5554 = vst [vmem:[#allocation49_spill] sm:$0xff] %v4189_v0 }
  0x9a   :  { %586 = vmatpush1.bf16.msra.mxu0 %v4143_v21  ;;  %791 = vmatpush1.bf16.msra.mxu1 %v4145_v22 }
  0x9b   :  { %587 = vmatprep.subr.bf16.mxu0 %v4149_v25  ;;  %792 = vmatprep.subr.bf16.mxu1 %v4151_v28 }
  0x9e   :  { %588 = vmatpush1.bf16.msra.mxu0 %v4157_v37  ;;  %793 = vmatpush1.bf16.msra.mxu1 %v4159_v46 }
  0x9f   :  { %589 = vmatprep.subr.bf16.mxu0 %v4163_v47  ;;  %794 = vmatprep.subr.bf16.mxu1 %v4165_v52 }
  0xa2   :  { %590 = vmatpush1.bf16.msra.mxu0 %v4169_v53  ;;  %795 = vmatpush1.bf16.msra.mxu1 %v4171_v54  ;;  %v4199_v54 = vld [vmem:[#allocation10 + $0x44] ss:$24 sps:$4 sm:$0xff]  }
  0xa3   :  { %591 = vmatprep.subr.bf16.mxu0 %v4175_v55  ;;  %796 = vmatprep.subr.bf16.mxu1 %v4177_v56  ;;  %v4201_v55 = vld [vmem:[#allocation11 + $0x1c] ss:$12 sps:$4 sm:$0xff]   ;;  %v4205_v56 = vld [vmem:[#allocation10 + $0x40] ss:$24 sps:$4 sm:$0xff]  }
  0xa4   :  { %5557 = vst [vmem:[#allocation52_spill] sm:$0xff] %v4201_v55  ;;  %5558 = vst [vmem:[#allocation53_spill] sm:$0xff] %v4205_v56 }
  0xa6   :  { %592 = vmatpush1.bf16.msra.mxu0 %v4181_v58  ;;  %797 = vmatpush1.bf16.msra.mxu1 %v4183_v59  ;;  %v4207_v58 = vld [vmem:[#allocation11 + $0x18] ss:$12 sps:$4 sm:$0xff]   ;;  %v4211_v59 = vld [vmem:[#allocation10 + $0x14] ss:$24 sps:$4 sm:$0xff]  }
  0xa7   :  { %593 = vmatprep.subr.bf16.mxu0 %v4187_v60  ;;  %798 = vmatprep.subr.bf16.mxu1 %v4189_v0  ;;  %5559 = vst [vmem:[#allocation54_spill] sm:$0xff] %v4207_v58  ;;  %5560 = vst [vmem:[#allocation55_spill] sm:$0xff] %v4211_v59  ;;  %v4213_v60 = vld [vmem:[#allocation11 + $0x4] ss:$12 sps:$4 sm:$0xff]  }
  0xa8   :  { %v4217_v0 = vld [vmem:[#allocation10 + $0x10] ss:$24 sps:$4 sm:$0xff]  }
  0xaa   :  { %594 = vmatpush1.bf16.msra.mxu0 %v4193_v1  ;;  %799 = vmatpush1.bf16.msra.mxu1 %v4195_v36  ;;  %v4219_v1 = vld [vmem:[#allocation11] ss:$12 sps:$4 sm:$0xff]   ;;  %v4221_v36 = vld [vmem:[#allocation3] sm:$0x3] }
  0xab   :  { %595 = vmatprep.subr.bf16.mxu0 %v4199_v54  ;;  %800 = vmatprep.subr.bf16.mxu1 %v4201_v55  ;;  %5561 = vst [vmem:[#allocation56_spill] sm:$0xff] %v4219_v1  ;;  %v627_v55 = vpack.c.bf16 %v4221_v36, %v4221_v36 }
  0xae   :  { %596 = vmatpush1.bf16.msra.mxu0 %v4205_v56  ;;  %801 = vmatpush1.bf16.msra.mxu1 %v4207_v58  ;;  %v4229_v56 = vld [vmem:[#allocation11 + $0xb0] ss:$12 sps:$4 sm:$0xff]   ;;  %v5563_v58 = vmov 0.0  }
  0xaf   :  { %597 = vmatprep.subr.bf16.mxu0 %v4211_v59  ;;  %802 = vmatprep.subr.bf16.mxu1 %v4213_v60  ;;  %5562 = vst [vmem:[#allocation57_spill] sm:$0xff] %v4229_v56  ;;  %v4235_v59 = vld [vmem:[#allocation11 + $0x98] ss:$12 sps:$4 sm:$0xff]  }
  0xb0   :  { %5564 = vst [vmem:[#allocation58_spill] sm:$0xff] %v4235_v59 }
  0xb2   :  { %598 = vmatpush1.bf16.msra.mxu0 %v4217_v0  ;;  %803 = vmatpush1.bf16.msra.mxu1 %v4219_v1  ;;  %v5565_v1 = vmov 0  }
  0xb3   :  { %3169 = vmatprep.subr.bf16.mxu0 %v5563_v58  ;;  %954 = vmatprep.subr.bf16.mxu1 %v4001_v2 }
  0xb5   :  { %616 = vmatmul.mubr.bf16.vlgmr.msra.gmra.mxu0 %v4133_v50  ;;  %821 = vmatmul.mubr.bf16.vlgmr.msra.gmra.mxu1 %v627_v55  ;;  %v4244_v50 = vld [vmem:[#allocation11 + $0x80] ss:$12 sps:$4 sm:$0xff]  }
  0xb6   :  { %3170 = vmatpush3.bf16.msra.mxu0 %v4229_v56  ;;  %3185 = vmatprep.mubr.msk.bf16.mxu0 %vm3934_vm0, %v5563_v58  ;;  %5566 = vst [vmem:[#allocation59_spill] sm:$0xff] %v4244_v50  ;;  %v4250_v56 = vld [vmem:[#allocation11 + $0x68] ss:$12 sps:$4 sm:$0xff]  }
  0xb7   :  { %3171 = vmatprep.subr.bf16.mxu0 %v5563_v58  ;;  %955 = vmatpush1.bf16.msra.mxu1 %v4006_v4  ;;  %5567 = vst [vmem:[#allocation60_spill] sm:$0xff] %v4250_v56 }
  0xb8   :  { %956 = vmatprep.subr.bf16.mxu1 %v4011_v6  ;;  %986 = vmatprep.mubr.bf16.mxu1 %v5565_v1 }
  0xba   :  { %3172 = vmatpush3.bf16.msra.mxu0 %v4235_v59  ;;  %v4256_v59 = vld [vmem:[#allocation11 + $0x50] ss:$12 sps:$4 sm:$0xff]  }
  0xbb   :  { %3173 = vmatprep.subr.bf16.mxu0 %v5563_v58  ;;  %957 = vmatpush1.bf16.msra.mxu1 %v4017_v8  ;;  %5568 = vst [vmem:[#allocation61_spill] sm:$0xff] %v4256_v59 }
  0xbc   :  { %958 = vmatprep.subr.bf16.mxu1 %v4023_v10 }
  0xbe   :  { %3174 = vmatpush3.bf16.msra.mxu0 %v4244_v50  ;;  %v4262_v50 = vld [vmem:[#allocation11 + $0x38] ss:$12 sps:$4 sm:$0xff]  }
  0xbf   :  { %3175 = vmatprep.subr.bf16.mxu0 %v5563_v58  ;;  %959 = vmatpush1.bf16.msra.mxu1 %v4027_v12  ;;  %5569 = vst [vmem:[#allocation62_spill] sm:$0xff] %v4262_v50 }
  0xc0   :  { %960 = vmatprep.subr.bf16.mxu1 %v4033_v14 }
  0xc2   :  { %3176 = vmatpush3.bf16.msra.mxu0 %v4250_v56  ;;  %v4268_v56 = vld [vmem:[#allocation11 + $0x20] ss:$12 sps:$4 sm:$0xff]  }
  0xc3   :  { %3177 = vmatprep.subr.bf16.mxu0 %v5563_v58  ;;  %961 = vmatpush1.bf16.msra.mxu1 %v4039_v16  ;;  %5570 = vst [vmem:[#allocation63_spill] sm:$0xff] %v4268_v56 }
  0xc4   :  { %962 = vmatprep.subr.bf16.mxu1 %v4045_v19 }
  0xc6   :  { %3178 = vmatpush3.bf16.msra.mxu0 %v4256_v59  ;;  %v4274_v59 = vld [vmem:[#allocation11 + $0x8] ss:$12 sps:$4 sm:$0xff]  }
  0xc7   :  { %3179 = vmatprep.subr.bf16.mxu0 %v5563_v58  ;;  %963 = vmatpush1.bf16.msra.mxu1 %v4051_v23  ;;  %5571 = vst [vmem:[#allocation64_spill] sm:$0xff] %v4274_v59 }
  0xc8   :  { %964 = vmatprep.subr.bf16.mxu1 %v4057_v26 }
  0xca   :  { %3180 = vmatpush3.bf16.msra.mxu0 %v4262_v50 }
  0xcb   :  { %3181 = vmatprep.subr.bf16.mxu0 %v5563_v58  ;;  %965 = vmatpush1.bf16.msra.mxu1 %v4063_v29 }
  0xcc   :  { %966 = vmatprep.subr.bf16.mxu1 %v4073_v33 }
  0xce   :  { %3182 = vmatpush3.bf16.msra.mxu0 %v4268_v56 }
  0xcf   :  { %3183 = vmatprep.subr.bf16.mxu0 %v5563_v58  ;;  %967 = vmatpush1.bf16.msra.mxu1 %v4085_v38 }
  0xd0   :  { %968 = vmatprep.subr.bf16.mxu1 %v4089_v40 }
  0xd2   :  { %3184 = vmatpush3.bf16.msra.mxu0 %v4274_v59 }
  0xd3   :  { %995 = vmatprep.subr.bf16.mxu0 %v4003_v3  ;;  %969 = vmatpush1.bf16.msra.mxu1 %v4104_v45 }
  0xd4   :  { %1036 = vmatprep.subr.bf16.mxu1 %v4112_v49 }
  0xd5   :  { %3186 = vmatmul.mubr.bf16.vlgmr.msra.gmra.mxu0 %v627_v55  ;;  %v920_v55 = vld [vmem:[#allocation5 + $0x3] sm:$0x7] }
  0xd6   :  { %996 = vmatpush1.bf16.msra.mxu0 %v4008_v5  ;;  %1027 = vmatprep.mubr.bf16.mxu0 %v5565_v1 }
  0xd7   :  { %997 = vmatprep.subr.bf16.mxu0 %v4015_v7 }
  0xda   :  { %998 = vmatpush1.bf16.msra.mxu0 %v4020_v9 }
  0xdb   :  { %999 = vmatprep.subr.bf16.mxu0 %v4025_v11 }
  0xde   :  { %1000 = vmatpush1.bf16.msra.mxu0 %v4029_v13  ;;  %v933_v13 = vrot.slane %v920_v55, 1 }
  0xdf   :  { %1001 = vmatprep.subr.bf16.mxu0 %v4037_v15 }
  0xe0   :  { %v935_v9 = vunpack.c.l.bf16 %v933_v13  ;;  %v139_v13 = vld [vmem:[%s5355_s5] sm:$0x7] }
  0xe2   :  { %1002 = vmatpush1.bf16.msra.mxu0 %v4043_v18  ;;  %v924_v18 = vunpack.c.l.bf16 %v920_v55 }
  0xe3   :  { %1003 = vmatprep.subr.bf16.mxu0 %v4049_v20 }
  0xe6   :  { %1004 = vmatpush1.bf16.msra.mxu0 %v4053_v24 }
  0xe7   :  { %1005 = vmatprep.subr.bf16.mxu0 %v4061_v27 }
  0xea   :  { %1006 = vmatpush1.bf16.msra.mxu0 %v4071_v32 }
  0xeb   :  { %1007 = vmatprep.subr.bf16.mxu0 %v4079_v35 }
  0xee   :  { %1008 = vmatpush1.bf16.msra.mxu0 %v4087_v39 }
  0xef   :  { %1009 = vmatprep.subr.bf16.mxu0 %v4102_v44 }
  0xf2   :  { %1010 = vmatpush1.bf16.msra.mxu0 %v4110_v48 }
  0xf3   :  { %1081 = vmatprep.subr.bf16.mxu0 %v4116_v51 }
 0x155   :  { %v535_v15 = vpop.f32.mrf.mxu0  ;;  %v576_v20 = vpop.f32.mrf.mxu1 }
 0x156   :  { %v921_v24 = vadd.f32 %v535_v15, %v4092_v41  ;;  %v122_v15 = vld [vmem:[%s5353_s3] sm:$0x7] }
 0x157   :  { %v537_v27 = vpop.f32.mrf.mxu0  ;;  %v578_v11 = vpop.f32.mrf.mxu1 }
 0x158   :  { %v925_v32 = vadd.f32 %v924_v18, %v921_v24  ;;  %v922_v35 = vadd.f32 %v537_v27, %v4095_v42 }
 0x159   :  { %v539_v39 = vpop.f32.mrf.mxu0  ;;  %v580_v7 = vpop.f32.mrf.mxu1 }
 0x15a   :  { %v3051_v44 = vmul.f32 -1.442695, %v925_v32  ;;  %v936_v51 = vadd.f32 %v935_v9, %v922_v35  ;;  %v4309_v7 = vrot.slane %v122_v15, %v4065_v30  ;;  %v944_v9 = vrot.slane %v920_v55, 2 }
 0x15b   :  { %v540_v5 = vpop.f32.mrf.mxu0  ;;  %v581_v48 = vpop.f32.mrf.mxu1  ;;  %v4316_v35 = vrot.slane %v122_v15, %v4067_v31 }
 0x15c   :  { %3496 = vpow2.f32 %v3051_v44  ;;  %v3052_v49 = vmul.f32 -1.442695, %v936_v51  ;;  %5572 = vst [vmem:[#allocation65_spill] sm:$0xff] %v4309_v7  ;;  %v4312_v5 = vrot.slane %v139_v13, %v4065_v30  ;;  %v4320_v44 = vrot.slane %v139_v13, %v4067_v31 }
 0x15d   :  { %v946_v30 = vunpack.c.l.bf16 %v944_v9 }
 0x15e   :  { %3498 = vpow2.f32 %v3052_v49  ;;  %5573 = vst [vmem:[#allocation66_spill] sm:$0xff] %v4312_v5  ;;  %v923_v49 = vadd.f32 %v576_v20, %v4098_v43 }
 0x169   :  { %v3497_v45 = vpop.eup %3496 }
 0x16a   :  { %v929_v3 = vadd.f32 1.0, %v3497_v45 }
 0x16b   :  { %v3499_v18 = vpop.eup %3498 }
 0x16c   :  { %3500 = vrcp.f32 %v929_v3  ;;  %v940_v24 = vadd.f32 1.0, %v3499_v18  ;;  %v624_v3 = vadd.f32 %v578_v11, %v4309_v7 }
 0x16e   :  { %3502 = vrcp.f32 %v940_v24 }
 0x175   :  { %v617_v27 = vpop.f32.mrf.mxu0  ;;  %v822_v32 = vpop.f32.mrf.mxu1 }
 0x176   :  { %v823_v39 = vadd.f32 %v822_v32, %v4312_v5  ;;  %v625_v11 = vadd.f32 %v617_v27, %v4316_v35 }
 0x177   :  { %v619_v45 = vpop.f32.mrf.mxu0  ;;  %v824_v48 = vpop.f32.mrf.mxu1 }
 0x178   :  { %v869_v51 = vadd.f32 %v823_v39, %v624_v3  ;;  %v825_v59 = vadd.f32 %v824_v48, %v4320_v44 }
 0x179   :  { %v3501_v55 = vpop.eup %3500  ;;  %v621_v18 = vpop.f32.mrf.mxu0 }
 0x17a   :  { %v826_v42 = vpop.f32.mrf.mxu1  ;;  %v943_v41 = vmul.f32 %v3501_v55, %v923_v49  ;;  %v3049_v7 = vmul.f32 -1.442695, %v869_v51  ;;  %v876_v40 = vadd.f32 %v825_v59, %v625_v11  ;;  %v5574_v18 = vld [vmem:[#allocation43_spill] sm:$0xff]  ;;  %v5575_v11 = vld [vmem:[#allocation44_spill] sm:$0xff] }
 0x17b   :  { %v622_v32 = vpop.f32.mrf.mxu0  ;;  %v3503_v20 = vpop.eup %3502 }
 0x17c   :  { %v827_v5 = vpop.f32.mrf.mxu1  ;;  %v947_v31 = vadd.f32 %v946_v30, %v943_v41  ;;  %3504 = vpow2.f32 %v3049_v7  ;;  %v3050_v38 = vmul.f32 -1.442695, %v876_v40  ;;  %v949_v24 = vsub.f32 1.0, %v3503_v20  ;;  %v5577_v32 = vld [vmem:[#allocation46_spill] sm:$0xff] }
 0x17d   :  { %v951_v27 = vmul.f32 %v3503_v20, %v4125_v61  ;;  %v4331_v41 = vrot.slane %v139_v13, %v4075_v34  ;;  %v4340_v61 = vrot.slane %v122_v15, %v4075_v34  ;;  %v5579_v20 = vld [vmem:[#allocation48_spill] sm:$0xff] }
 0x17e   :  { %3506 = vtanh.f32 %v947_v31  ;;  %v5578_v31 = vld [vmem:[#allocation47_spill] sm:$0xff] }
 0x17f   :  { %3508 = vpow2.f32 %v3050_v38  ;;  %v626_v51 = vadd.f32 %v619_v45, %v4340_v61  ;;  %v5576_v45 = vld [vmem:[#allocation45_spill] sm:$0xff] }
 0x189   :  { %v3505_v9 = vpop.eup %3504 }
 0x18a   :  { %v873_v3 = vadd.f32 1.0, %v3505_v9  ;;  %v5580_v9 = vld [vmem:[#allocation49_spill] sm:$0xff] }
 0x18b   :  { %v3507_v39 = vpop.eup %3506 }
 0x18c   :  { %3510 = vrcp.f32 %v873_v3  ;;  %v950_v42 = vmul.f32 %v3507_v39, %v949_v24  ;;  %v3509_v40 = vpop.eup %3508  ;;  %v5581_v24 = vld [vmem:[#allocation50_spill] sm:$0xff]  ;;  %v5582_v39 = vld [vmem:[#allocation51_spill] sm:$0xff] }
 0x18d   :  { %v880_v59 = vadd.f32 1.0, %v3509_v40 }
 0x18e   :  { %v4326_v49 = vadd.f32 %v951_v27, %v950_v42  ;;  %v5583_v42 = vld [vmem:[#allocation52_spill] sm:$0xff] }
 0x18f   :  { %3512 = vrcp.f32 %v880_v59  ;;  %v5585_v59 = vld [vmem:[#allocation54_spill] sm:$0xff] }
 0x190   :  { %v953_v5 = vpack.c.bf16 %v4326_v49, %v4326_v49 }
 0x192   :  { %987 = vmatmul.mubr.bf16.vlgmr.msra.gmra.mxu1 %v953_v5  ;;  %1028 = vmatmul.mubr.bf16.vlgmr.msra.gmra.mxu0 %v953_v5 }
 0x193   :  { %1037 = vmatpush1.bf16.msra.mxu1 %v4127_v62  ;;  %1082 = vmatpush1.bf16.msra.mxu0 %v4129_v63 }
 0x194   :  { %1038 = vmatprep.subr.bf16.mxu1 %v4135_v57  ;;  %1083 = vmatprep.subr.bf16.mxu0 %v4137_v17 }
 0x195   :  { %v863_v38 = vpop.f32.mrf.mxu0  ;;  %1068 = vmatprep.mubr.bf16.mxu1 %v5565_v1  ;;  %1113 = vmatprep.mubr.bf16.mxu0 %v5565_v1 }
 0x196   :  { %v864_v13 = vadd.f32 %v863_v38, %v4331_v41  ;;  %v5584_v38 = vld [vmem:[#allocation53_spill] sm:$0xff] }
 0x197   :  { %v3187_v7 = vpop.f32.mrf.mxu0  ;;  %1039 = vmatpush1.bf16.msra.mxu1 %v4143_v21  ;;  %1084 = vmatpush1.bf16.msra.mxu0 %v4145_v22 }
 0x198   :  { %1040 = vmatprep.subr.bf16.mxu1 %v4149_v25  ;;  %1085 = vmatprep.subr.bf16.mxu0 %v4151_v28 }
 0x199   :  { %v3511_v48 = vpop.eup %3510  ;;  %v866_v30 = vpop.f32.mrf.mxu0 }
 0x19a   :  { %v883_v55 = vmul.f32 %v3511_v48, %v864_v13  ;;  %v5586_v13 = vld [vmem:[#allocation55_spill] sm:$0xff] }
 0x19b   :  { %v3188_v34 = vpop.f32.mrf.mxu0  ;;  %1041 = vmatpush1.bf16.msra.mxu1 %v4157_v37  ;;  %1086 = vmatpush1.bf16.msra.mxu0 %v4159_v46 }
 0x19c   :  { %v884_v15 = vadd.f32 %v883_v55, %v626_v51  ;;  %1042 = vmatprep.subr.bf16.mxu1 %v4163_v47  ;;  %1087 = vmatprep.subr.bf16.mxu0 %v4165_v52  ;;  %v3513_v3 = vpop.eup %3512  ;;  %v5587_v51 = vld [vmem:[#allocation56_spill] sm:$0xff]  ;;  %v5588_v34 = vld [vmem:[#allocation57_spill] sm:$0xff] }
 0x19d   :  { %v886_v27 = vsub.f32 1.0, %v3513_v3  ;;  %v888_v48 = vmul.f32 %v3513_v3, %v4221_v36  ;;  %v5589_v36 = vld [vmem:[#allocation58_spill] sm:$0xff] }
 0x19e   :  { %3514 = vtanh.f32 %v884_v15  ;;  %v5604_v15 = vld [vmem:[#allocation25_spill] sm:$0xff]  ;;  %v5605_v3 = vld [vmem:[#allocation26_spill] sm:$0xff] }
 0x19f   :  { %1043 = vmatpush1.bf16.msra.mxu1 %v4169_v53  ;;  %1088 = vmatpush1.bf16.msra.mxu0 %v5574_v18 }
 0x1a0   :  { %1044 = vmatprep.subr.bf16.mxu1 %v5575_v11  ;;  %1089 = vmatprep.subr.bf16.mxu0 %v5576_v45 }
 0x1a3   :  { %1045 = vmatpush1.bf16.msra.mxu1 %v5577_v32  ;;  %1090 = vmatpush1.bf16.msra.mxu0 %v5578_v31 }
 0x1a4   :  { %1046 = vmatprep.subr.bf16.mxu1 %v5579_v20  ;;  %1091 = vmatprep.subr.bf16.mxu0 %v5580_v9 }
 0x1a7   :  { %1047 = vmatpush1.bf16.msra.mxu1 %v5581_v24  ;;  %1092 = vmatpush1.bf16.msra.mxu0 %v5582_v39 }
 0x1a8   :  { %1048 = vmatprep.subr.bf16.mxu1 %v4199_v54  ;;  %1093 = vmatprep.subr.bf16.mxu0 %v5583_v42 }
 0x1ab   :  { %v3515_v40 = vpop.eup %3514  ;;  %1049 = vmatpush1.bf16.msra.mxu1 %v5584_v38  ;;  %1094 = vmatpush1.bf16.msra.mxu0 %v5585_v59 }
 0x1ac   :  { %1050 = vmatprep.subr.bf16.mxu1 %v5586_v13  ;;  %1095 = vmatprep.subr.bf16.mxu0 %v4213_v60  ;;  %v887_v7 = vmul.f32 %v3515_v40, %v886_v27  ;;  %v5606_v27 = vld [vmem:[#allocation27_spill] sm:$0xff]  ;;  %v5607_v40 = vld [vmem:[#allocation28_spill] sm:$0xff] }
 0x1ae   :  { %v4369_v30 = vadd.f32 %v888_v48, %v887_v7  ;;  %v5608_v7 = vld [vmem:[#allocation29_spill] sm:$0xff]  ;;  %v5609_v48 = vld [vmem:[#allocation30_spill] sm:$0xff] }
 0x1af   :  { %1051 = vmatpush1.bf16.msra.mxu1 %v4217_v0  ;;  %1096 = vmatpush1.bf16.msra.mxu0 %v5587_v51 }
 0x1b0   :  { %v1080_v55 = vpack.c.bf16 %v4369_v30, %v4369_v30  ;;  %3189 = vmatprep.subr.bf16.mxu1 %v5563_v58  ;;  %1228 = vmatprep.subr.bf16.mxu0 %v4001_v2  ;;  %v5590_v2 = vld [vmem:[#allocation59_spill] sm:$0xff] }
 0x1b2   :  { %1069 = vmatmul.mubr.bf16.vlgmr.msra.gmra.mxu1 %v953_v5  ;;  %1114 = vmatmul.mubr.bf16.vlgmr.msra.gmra.mxu0 %v1080_v55  ;;  %v5603_v5 = vld [vmem:[#allocation24_spill] sm:$0xff] }
 0x1b3   :  { %3190 = vmatpush3.bf16.msra.mxu1 %v5588_v34  ;;  %3205 = vmatprep.mubr.msk.bf16.mxu1 %vm3934_vm0, %v5563_v58 }
 0x1b4   :  { %3191 = vmatprep.subr.bf16.mxu1 %v5563_v58  ;;  %1229 = vmatpush1.bf16.msra.mxu0 %v4006_v4  ;;  %v5591_v4 = vld [vmem:[#allocation60_spill] sm:$0xff] }
 0x1b5   :  { %1230 = vmatprep.subr.bf16.mxu0 %v4011_v6  ;;  %1260 = vmatprep.mubr.bf16.mxu0 %v5565_v1  ;;  %v5592_v6 = vld [vmem:[#allocation61_spill] sm:$0xff] }
 0x1b7   :  { %3192 = vmatpush3.bf16.msra.mxu1 %v5589_v36 }
 0x1b8   :  { %3193 = vmatprep.subr.bf16.mxu1 %v5563_v58  ;;  %1231 = vmatpush1.bf16.msra.mxu0 %v4017_v8  ;;  %v5593_v8 = vld [vmem:[#allocation33_spill] sm:$0xff] }
 0x1b9   :  { %1232 = vmatprep.subr.bf16.mxu0 %v4023_v10  ;;  %v5594_v10 = vld [vmem:[#allocation35_spill] sm:$0xff] }
 0x1bb   :  { %3194 = vmatpush3.bf16.msra.mxu1 %v5590_v2 }
 0x1bc   :  { %3195 = vmatprep.subr.bf16.mxu1 %v5563_v58  ;;  %1233 = vmatpush1.bf16.msra.mxu0 %v4027_v12  ;;  %v5595_v12 = vld [vmem:[#allocation64_spill] sm:$0xff] }
 0x1bd   :  { %1234 = vmatprep.subr.bf16.mxu0 %v4033_v14  ;;  %v5596_v14 = vld [vmem:[#allocation19_spill] sm:$0xff] }
 0x1bf   :  { %3196 = vmatpush3.bf16.msra.mxu1 %v5591_v4 }
 0x1c0   :  { %3197 = vmatprep.subr.bf16.mxu1 %v5563_v58  ;;  %1235 = vmatpush1.bf16.msra.mxu0 %v4039_v16  ;;  %v5597_v16 = vld [vmem:[#allocation39_spill] sm:$0xff] }
 0x1c1   :  { %1236 = vmatprep.subr.bf16.mxu0 %v4045_v19  ;;  %v5598_v19 = vld [vmem:[#allocation41_spill] sm:$0xff] }
 0x1c3   :  { %3198 = vmatpush3.bf16.msra.mxu1 %v5592_v6 }
 0x1c4   :  { %3199 = vmatprep.subr.bf16.mxu1 %v5563_v58  ;;  %1237 = vmatpush1.bf16.msra.mxu0 %v4051_v23  ;;  %v5599_v23 = vld [vmem:[#allocation20_spill] sm:$0xff] }
 0x1c5   :  { %1238 = vmatprep.subr.bf16.mxu0 %v4057_v26  ;;  %v5600_v26 = vld [vmem:[#allocation21_spill] sm:$0xff] }
 0x1c7   :  { %3200 = vmatpush3.bf16.msra.mxu1 %v4262_v50 }
 0x1c8   :  { %3201 = vmatprep.subr.bf16.mxu1 %v5563_v58  ;;  %1239 = vmatpush1.bf16.msra.mxu0 %v4063_v29  ;;  %v5601_v29 = vld [vmem:[#allocation22_spill] sm:$0xff] }
 0x1c9   :  { %1240 = vmatprep.subr.bf16.mxu0 %v4073_v33  ;;  %v5602_v33 = vld [vmem:[#allocation23_spill] sm:$0xff] }
 0x1cb   :  { %3202 = vmatpush3.bf16.msra.mxu1 %v4268_v56 }
 0x1cc   :  { %3203 = vmatprep.subr.bf16.mxu1 %v5563_v58  ;;  %1241 = vmatpush1.bf16.msra.mxu0 %v5593_v8  ;;  %v5611_v8 = vld [vmem:[#allocation34_spill] sm:$0xff] }
 0x1cd   :  { %1242 = vmatprep.subr.bf16.mxu0 %v5594_v10  ;;  %v5612_v10 = vld [vmem:[#allocation38_spill] sm:$0xff] }
 0x1cf   :  { %3204 = vmatpush3.bf16.msra.mxu1 %v5595_v12 }
 0x1d0   :  { %1269 = vmatprep.subr.bf16.mxu1 %v5596_v14  ;;  %1243 = vmatpush1.bf16.msra.mxu0 %v5597_v16  ;;  %v5613_v14 = vld [vmem:[#allocation40_spill] sm:$0xff]  ;;  %v5614_v16 = vld [vmem:[#allocation42_spill] sm:$0xff] }
 0x1d1   :  { %1310 = vmatprep.subr.bf16.mxu0 %v5598_v19  ;;  %v1194_v19 = vld [vmem:[#allocation5 + $0x6] sm:$0x7] }
 0x1d2   :  { %3206 = vmatmul.mubr.bf16.vlgmr.msra.gmra.mxu1 %v1080_v55  ;;  %v5610_v55 = vld [vmem:[#allocation31_spill] sm:$0xff] }
 0x1d3   :  { %1270 = vmatpush1.bf16.msra.mxu1 %v5599_v23  ;;  %1301 = vmatprep.mubr.bf16.mxu1 %v5565_v1  ;;  %v1198_v23 = vunpack.c.l.bf16 %v1194_v19 }
 0x1d4   :  { %1271 = vmatprep.subr.bf16.mxu1 %v5600_v26 }
 0x1d7   :  { %1272 = vmatpush1.bf16.msra.mxu1 %v5601_v29 }
 0x1d8   :  { %1273 = vmatprep.subr.bf16.mxu1 %v5602_v33  ;;  %v5615_v33 = vld [vmem:[#allocation36_spill] sm:$0xff] }
 0x1db   :  { %1274 = vmatpush1.bf16.msra.mxu1 %v5603_v5 }
 0x1dc   :  { %1275 = vmatprep.subr.bf16.mxu1 %v5604_v15  ;;  %v1207_v15 = vrot.slane %v1194_v19, 1 }
 0x1df   :  { %1276 = vmatpush1.bf16.msra.mxu1 %v5605_v3 }
 0x1e0   :  { %1277 = vmatprep.subr.bf16.mxu1 %v5606_v27 }
 0x1e3   :  { %1278 = vmatpush1.bf16.msra.mxu1 %v5607_v40 }
 0x1e4   :  { %1279 = vmatprep.subr.bf16.mxu1 %v5608_v7 }
 0x1e7   :  { %1280 = vmatpush1.bf16.msra.mxu1 %v5609_v48 }
 0x1e8   :  { %1281 = vmatprep.subr.bf16.mxu1 %v5610_v55 }
 0x1eb   :  { %1282 = vmatpush1.bf16.msra.mxu1 %v5611_v8  ;;  %v5616_v8 = vld [vmem:[#allocation37_spill] sm:$0xff] }
 0x1ec   :  { %1283 = vmatprep.subr.bf16.mxu1 %v5612_v10  ;;  %v1209_v10 = vunpack.c.l.bf16 %v1207_v15 }
 0x1ef   :  { %1284 = vmatpush1.bf16.msra.mxu1 %v5613_v14 }
 0x1f0   :  { %1355 = vmatprep.subr.bf16.mxu1 %v5614_v16 }
 0x252   :  { %v988_v26 = vpop.f32.mrf.mxu1  ;;  %v1029_v29 = vpop.f32.mrf.mxu0 }
 0x253   :  { %v1195_v5 = vadd.f32 %v988_v26, %v5615_v33  ;;  %v1218_v33 = vrot.slane %v1194_v19, 2 }
 0x254   :  { %v990_v3 = vpop.f32.mrf.mxu1  ;;  %v1031_v27 = vpop.f32.mrf.mxu0 }
 0x255   :  { %v1199_v40 = vadd.f32 %v1198_v23, %v1195_v5  ;;  %v1196_v12 = vadd.f32 %v990_v3, %v5616_v8  ;;  %v5617_v5 = vld [vmem:[#allocation65_spill] sm:$0xff] }
 0x256   :  { %v992_v7 = vpop.f32.mrf.mxu1  ;;  %v1033_v48 = vpop.f32.mrf.mxu0 }
 0x257   :  { %v3055_v55 = vmul.f32 -1.442695, %v1199_v40  ;;  %v1210_v16 = vadd.f32 %v1209_v10, %v1196_v12  ;;  %v1077_v7 = vadd.f32 %v1031_v27, %v5617_v5  ;;  %v5618_v40 = vld [vmem:[#allocation66_spill] sm:$0xff] }
 0x258   :  { %v993_v56 = vpop.f32.mrf.mxu1  ;;  %v1034_v14 = vpop.f32.mrf.mxu0 }
 0x259   :  { %3516 = vpow2.f32 %v3055_v55  ;;  %v3056_v50 = vmul.f32 -1.442695, %v1210_v16  ;;  %v1197_v56 = vadd.f32 %v1029_v29, %v4098_v43  ;;  %v1220_v55 = vunpack.c.l.bf16 %v1218_v33 }
 0x25b   :  { %3518 = vpow2.f32 %v3056_v50 }
 0x266   :  { %v3517_v6 = vpop.eup %3516 }
 0x267   :  { %v1203_v4 = vadd.f32 1.0, %v3517_v6 }
 0x268   :  { %v3519_v26 = vpop.eup %3518 }
 0x269   :  { %3520 = vrcp.f32 %v1203_v4  ;;  %v1214_v23 = vadd.f32 1.0, %v3519_v26 }
 0x26b   :  { %3522 = vrcp.f32 %v1214_v23 }
 0x272   :  { %v1070_v2 = vpop.f32.mrf.mxu1  ;;  %v1115_v36 = vpop.f32.mrf.mxu0 }
 0x273   :  { %v1116_v48 = vadd.f32 %v1115_v36, %v5618_v40  ;;  %v1078_v27 = vadd.f32 %v1070_v2, %v4316_v35 }
 0x274   :  { %v1072_v3 = vpop.f32.mrf.mxu1  ;;  %v1117_v15 = vpop.f32.mrf.mxu0 }
 0x275   :  { %v1162_v12 = vadd.f32 %v1116_v48, %v1077_v7  ;;  %v1118_v19 = vadd.f32 %v1117_v15, %v4320_v44 }
 0x276   :  { %v3521_v10 = vpop.eup %3520  ;;  %v1074_v50 = vpop.f32.mrf.mxu1 }
 0x277   :  { %v1119_v14 = vpop.f32.mrf.mxu0  ;;  %v1217_v6 = vmul.f32 %v3521_v10, %v1197_v56  ;;  %v3053_v4 = vmul.f32 -1.442695, %v1162_v12  ;;  %v1169_v36 = vadd.f32 %v1118_v19, %v1078_v27  ;;  %v4550_v19 = vld [vmem:[#allocation10 + $0x164] ss:$24 sps:$4 sm:$0xff]   ;;  %v4560_v27 = vld [vmem:[#allocation10 + $0x128] ss:$24 sps:$4 sm:$0xff]  }
 0x278   :  { %v1075_v16 = vpop.f32.mrf.mxu1  ;;  %v3523_v29 = vpop.eup %3522  ;;  %v5630_v14 = vld [vmem:[#allocation64_spill] sm:$0xff]  ;;  %5633 = vst [vmem:[#allocation50_spill] sm:$0xff] %v4550_v19  ;;  %5636 = vst [vmem:[#allocation53_spill] sm:$0xff] %v4560_v27 }
 0x279   :  { %v1120_v26 = vpop.f32.mrf.mxu0  ;;  %v1221_v8 = vadd.f32 %v1220_v55, %v1217_v6  ;;  %3524 = vpow2.f32 %v3053_v4  ;;  %v3054_v40 = vmul.f32 -1.442695, %v1169_v36  ;;  %v1223_v48 = vsub.f32 1.0, %v3523_v29  ;;  %v4544_v6 = vld [vmem:[#allocation10 + $0x15c] ss:$24 sps:$4 sm:$0xff]  }
 0x27a   :  { %v1225_v56 = vmul.f32 %v3523_v29, %v4326_v49  ;;  %5631 = vst [vmem:[#allocation48_spill] sm:$0xff] %v4544_v6  ;;  %v4547_v4 = vld [vmem:[#allocation10] ss:$24 sps:$4 sm:$0xff]   ;;  %v4557_v26 = vld [vmem:[#allocation10 + $0x12c] ss:$24 sps:$4 sm:$0xff]  }
 0x27b   :  { %3526 = vtanh.f32 %v1221_v8  ;;  %5632 = vst [vmem:[#allocation49_spill] sm:$0xff] %v4547_v4  ;;  %v4553_v16 = vld [vmem:[#allocation10 + $0x158] ss:$24 sps:$4 sm:$0xff]   ;;  %5635 = vst [vmem:[#allocation52_spill] sm:$0xff] %v4557_v26  ;;  %v4563_v36 = vld [vmem:[#allocation10 + $0xfc] ss:$24 sps:$4 sm:$0xff]  }
 0x27c   :  { %3528 = vpow2.f32 %v3054_v40  ;;  %5634 = vst [vmem:[#allocation51_spill] sm:$0xff] %v4553_v16  ;;  %5637 = vst [vmem:[#allocation54_spill] sm:$0xff] %v4563_v36  ;;  %v4566_v29 = vld [vmem:[#allocation10 + $0xf8] ss:$24 sps:$4 sm:$0xff]  }
 0x27d   :  { %5638 = vst [vmem:[#allocation55_spill] sm:$0xff] %v4566_v29 }
 0x286   :  { %v3525_v33 = vpop.eup %3524 }
 0x287   :  { %v1166_v7 = vadd.f32 1.0, %v3525_v33  ;;  %v4569_v33 = vld [vmem:[#allocation10 + $0xcc] ss:$24 sps:$4 sm:$0xff]  }
 0x288   :  { %v3527_v50 = vpop.eup %3526  ;;  %5639 = vst [vmem:[#allocation56_spill] sm:$0xff] %v4569_v33 }
 0x289   :  { %3530 = vrcp.f32 %v1166_v7  ;;  %v1224_v23 = vmul.f32 %v3527_v50, %v1223_v48  ;;  %v3529_v2 = vpop.eup %3528  ;;  %v4572_v7 = vld [vmem:[#allocation10 + $0xc8] ss:$24 sps:$4 sm:$0xff]   ;;  %v4575_v48 = vld [vmem:[#allocation10 + $0x9c] ss:$24 sps:$4 sm:$0xff]   ;;  %v4578_v50 = vld [vmem:[#allocation10 + $0x98] ss:$24 sps:$4 sm:$0xff]  }
 0x28a   :  { %v1173_v49 = vadd.f32 1.0, %v3529_v2  ;;  %5640 = vst [vmem:[#allocation57_spill] sm:$0xff] %v4572_v7  ;;  %5641 = vst [vmem:[#allocation33_spill] sm:$0xff] %v4575_v48  ;;  %v4590_v2 = vld [vmem:[#allocation10 + $0x38] ss:$24 sps:$4 sm:$0xff]  }
 0x28b   :  { %v4437_v15 = vadd.f32 %v1225_v56, %v1224_v23  ;;  %5642 = vst [vmem:[#allocation35_spill] sm:$0xff] %v4578_v50  ;;  %v4581_v23 = vld [vmem:[#allocation10 + $0x6c] ss:$24 sps:$4 sm:$0xff]   ;;  %v4584_v56 = vld [vmem:[#allocation10 + $0x68] ss:$24 sps:$4 sm:$0xff]   ;;  %5646 = vst [vmem:[#allocation20_spill] sm:$0xff] %v4590_v2 }
 0x28c   :  { %3532 = vrcp.f32 %v1173_v49  ;;  %5643 = vst [vmem:[#allocation19_spill] sm:$0xff] %v4581_v23  ;;  %5644 = vst [vmem:[#allocation39_spill] sm:$0xff] %v4584_v56  ;;  %v4596_v49 = vld [vmem:[#allocation10 + $0x8] ss:$24 sps:$4 sm:$0xff]  }
 0x28d   :  { %v1227_v55 = vpack.c.bf16 %v4437_v15, %v4437_v15  ;;  %5648 = vst [vmem:[#allocation22_spill] sm:$0xff] %v4596_v49 }
 0x28f   :  { %1261 = vmatmul.mubr.bf16.vlgmr.msra.gmra.mxu0 %v1227_v55  ;;  %1302 = vmatmul.mubr.bf16.vlgmr.msra.gmra.mxu1 %v1227_v55 }
 0x290   :  { %1311 = vmatpush1.bf16.msra.mxu0 %v4127_v62  ;;  %1356 = vmatpush1.bf16.msra.mxu1 %v4129_v63 }
 0x291   :  { %1312 = vmatprep.subr.bf16.mxu0 %v4135_v57  ;;  %1357 = vmatprep.subr.bf16.mxu1 %v4137_v17  ;;  %v1079_v57 = vadd.f32 %v1072_v3, %v4340_v61  ;;  %v4540_v3 = vld [vmem:[#allocation10 + $0x4] ss:$24 sps:$4 sm:$0xff]  }
 0x292   :  { %v1156_v8 = vpop.f32.mrf.mxu1  ;;  %1342 = vmatprep.mubr.bf16.mxu0 %v5565_v1  ;;  %1387 = vmatprep.mubr.bf16.mxu1 %v5565_v1  ;;  %5629 = vst [vmem:[#allocation47_spill] sm:$0xff] %v4540_v3 }
 0x293   :  { %v1157_v12 = vadd.f32 %v1156_v8, %v4331_v41  ;;  %v4593_v8 = vld [vmem:[#allocation10 + $0xc] ss:$24 sps:$4 sm:$0xff]  }
 0x294   :  { %v3207_v40 = vpop.f32.mrf.mxu1  ;;  %1313 = vmatpush1.bf16.msra.mxu0 %v4143_v21  ;;  %1358 = vmatpush1.bf16.msra.mxu1 %v4145_v22  ;;  %5647 = vst [vmem:[#allocation21_spill] sm:$0xff] %v4593_v8 }
 0x295   :  { %1314 = vmatprep.subr.bf16.mxu0 %v4149_v25  ;;  %1359 = vmatprep.subr.bf16.mxu1 %v4151_v28  ;;  %v4599_v40 = vld [vmem:[#allocation11 + $0xac] ss:$12 sps:$4 sm:$0xff]  }
 0x296   :  { %v3531_v62 = vpop.eup %3530  ;;  %v1159_v63 = vpop.f32.mrf.mxu1  ;;  %5649 = vst [vmem:[#allocation23_spill] sm:$0xff] %v4599_v40 }
 0x297   :  { %v1176_v17 = vmul.f32 %v3531_v62, %v1157_v12  ;;  %v1468_v12 = vld [vmem:[#allocation5 + $0x9] sm:$0x7] }
 0x298   :  { %v3208_v10 = vpop.f32.mrf.mxu1  ;;  %1315 = vmatpush1.bf16.msra.mxu0 %v4157_v37  ;;  %1360 = vmatpush1.bf16.msra.mxu1 %v4159_v46  ;;  %v1472_v62 = vunpack.c.l.bf16 %v1468_v12 }
 0x299   :  { %v1177_v21 = vadd.f32 %v1176_v17, %v1079_v57  ;;  %1316 = vmatprep.subr.bf16.mxu0 %v4163_v47  ;;  %1361 = vmatprep.subr.bf16.mxu1 %v4165_v52  ;;  %v3533_v22 = vpop.eup %3532  ;;  %v5650_v17 = vld [vmem:[#allocation36_spill] sm:$0xff] }
 0x29a   :  { %v1179_v25 = vsub.f32 1.0, %v3533_v22  ;;  %v1181_v46 = vmul.f32 %v3533_v22, %v4369_v30  ;;  %v4532_v30 = vld [vmem:[#allocation10 + $0x34] ss:$24 sps:$4 sm:$0xff]  }
 0x29b   :  { %3534 = vtanh.f32 %v1177_v21  ;;  %5626 = vst [vmem:[#allocation45_spill] sm:$0xff] %v4532_v30  ;;  %v1481_v21 = vrot.slane %v1468_v12, 1 }
 0x29c   :  { %1317 = vmatpush1.bf16.msra.mxu0 %v4169_v53  ;;  %1362 = vmatpush1.bf16.msra.mxu1 %v5574_v18  ;;  %v4481_v53 = vld [vmem:[#allocation10 + $0x154] ss:$24 sps:$4 sm:$0xff]   ;;  %v4497_v18 = vld [vmem:[#allocation10 + $0x120] ss:$24 sps:$4 sm:$0xff]  }
 0x29d   :  { %1318 = vmatprep.subr.bf16.mxu0 %v5575_v11  ;;  %1363 = vmatprep.subr.bf16.mxu1 %v5576_v45  ;;  %v4500_v11 = vld [vmem:[#allocation10 + $0xf4] ss:$24 sps:$4 sm:$0xff]   ;;  %v5620_v45 = vld [vmem:[#allocation59_spill] sm:$0xff] }
 0x2a0   :  { %1319 = vmatpush1.bf16.msra.mxu0 %v5577_v32  ;;  %1364 = vmatpush1.bf16.msra.mxu1 %v5578_v31  ;;  %v4505_v32 = vld [vmem:[#allocation10 + $0xf0] ss:$24 sps:$4 sm:$0xff]   ;;  %v4508_v31 = vld [vmem:[#allocation10 + $0xc4] ss:$24 sps:$4 sm:$0xff]  }
 0x2a1   :  { %1320 = vmatprep.subr.bf16.mxu0 %v5579_v20  ;;  %1365 = vmatprep.subr.bf16.mxu1 %v5580_v9  ;;  %v5621_v20 = vld [vmem:[#allocation60_spill] sm:$0xff]  ;;  %v4513_v9 = vld [vmem:[#allocation10 + $0xc0] ss:$24 sps:$4 sm:$0xff]  }
 0x2a4   :  { %1321 = vmatpush1.bf16.msra.mxu0 %v5581_v24  ;;  %1366 = vmatpush1.bf16.msra.mxu1 %v5582_v39  ;;  %v4516_v24 = vld [vmem:[#allocation10 + $0x94] ss:$24 sps:$4 sm:$0xff]  }
 0x2a5   :  { %1322 = vmatprep.subr.bf16.mxu0 %v4199_v54  ;;  %1367 = vmatprep.subr.bf16.mxu1 %v5583_v42  ;;  %v4491_v54 = vld [vmem:[#allocation10 + $0x124] ss:$24 sps:$4 sm:$0xff]   ;;  %v5622_v39 = vld [vmem:[#allocation61_spill] sm:$0xff] }
 0x2a6   :  { %v4521_v42 = vld [vmem:[#allocation10 + $0x90] ss:$24 sps:$4 sm:$0xff]  }
 0x2a8   :  { %v3535_v28 = vpop.eup %3534  ;;  %1323 = vmatpush1.bf16.msra.mxu0 %v5584_v38  ;;  %1368 = vmatpush1.bf16.msra.mxu1 %v5585_v59  ;;  %v4524_v38 = vld [vmem:[#allocation10 + $0x64] ss:$24 sps:$4 sm:$0xff]  }
 0x2a9   :  { %1324 = vmatprep.subr.bf16.mxu0 %v5586_v13  ;;  %1369 = vmatprep.subr.bf16.mxu1 %v4213_v60  ;;  %v1180_v37 = vmul.f32 %v3535_v28, %v1179_v25  ;;  %v5619_v60 = vld [vmem:[#allocation58_spill] sm:$0xff]  ;;  %5623 = vst [vmem:[#allocation43_spill] sm:$0xff] %v4524_v38 }
 0x2aa   :  { %v5624_v59 = vld [vmem:[#allocation62_spill] sm:$0xff] }
 0x2ab   :  { %v4474_v47 = vadd.f32 %v1181_v46, %v1180_v37  ;;  %v4529_v13 = vld [vmem:[#allocation10 + $0x60] ss:$24 sps:$4 sm:$0xff]  }
 0x2ac   :  { %1325 = vmatpush1.bf16.msra.mxu0 %v4217_v0  ;;  %1370 = vmatpush1.bf16.msra.mxu1 %v5587_v51  ;;  %v4488_v0 = vld [vmem:[#allocation10 + $0x150] ss:$24 sps:$4 sm:$0xff]   ;;  %5625 = vst [vmem:[#allocation44_spill] sm:$0xff] %v4529_v13 }
 0x2ad   :  { %v1354_v52 = vpack.c.bf16 %v4474_v47, %v4474_v47  ;;  %3209 = vmatprep.subr.bf16.mxu0 %v5563_v58  ;;  %1502 = vmatprep.subr.bf16.mxu1 %v4481_v53  ;;  %v5627_v51 = vld [vmem:[#allocation63_spill] sm:$0xff] }
 0x2af   :  { %1343 = vmatmul.mubr.bf16.vlgmr.msra.gmra.mxu0 %v1227_v55  ;;  %1388 = vmatmul.mubr.bf16.vlgmr.msra.gmra.mxu1 %v1354_v52  ;;  %v4587_v55 = vld [vmem:[#allocation10 + $0x3c] ss:$24 sps:$4 sm:$0xff]  }
 0x2b0   :  { %3210 = vmatpush3.bf16.msra.mxu0 %v5588_v34  ;;  %3225 = vmatprep.mubr.msk.bf16.mxu0 %vm3934_vm0, %v5563_v58  ;;  %v4537_v34 = vld [vmem:[#allocation10 + $0x30] ss:$24 sps:$4 sm:$0xff]   ;;  %5645 = vst [vmem:[#allocation41_spill] sm:$0xff] %v4587_v55 }
 0x2b1   :  { %3211 = vmatprep.subr.bf16.mxu0 %v5563_v58  ;;  %1503 = vmatpush1.bf16.msra.mxu1 %v4488_v0  ;;  %5628 = vst [vmem:[#allocation46_spill] sm:$0xff] %v4537_v34 }
 0x2b2   :  { %1504 = vmatprep.subr.bf16.mxu1 %v4491_v54  ;;  %1534 = vmatprep.mubr.bf16.mxu1 %v5565_v1 }
 0x2b4   :  { %3212 = vmatpush3.bf16.msra.mxu0 %v5619_v60  ;;  %v5651_v60 = vld [vmem:[#allocation37_spill] sm:$0xff] }
 0x2b5   :  { %3213 = vmatprep.subr.bf16.mxu0 %v5563_v58  ;;  %1505 = vmatpush1.bf16.msra.mxu1 %v4497_v18 }
 0x2b6   :  { %1506 = vmatprep.subr.bf16.mxu1 %v4500_v11 }
 0x2b8   :  { %3214 = vmatpush3.bf16.msra.mxu0 %v5620_v45 }
 0x2b9   :  { %3215 = vmatprep.subr.bf16.mxu0 %v5563_v58  ;;  %1507 = vmatpush1.bf16.msra.mxu1 %v4505_v32 }
 0x2ba   :  { %1508 = vmatprep.subr.bf16.mxu1 %v4508_v31 }
 0x2bc   :  { %3216 = vmatpush3.bf16.msra.mxu0 %v5621_v20  ;;  %v1483_v20 = vunpack.c.l.bf16 %v1481_v21 }
 0x2bd   :  { %3217 = vmatprep.subr.bf16.mxu0 %v5563_v58  ;;  %1509 = vmatpush1.bf16.msra.mxu1 %v4513_v9 }
 0x2be   :  { %1510 = vmatprep.subr.bf16.mxu1 %v4516_v24 }
 0x2c0   :  { %3218 = vmatpush3.bf16.msra.mxu0 %v5622_v39 }
 0x2c1   :  { %3219 = vmatprep.subr.bf16.mxu0 %v5563_v58  ;;  %1511 = vmatpush1.bf16.msra.mxu1 %v4521_v42 }
 0x2c2   :  { %1512 = vmatprep.subr.bf16.mxu1 %v4524_v38 }
 0x2c4   :  { %3220 = vmatpush3.bf16.msra.mxu0 %v5624_v59 }
 0x2c5   :  { %3221 = vmatprep.subr.bf16.mxu0 %v5563_v58  ;;  %1513 = vmatpush1.bf16.msra.mxu1 %v4529_v13 }
 0x2c6   :  { %1514 = vmatprep.subr.bf16.mxu1 %v4532_v30 }
 0x2c8   :  { %3222 = vmatpush3.bf16.msra.mxu0 %v5627_v51 }
 0x2c9   :  { %3223 = vmatprep.subr.bf16.mxu0 %v5563_v58  ;;  %1515 = vmatpush1.bf16.msra.mxu1 %v4537_v34 }
 0x2ca   :  { %1516 = vmatprep.subr.bf16.mxu1 %v4540_v3 }
 0x2cc   :  { %3224 = vmatpush3.bf16.msra.mxu0 %v5630_v14 }
 0x2cd   :  { %1543 = vmatprep.subr.bf16.mxu0 %v4544_v6  ;;  %1517 = vmatpush1.bf16.msra.mxu1 %v4547_v4 }
 0x2ce   :  { %1584 = vmatprep.subr.bf16.mxu1 %v4550_v19 }
 0x2cf   :  { %3226 = vmatmul.mubr.bf16.vlgmr.msra.gmra.mxu0 %v1354_v52 }
 0x2d0   :  { %1544 = vmatpush1.bf16.msra.mxu0 %v4553_v16  ;;  %1575 = vmatprep.mubr.bf16.mxu0 %v5565_v1 }
 0x2d1   :  { %1545 = vmatprep.subr.bf16.mxu0 %v4557_v26 }
 0x2d4   :  { %1546 = vmatpush1.bf16.msra.mxu0 %v4560_v27 }
 0x2d5   :  { %1547 = vmatprep.subr.bf16.mxu0 %v4563_v36 }
 0x2d8   :  { %1548 = vmatpush1.bf16.msra.mxu0 %v4566_v29 }
 0x2d9   :  { %1549 = vmatprep.subr.bf16.mxu0 %v4569_v33 }
 0x2dc   :  { %1550 = vmatpush1.bf16.msra.mxu0 %v4572_v7 }
 0x2dd   :  { %1551 = vmatprep.subr.bf16.mxu0 %v4575_v48 }
 0x2e0   :  { %1552 = vmatpush1.bf16.msra.mxu0 %v4578_v50 }
 0x2e1   :  { %1553 = vmatprep.subr.bf16.mxu0 %v4581_v23 }
 0x2e4   :  { %1554 = vmatpush1.bf16.msra.mxu0 %v4584_v56 }
 0x2e5   :  { %1555 = vmatprep.subr.bf16.mxu0 %v4587_v55 }
 0x2e8   :  { %1556 = vmatpush1.bf16.msra.mxu0 %v4590_v2 }
 0x2e9   :  { %1557 = vmatprep.subr.bf16.mxu0 %v4593_v8 }
 0x2ec   :  { %1558 = vmatpush1.bf16.msra.mxu0 %v4596_v49 }
 0x2ed   :  { %1629 = vmatprep.subr.bf16.mxu0 %v4599_v40 }
 0x34f   :  { %v1262_v63 = vpop.f32.mrf.mxu0  ;;  %v1303_v57 = vpop.f32.mrf.mxu1 }
 0x350   :  { %v1469_v10 = vadd.f32 %v1262_v63, %v5650_v17  ;;  %v1492_v17 = vrot.slane %v1468_v12, 2 }
 0x351   :  { %v1264_v22 = vpop.f32.mrf.mxu0  ;;  %v1305_v25 = vpop.f32.mrf.mxu1 }
 0x352   :  { %v1473_v28 = vadd.f32 %v1472_v62, %v1469_v10  ;;  %v1470_v45 = vadd.f32 %v1264_v22, %v5651_v60  ;;  %v1351_v10 = vadd.f32 %v1305_v25, %v5617_v5 }
 0x353   :  { %v1266_v37 = vpop.f32.mrf.mxu0  ;;  %v1307_v46 = vpop.f32.mrf.mxu1 }
 0x354   :  { %v3059_v52 = vmul.f32 -1.442695, %v1473_v28  ;;  %v1484_v51 = vadd.f32 %v1483_v20, %v1470_v45  ;;  %v5652_v28 = vld [vmem:[#allocation66_spill] sm:$0xff]  ;;  %v1471_v46 = vadd.f32 %v1303_v57, %v4098_v43 }
 0x355   :  { %v1267_v39 = vpop.f32.mrf.mxu0  ;;  %v1308_v59 = vpop.f32.mrf.mxu1 }
 0x356   :  { %3536 = vpow2.f32 %v3059_v52  ;;  %v3060_v14 = vmul.f32 -1.442695, %v1484_v51  ;;  %v1494_v52 = vunpack.c.l.bf16 %v1492_v17 }
 0x358   :  { %3538 = vpow2.f32 %v3060_v14 }
 0x363   :  { %v3537_v40 = vpop.eup %3536 }
 0x364   :  { %v1477_v49 = vadd.f32 1.0, %v3537_v40 }
 0x365   :  { %v3539_v63 = vpop.eup %3538 }
 0x366   :  { %3540 = vrcp.f32 %v1477_v49  ;;  %v1488_v62 = vadd.f32 1.0, %v3539_v63 }
 0x368   :  { %3542 = vrcp.f32 %v1488_v62 }
 0x36f   :  { %v1344_v8 = vpop.f32.mrf.mxu0  ;;  %v1389_v2 = vpop.f32.mrf.mxu1 }
 0x370   :  { %v1390_v37 = vadd.f32 %v1389_v2, %v5652_v28  ;;  %v1352_v25 = vadd.f32 %v1344_v8, %v4316_v35 }
 0x371   :  { %v1346_v22 = vpop.f32.mrf.mxu0  ;;  %v1391_v21 = vpop.f32.mrf.mxu1 }
 0x372   :  { %v1436_v45 = vadd.f32 %v1390_v37, %v1351_v10  ;;  %v1392_v12 = vadd.f32 %v1391_v21, %v4320_v44 }
 0x373   :  { %v3541_v20 = vpop.eup %3540  ;;  %v1348_v39 = vpop.f32.mrf.mxu0 }
 0x374   :  { %v1393_v59 = vpop.f32.mrf.mxu1  ;;  %v1491_v40 = vmul.f32 %v3541_v20, %v1471_v46  ;;  %v3057_v49 = vmul.f32 -1.442695, %v1436_v45  ;;  %v1443_v2 = vadd.f32 %v1392_v12, %v1352_v25  ;;  %v4621_v45 = vld [vmem:[#allocation11 + $0xa8] ss:$12 sps:$4 sm:$0xff]  }
 0x375   :  { %v1349_v51 = vpop.f32.mrf.mxu0  ;;  %v3543_v57 = vpop.eup %3542  ;;  %v4627_v20 = vld [vmem:[#allocation11 + $0x94] ss:$12 sps:$4 sm:$0xff]   ;;  %v4632_v12 = vld [vmem:[#allocation10 + $0x130] ss:$24 sps:$4 sm:$0xff]  }
 0x376   :  { %v1394_v14 = vpop.f32.mrf.mxu1  ;;  %v1495_v63 = vadd.f32 %v1494_v52, %v1491_v40  ;;  %3544 = vpow2.f32 %v3057_v49  ;;  %v3058_v28 = vmul.f32 -1.442695, %v1443_v2  ;;  %v1497_v37 = vsub.f32 1.0, %v3543_v57  ;;  %v4635_v51 = vld [vmem:[#allocation11 + $0x90] ss:$12 sps:$4 sm:$0xff]  }
 0x377   :  { %v1499_v46 = vmul.f32 %v3543_v57, %v4437_v15  ;;  %v4624_v15 = vld [vmem:[#allocation10 + $0x134] ss:$24 sps:$4 sm:$0xff]   ;;  %v4642_v25 = vld [vmem:[#allocation11 + $0x7c] ss:$12 sps:$4 sm:$0xff]  }
 0x378   :  { %3546 = vtanh.f32 %v1495_v63  ;;  %v4639_v63 = vld [vmem:[#allocation10 + $0x104] ss:$24 sps:$4 sm:$0xff]  }
 0x379   :  { %3548 = vpow2.f32 %v3058_v28  ;;  %v4618_v28 = vld [vmem:[#allocation10 + $0x160] ss:$24 sps:$4 sm:$0xff]  }
 0x383   :  { %v3545_v17 = vpop.eup %3544 }
 0x384   :  { %v1440_v10 = vadd.f32 1.0, %v3545_v17  ;;  %v1353_v17 = vadd.f32 %v1346_v22, %v4340_v61  ;;  %v4658_v22 = vld [vmem:[#allocation10 + $0xd0] ss:$24 sps:$4 sm:$0xff]  }
 0x385   :  { %v3547_v39 = vpop.eup %3546  ;;  %5654 = vst [vmem:[#allocation25_spill] sm:$0xff] %v4658_v22 }
 0x386   :  { %3550 = vrcp.f32 %v1440_v10  ;;  %v1498_v62 = vmul.f32 %v3547_v39, %v1497_v37  ;;  %v3549_v8 = vpop.eup %3548  ;;  %v4646_v39 = vld [vmem:[#allocation10 + $0x100] ss:$24 sps:$4 sm:$0xff]  }
 0x387   :  { %v1447_v40 = vadd.f32 1.0, %v3549_v8  ;;  %v4652_v8 = vld [vmem:[#allocation10 + $0xd4] ss:$24 sps:$4 sm:$0xff]  }
 0x388   :  { %v4610_v21 = vadd.f32 %v1499_v46, %v1498_v62  ;;  %v4649_v62 = vld [vmem:[#allocation11 + $0x78] ss:$12 sps:$4 sm:$0xff]  }
 0x389   :  { %3552 = vrcp.f32 %v1447_v40  ;;  %v4661_v40 = vld [vmem:[#allocation11 + $0x60] ss:$12 sps:$4 sm:$0xff]  }
 0x38a   :  { %v4614_v52 = vpack.c.bf16 %v4610_v21, %v4610_v21  ;;  %5655 = vst [vmem:[#allocation26_spill] sm:$0xff] %v4661_v40 }
 0x38c   :  { %1535 = vmatmul.mubr.bf16.vlgmr.msra.gmra.mxu1 %v4614_v52  ;;  %1576 = vmatmul.mubr.bf16.vlgmr.msra.gmra.mxu0 %v4614_v52 }
 0x38d   :  { %1585 = vmatpush1.bf16.msra.mxu1 %v4618_v28  ;;  %1630 = vmatpush1.bf16.msra.mxu0 %v4621_v45 }
 0x38e   :  { %1586 = vmatprep.subr.bf16.mxu1 %v4624_v15  ;;  %1631 = vmatprep.subr.bf16.mxu0 %v4627_v20 }
 0x38f   :  { %v1430_v59 = vpop.f32.mrf.mxu0  ;;  %1616 = vmatprep.mubr.bf16.mxu1 %v5565_v1  ;;  %1661 = vmatprep.mubr.bf16.mxu0 %v5565_v1 }
 0x390   :  { %v1431_v14 = vadd.f32 %v1430_v59, %v4331_v41  ;;  %v4655_v59 = vld [vmem:[#allocation11 + $0x64] ss:$12 sps:$4 sm:$0xff]  }
 0x391   :  { %v3227_v49 = vpop.f32.mrf.mxu0  ;;  %1587 = vmatpush1.bf16.msra.mxu1 %v4632_v12  ;;  %1632 = vmatpush1.bf16.msra.mxu0 %v4635_v51  ;;  %5653 = vst [vmem:[#allocation24_spill] sm:$0xff] %v4655_v59 }
 0x392   :  { %1588 = vmatprep.subr.bf16.mxu1 %v4639_v63  ;;  %1633 = vmatprep.subr.bf16.mxu0 %v4642_v25  ;;  %v4664_v49 = vld [vmem:[#allocation10 + $0xa4] ss:$24 sps:$4 sm:$0xff]  }
 0x393   :  { %v3551_v2 = vpop.eup %3550  ;;  %v1433_v57 = vpop.f32.mrf.mxu0  ;;  %5656 = vst [vmem:[#allocation27_spill] sm:$0xff] %v4664_v49 }
 0x394   :  { %v1450_v10 = vmul.f32 %v3551_v2, %v1431_v14  ;;  %v4667_v14 = vld [vmem:[#allocation11 + $0x4c] ss:$12 sps:$4 sm:$0xff]   ;;  %v4673_v57 = vld [vmem:[#allocation11 + $0x48] ss:$12 sps:$4 sm:$0xff]  }
 0x395   :  { %v3228_v37 = vpop.f32.mrf.mxu0  ;;  %1589 = vmatpush1.bf16.msra.mxu1 %v4646_v39  ;;  %1634 = vmatpush1.bf16.msra.mxu0 %v4649_v62  ;;  %5657 = vst [vmem:[#allocation28_spill] sm:$0xff] %v4667_v14  ;;  %v4670_v2 = vld [vmem:[#allocation10 + $0xa0] ss:$24 sps:$4 sm:$0xff]   ;;  %5659 = vst [vmem:[#allocation30_spill] sm:$0xff] %v4673_v57 }
 0x396   :  { %v1451_v46 = vadd.f32 %v1450_v10, %v1353_v17  ;;  %1590 = vmatprep.subr.bf16.mxu1 %v4652_v8  ;;  %1635 = vmatprep.subr.bf16.mxu0 %v4655_v59  ;;  %5658 = vst [vmem:[#allocation29_spill] sm:$0xff] %v4670_v2  ;;  %v4676_v17 = vld [vmem:[#allocation10 + $0x74] ss:$24 sps:$4 sm:$0xff]   ;;  %v3553_v37 = vpop.eup %3552  ;;  %v4709_v59 = vld [vmem:[#allocation10 + $0x10] ss:$24 sps:$4 sm:$0xff]  }
 0x397   :  { %5660 = vst [vmem:[#allocation31_spill] sm:$0xff] %v4676_v17  ;;  %v4679_v10 = vld [vmem:[#allocation11 + $0x34] ss:$12 sps:$4 sm:$0xff]  }
 0x398   :  { %3554 = vtanh.f32 %v1451_v46  ;;  %5661 = vst [vmem:[#allocation34_spill] sm:$0xff] %v4679_v10  ;;  %v4682_v46 = vld [vmem:[#allocation10 + $0x70] ss:$24 sps:$4 sm:$0xff]  }
 0x399   :  { %1591 = vmatpush1.bf16.msra.mxu1 %v4658_v22  ;;  %1636 = vmatpush1.bf16.msra.mxu0 %v4661_v40  ;;  %5662 = vst [vmem:[#allocation38_spill] sm:$0xff] %v4682_v46  ;;  %v4697_v40 = vld [vmem:[#allocation11 + $0x18] ss:$12 sps:$4 sm:$0xff]  }
 0x39a   :  { %1592 = vmatprep.subr.bf16.mxu1 %v4664_v49  ;;  %1637 = vmatprep.subr.bf16.mxu0 %v4667_v14  ;;  %v4685_v14 = vld [vmem:[#allocation11 + $0x30] ss:$12 sps:$4 sm:$0xff]  }
 0x39b   :  { %5663 = vst [vmem:[#allocation40_spill] sm:$0xff] %v4685_v14 }
 0x39d   :  { %1593 = vmatpush1.bf16.msra.mxu1 %v4670_v2  ;;  %1638 = vmatpush1.bf16.msra.mxu0 %v4673_v57  ;;  %v4688_v2 = vld [vmem:[#allocation10 + $0x44] ss:$24 sps:$4 sm:$0xff]  }
 0x39e   :  { %1594 = vmatprep.subr.bf16.mxu1 %v4676_v17  ;;  %1639 = vmatprep.subr.bf16.mxu0 %v4679_v10  ;;  %5664 = vst [vmem:[#allocation42_spill] sm:$0xff] %v4688_v2  ;;  %v4691_v57 = vld [vmem:[#allocation11 + $0x1c] ss:$12 sps:$4 sm:$0xff]   ;;  %v1453_v17 = vsub.f32 1.0, %v3553_v37  ;;  %v4694_v10 = vld [vmem:[#allocation10 + $0x40] ss:$24 sps:$4 sm:$0xff]  }
 0x39f   :  { %5665 = vst [vmem:[#allocation65_spill] sm:$0xff] %v4691_v57  ;;  %5666 = vst [vmem:[#allocation58_spill] sm:$0xff] %v4694_v10 }
 0x3a1   :  { %1595 = vmatpush1.bf16.msra.mxu1 %v4682_v46  ;;  %1640 = vmatpush1.bf16.msra.mxu0 %v4685_v14  ;;  %v4700_v46 = vld [vmem:[#allocation10 + $0x14] ss:$24 sps:$4 sm:$0xff]   ;;  %v4703_v14 = vld [vmem:[#allocation11 + $0x4] ss:$12 sps:$4 sm:$0xff]  }
 0x3a2   :  { %1596 = vmatprep.subr.bf16.mxu1 %v4688_v2  ;;  %1641 = vmatprep.subr.bf16.mxu0 %v4691_v57  ;;  %5667 = vst [vmem:[#allocation59_spill] sm:$0xff] %v4700_v46  ;;  %v1455_v57 = vmul.f32 %v3553_v37, %v4474_v47  ;;  %v4720_v47 = vld [vmem:[#allocation11 + $0xb0] ss:$12 sps:$4 sm:$0xff]   ;;  %v4759_v37 = vld [vmem:[#allocation11 + $0x20] ss:$12 sps:$4 sm:$0xff]  }
 0x3a3   :  { %5668 = vst [vmem:[#allocation60_spill] sm:$0xff] %v4720_v47  ;;  %5674 = vst [vmem:[#allocation67_spill] sm:$0xff] %v4759_v37 }
 0x3a5   :  { %v3555_v49 = vpop.eup %3554  ;;  %1597 = vmatpush1.bf16.msra.mxu1 %v4694_v10  ;;  %1642 = vmatpush1.bf16.msra.mxu0 %v4697_v40  ;;  %v4712_v10 = vld [vmem:[#allocation11] ss:$12 sps:$4 sm:$0xff]  }
 0x3a6   :  { %1598 = vmatprep.subr.bf16.mxu1 %v4700_v46  ;;  %1643 = vmatprep.subr.bf16.mxu0 %v4703_v14  ;;  %v1454_v2 = vmul.f32 %v3555_v49, %v1453_v17  ;;  %v4729_v49 = vld [vmem:[#allocation11 + $0x98] ss:$12 sps:$4 sm:$0xff]  }
 0x3a7   :  { %5669 = vst [vmem:[#allocation61_spill] sm:$0xff] %v4729_v49  ;;  %v4753_v17 = vld [vmem:[#allocation11 + $0x38] ss:$12 sps:$4 sm:$0xff]  }
 0x3a8   :  { %v4707_v22 = vadd.f32 %v1455_v57, %v1454_v2  ;;  %v4741_v2 = vld [vmem:[#allocation11 + $0x68] ss:$12 sps:$4 sm:$0xff]   ;;  %v4747_v57 = vld [vmem:[#allocation11 + $0x50] ss:$12 sps:$4 sm:$0xff]   ;;  %5673 = vst [vmem:[#allocation37_spill] sm:$0xff] %v4753_v17 }
 0x3a9   :  { %1599 = vmatpush1.bf16.msra.mxu1 %v4709_v59  ;;  %1644 = vmatpush1.bf16.msra.mxu0 %v4712_v10  ;;  %5671 = vst [vmem:[#allocation63_spill] sm:$0xff] %v4741_v2  ;;  %5672 = vst [vmem:[#allocation64_spill] sm:$0xff] %v4747_v57 }
 0x3aa   :  { %v1628_v46 = vpack.c.bf16 %v4707_v22, %v4707_v22  ;;  %3229 = vmatprep.subr.bf16.mxu1 %v5563_v58  ;;  %1776 = vmatprep.subr.bf16.mxu0 %v4481_v53 }
 0x3ac   :  { %1617 = vmatmul.mubr.bf16.vlgmr.msra.gmra.mxu1 %v4614_v52  ;;  %1662 = vmatmul.mubr.bf16.vlgmr.msra.gmra.mxu0 %v1628_v46  ;;  %v4735_v52 = vld [vmem:[#allocation11 + $0x80] ss:$12 sps:$4 sm:$0xff]  }
 0x3ad   :  { %3230 = vmatpush3.bf16.msra.mxu1 %v4720_v47  ;;  %3245 = vmatprep.mubr.msk.bf16.mxu1 %vm3934_vm0, %v5563_v58  ;;  %5670 = vst [vmem:[#allocation62_spill] sm:$0xff] %v4735_v52 }
 0x3ae   :  { %3231 = vmatprep.subr.bf16.mxu1 %v5563_v58  ;;  %1777 = vmatpush1.bf16.msra.mxu0 %v4488_v0 }
 0x3af   :  { %1778 = vmatprep.subr.bf16.mxu0 %v4491_v54  ;;  %1808 = vmatprep.mubr.bf16.mxu0 %v5565_v1 }
 0x3b1   :  { %3232 = vmatpush3.bf16.msra.mxu1 %v4729_v49 }
 0x3b2   :  { %3233 = vmatprep.subr.bf16.mxu1 %v5563_v58  ;;  %1779 = vmatpush1.bf16.msra.mxu0 %v4497_v18 }
 0x3b3   :  { %1780 = vmatprep.subr.bf16.mxu0 %v4500_v11 }
 0x3b5   :  { %3234 = vmatpush3.bf16.msra.mxu1 %v4735_v52 }
 0x3b6   :  { %3235 = vmatprep.subr.bf16.mxu1 %v5563_v58  ;;  %1781 = vmatpush1.bf16.msra.mxu0 %v4505_v32 }
 0x3b7   :  { %1782 = vmatprep.subr.bf16.mxu0 %v4508_v31 }
 0x3b9   :  { %3236 = vmatpush3.bf16.msra.mxu1 %v4741_v2 }
 0x3ba   :  { %3237 = vmatprep.subr.bf16.mxu1 %v5563_v58  ;;  %1783 = vmatpush1.bf16.msra.mxu0 %v4513_v9 }
 0x3bb   :  { %1784 = vmatprep.subr.bf16.mxu0 %v4516_v24 }
 0x3bd   :  { %3238 = vmatpush3.bf16.msra.mxu1 %v4747_v57 }
 0x3be   :  { %3239 = vmatprep.subr.bf16.mxu1 %v5563_v58  ;;  %1785 = vmatpush1.bf16.msra.mxu0 %v4521_v42 }
 0x3bf   :  { %1786 = vmatprep.subr.bf16.mxu0 %v4524_v38  ;;  %v4765_v38 = vld [vmem:[#allocation11 + $0x8] ss:$12 sps:$4 sm:$0xff]  }
 0x3c0   :  { %5675 = vst [vmem:[#allocation68_spill] sm:$0xff] %v4765_v38 }
 0x3c1   :  { %3240 = vmatpush3.bf16.msra.mxu1 %v4753_v17 }
 0x3c2   :  { %3241 = vmatprep.subr.bf16.mxu1 %v5563_v58  ;;  %1787 = vmatpush1.bf16.msra.mxu0 %v4529_v13 }
 0x3c3   :  { %1788 = vmatprep.subr.bf16.mxu0 %v4532_v30 }
 0x3c5   :  { %3242 = vmatpush3.bf16.msra.mxu1 %v4759_v37 }
 0x3c6   :  { %3243 = vmatprep.subr.bf16.mxu1 %v5563_v58  ;;  %1789 = vmatpush1.bf16.msra.mxu0 %v4537_v34 }
 0x3c7   :  { %1790 = vmatprep.subr.bf16.mxu0 %v4540_v3 }
 0x3c9   :  { %3244 = vmatpush3.bf16.msra.mxu1 %v4765_v38 }
 0x3ca   :  { %1817 = vmatprep.subr.bf16.mxu1 %v4544_v6  ;;  %1791 = vmatpush1.bf16.msra.mxu0 %v4547_v4 }
 0x3cb   :  { %1858 = vmatprep.subr.bf16.mxu0 %v4550_v19 }
 0x3cc   :  { %3246 = vmatmul.mubr.bf16.vlgmr.msra.gmra.mxu1 %v1628_v46  ;;  %v5676_v46 = vld [vmem:[#allocation20_spill] sm:$0xff] }
 0x3cd   :  { %1818 = vmatpush1.bf16.msra.mxu1 %v4553_v16  ;;  %1849 = vmatprep.mubr.bf16.mxu1 %v5565_v1  ;;  %v5680_v16 = vld [vmem:[#allocation36_spill] sm:$0xff] }
 0x3ce   :  { %1819 = vmatprep.subr.bf16.mxu1 %v4557_v26 }
 0x3d1   :  { %1820 = vmatpush1.bf16.msra.mxu1 %v4560_v27  ;;  %v5677_v27 = vld [vmem:[#allocation21_spill] sm:$0xff] }
 0x3d2   :  { %1821 = vmatprep.subr.bf16.mxu1 %v4563_v36  ;;  %v5678_v36 = vld [vmem:[#allocation22_spill] sm:$0xff] }
 0x3d5   :  { %1822 = vmatpush1.bf16.msra.mxu1 %v4566_v29  ;;  %v5679_v29 = vld [vmem:[#allocation23_spill] sm:$0xff] }
 0x3d6   :  { %1823 = vmatprep.subr.bf16.mxu1 %v4569_v33  ;;  %v1742_v33 = vld [vmem:[#allocation5 + $0xc] sm:$0x7] }
 0x3d7   :  { %v1755_v19 = vrot.slane %v1742_v33, 1 }
 0x3d9   :  { %1824 = vmatpush1.bf16.msra.mxu1 %v4572_v7  ;;  %v1746_v7 = vunpack.c.l.bf16 %v1742_v33 }
 0x3da   :  { %1825 = vmatprep.subr.bf16.mxu1 %v4575_v48 }
 0x3dd   :  { %1826 = vmatpush1.bf16.msra.mxu1 %v4578_v50 }
 0x3de   :  { %1827 = vmatprep.subr.bf16.mxu1 %v4581_v23 }
 0x3e1   :  { %1828 = vmatpush1.bf16.msra.mxu1 %v4584_v56 }
 0x3e2   :  { %1829 = vmatprep.subr.bf16.mxu1 %v4587_v55 }
 0x3e5   :  { %1830 = vmatpush1.bf16.msra.mxu1 %v5676_v46 }
 0x3e6   :  { %1831 = vmatprep.subr.bf16.mxu1 %v5677_v27  ;;  %v1757_v27 = vunpack.c.l.bf16 %v1755_v19 }
 0x3e9   :  { %1832 = vmatpush1.bf16.msra.mxu1 %v5678_v36 }
 0x3ea   :  { %1903 = vmatprep.subr.bf16.mxu1 %v5679_v29 }
 0x44c   :  { %v1536_v26 = vpop.f32.mrf.mxu1  ;;  %v1577_v48 = vpop.f32.mrf.mxu0 }
 0x44d   :  { %v1743_v50 = vadd.f32 %v1536_v26, %v5680_v16  ;;  %v1766_v16 = vrot.slane %v1742_v33, 2 }
 0x44e   :  { %v1538_v23 = vpop.f32.mrf.mxu1  ;;  %v1579_v4 = vpop.f32.mrf.mxu0 }
 0x44f   :  { %v1747_v56 = vadd.f32 %v1746_v7, %v1743_v50  ;;  %v1744_v46 = vadd.f32 %v1538_v23, %v5651_v60  ;;  %v5681_v50 = vld [vmem:[#allocation66_spill] sm:$0xff] }
 0x450   :  { %v1540_v6 = vpop.f32.mrf.mxu1  ;;  %v1581_v55 = vpop.f32.mrf.mxu0 }
 0x451   :  { %v3063_v38 = vmul.f32 -1.442695, %v1747_v56  ;;  %v1758_v29 = vadd.f32 %v1757_v27, %v1744_v46  ;;  %v1625_v6 = vadd.f32 %v1579_v4, %v5617_v5 }
 0x452   :  { %v1541_v3 = vpop.f32.mrf.mxu1  ;;  %v1582_v36 = vpop.f32.mrf.mxu0 }
 0x453   :  { %3556 = vpow2.f32 %v3063_v38  ;;  %v3064_v34 = vmul.f32 -1.442695, %v1758_v29  ;;  %v1745_v3 = vadd.f32 %v1577_v48, %v4098_v43  ;;  %v1768_v38 = vunpack.c.l.bf16 %v1766_v16 }
 0x455   :  { %3558 = vpow2.f32 %v3064_v34 }
 0x460   :  { %v3557_v37 = vpop.eup %3556 }
 0x461   :  { %v1751_v30 = vadd.f32 1.0, %v3557_v37 }
 0x462   :  { %v3559_v26 = vpop.eup %3558 }
 0x463   :  { %3560 = vrcp.f32 %v1751_v30  ;;  %v1762_v7 = vadd.f32 1.0, %v3559_v26 }
 0x465   :  { %3562 = vrcp.f32 %v1762_v7 }
 0x46c   :  { %v1618_v13 = vpop.f32.mrf.mxu1  ;;  %v1663_v17 = vpop.f32.mrf.mxu0 }
 0x46d   :  { %v1664_v56 = vadd.f32 %v1663_v17, %v5681_v50  ;;  %v1626_v4 = vadd.f32 %v1618_v13, %v4316_v35 }
 0x46e   :  { %v1620_v23 = vpop.f32.mrf.mxu1  ;;  %v1665_v19 = vpop.f32.mrf.mxu0 }
 0x46f   :  { %v1710_v27 = vadd.f32 %v1664_v56, %v1625_v6  ;;  %v1666_v33 = vadd.f32 %v1665_v19, %v4320_v44 }
 0x470   :  { %v3561_v36 = vpop.eup %3560  ;;  %v1622_v34 = vpop.f32.mrf.mxu1 }
 0x471   :  { %v1667_v29 = vpop.f32.mrf.mxu0  ;;  %v1765_v55 = vmul.f32 %v3561_v36, %v1745_v3  ;;  %v3061_v30 = vmul.f32 -1.442695, %v1710_v27  ;;  %v1717_v17 = vadd.f32 %v1666_v33, %v1626_v4  ;;  %v5683_v4 = vld [vmem:[#allocation25_spill] sm:$0xff] }
 0x472   :  { %v1623_v37 = vpop.f32.mrf.mxu1  ;;  %v3563_v16 = vpop.eup %3562 }
 0x473   :  { %v1668_v46 = vpop.f32.mrf.mxu0  ;;  %v1769_v26 = vadd.f32 %v1768_v38, %v1765_v55  ;;  %3564 = vpow2.f32 %v3061_v30  ;;  %v3062_v50 = vmul.f32 -1.442695, %v1717_v17  ;;  %v1771_v56 = vsub.f32 1.0, %v3563_v16  ;;  %v5684_v17 = vld [vmem:[#allocation26_spill] sm:$0xff] }
 0x474   :  { %v1773_v3 = vmul.f32 %v3563_v16, %v4610_v21  ;;  %v1627_v30 = vadd.f32 %v1620_v23, %v4340_v61  ;;  %v5685_v16 = vld [vmem:[#allocation27_spill] sm:$0xff]  ;;  %v5686_v23 = vld [vmem:[#allocation28_spill] sm:$0xff] }
 0x475   :  { %3566 = vtanh.f32 %v1769_v26  ;;  %v5682_v26 = vld [vmem:[#allocation24_spill] sm:$0xff] }
 0x476   :  { %3568 = vpow2.f32 %v3062_v50 }
 0x480   :  { %v3565_v48 = vpop.eup %3564 }
 0x481   :  { %v1714_v6 = vadd.f32 1.0, %v3565_v48  ;;  %v5687_v48 = vld [vmem:[#allocation29_spill] sm:$0xff] }
 0x482   :  { %v3567_v34 = vpop.eup %3566 }
 0x483   :  { %3570 = vrcp.f32 %v1714_v6  ;;  %v1772_v7 = vmul.f32 %v3567_v34, %v1771_v56  ;;  %v3569_v13 = vpop.eup %3568  ;;  %v5688_v6 = vld [vmem:[#allocation30_spill] sm:$0xff]  ;;  %v5689_v56 = vld [vmem:[#allocation31_spill] sm:$0xff] }
 0x484   :  { %v1721_v21 = vadd.f32 1.0, %v3569_v13  ;;  %v5690_v34 = vld [vmem:[#allocation34_spill] sm:$0xff]  ;;  %v5692_v13 = vld [vmem:[#allocation40_spill] sm:$0xff] }
 0x485   :  { %v4796_v19 = vadd.f32 %v1773_v3, %v1772_v7  ;;  %v5691_v3 = vld [vmem:[#allocation38_spill] sm:$0xff] }
 0x486   :  { %3572 = vrcp.f32 %v1721_v21  ;;  %v5694_v21 = vld [vmem:[#allocation65_spill] sm:$0xff] }
 0x487   :  { %v1775_v38 = vpack.c.bf16 %v4796_v19, %v4796_v19 }
 0x489   :  { %1809 = vmatmul.mubr.bf16.vlgmr.msra.gmra.mxu0 %v1775_v38  ;;  %1850 = vmatmul.mubr.bf16.vlgmr.msra.gmra.mxu1 %v1775_v38 }
 0x48a   :  { %1859 = vmatpush1.bf16.msra.mxu0 %v4618_v28  ;;  %1904 = vmatpush1.bf16.msra.mxu1 %v4621_v45 }
 0x48b   :  { %1860 = vmatprep.subr.bf16.mxu0 %v4624_v15  ;;  %1905 = vmatprep.subr.bf16.mxu1 %v4627_v20 }
 0x48c   :  { %v1704_v50 = vpop.f32.mrf.mxu1  ;;  %1890 = vmatprep.mubr.bf16.mxu0 %v5565_v1  ;;  %1935 = vmatprep.mubr.bf16.mxu1 %v5565_v1 }
 0x48d   :  { %v1705_v36 = vadd.f32 %v1704_v50, %v4331_v41  ;;  %v5693_v50 = vld [vmem:[#allocation42_spill] sm:$0xff] }
 0x48e   :  { %v3247_v27 = vpop.f32.mrf.mxu1  ;;  %1861 = vmatpush1.bf16.msra.mxu0 %v4632_v12  ;;  %1906 = vmatpush1.bf16.msra.mxu1 %v4635_v51 }
 0x48f   :  { %1862 = vmatprep.subr.bf16.mxu0 %v4639_v63  ;;  %1907 = vmatprep.subr.bf16.mxu1 %v4642_v25 }
 0x490   :  { %v3571_v29 = vpop.eup %3570  ;;  %v1707_v55 = vpop.f32.mrf.mxu1 }
 0x491   :  { %v1724_v33 = vmul.f32 %v3571_v29, %v1705_v36  ;;  %v5695_v29 = vld [vmem:[#allocation58_spill] sm:$0xff]  ;;  %v5696_v55 = vld [vmem:[#allocation59_spill] sm:$0xff] }
 0x492   :  { %v3248_v37 = vpop.f32.mrf.mxu1  ;;  %1863 = vmatpush1.bf16.msra.mxu0 %v4646_v39  ;;  %1908 = vmatpush1.bf16.msra.mxu1 %v4649_v62 }
 0x493   :  { %v1725_v46 = vadd.f32 %v1724_v33, %v1627_v30  ;;  %1864 = vmatprep.subr.bf16.mxu0 %v4652_v8  ;;  %1909 = vmatprep.subr.bf16.mxu1 %v5682_v26  ;;  %v3573_v7 = vpop.eup %3572 }
 0x494   :  { %v1727_v27 = vsub.f32 1.0, %v3573_v7  ;;  %v1729_v33 = vmul.f32 %v3573_v7, %v4707_v22  ;;  %v5707_v22 = vld [vmem:[#allocation50_spill] sm:$0xff]  ;;  %v5709_v7 = vld [vmem:[#allocation52_spill] sm:$0xff] }
 0x495   :  { %3574 = vtanh.f32 %v1725_v46 }
 0x496   :  { %1865 = vmatpush1.bf16.msra.mxu0 %v5683_v4  ;;  %1910 = vmatpush1.bf16.msra.mxu1 %v5684_v17 }
 0x497   :  { %1866 = vmatprep.subr.bf16.mxu0 %v5685_v16  ;;  %1911 = vmatprep.subr.bf16.mxu1 %v5686_v23 }
 0x49a   :  { %1867 = vmatpush1.bf16.msra.mxu0 %v5687_v48  ;;  %1912 = vmatpush1.bf16.msra.mxu1 %v5688_v6 }
 0x49b   :  { %1868 = vmatprep.subr.bf16.mxu0 %v5689_v56  ;;  %1913 = vmatprep.subr.bf16.mxu1 %v5690_v34 }
 0x49e   :  { %1869 = vmatpush1.bf16.msra.mxu0 %v5691_v3  ;;  %1914 = vmatpush1.bf16.msra.mxu1 %v5692_v13 }
 0x49f   :  { %1870 = vmatprep.subr.bf16.mxu0 %v5693_v50  ;;  %1915 = vmatprep.subr.bf16.mxu1 %v5694_v21 }
 0x4a2   :  { %v3575_v36 = vpop.eup %3574  ;;  %1871 = vmatpush1.bf16.msra.mxu0 %v5695_v29  ;;  %1916 = vmatpush1.bf16.msra.mxu1 %v4697_v40 }
 0x4a3   :  { %1872 = vmatprep.subr.bf16.mxu0 %v5696_v55  ;;  %1917 = vmatprep.subr.bf16.mxu1 %v4703_v14  ;;  %v1728_v30 = vmul.f32 %v3575_v36, %v1727_v27  ;;  %v5710_v27 = vld [vmem:[#allocation53_spill] sm:$0xff]  ;;  %v5711_v36 = vld [vmem:[#allocation54_spill] sm:$0xff] }
 0x4a5   :  { %v4833_v37 = vadd.f32 %v1729_v33, %v1728_v30  ;;  %v5712_v30 = vld [vmem:[#allocation55_spill] sm:$0xff]  ;;  %v5713_v33 = vld [vmem:[#allocation56_spill] sm:$0xff] }
 0x4a6   :  { %1873 = vmatpush1.bf16.msra.mxu0 %v4709_v59  ;;  %1918 = vmatpush1.bf16.msra.mxu1 %v4712_v10 }
 0x4a7   :  { %v1902_v46 = vpack.c.bf16 %v4833_v37, %v4833_v37  ;;  %3249 = vmatprep.subr.bf16.mxu0 %v5563_v58  ;;  %2050 = vmatprep.subr.bf16.mxu1 %v4481_v53  ;;  %v5697_v53 = vld [vmem:[#allocation43_spill] sm:$0xff] }
 0x4a9   :  { %1891 = vmatmul.mubr.bf16.vlgmr.msra.gmra.mxu0 %v1775_v38  ;;  %1936 = vmatmul.mubr.bf16.vlgmr.msra.gmra.mxu1 %v1902_v46  ;;  %v5708_v38 = vld [vmem:[#allocation51_spill] sm:$0xff] }
 0x4aa   :  { %3250 = vmatpush3.bf16.msra.mxu0 %v4720_v47  ;;  %3265 = vmatprep.mubr.msk.bf16.mxu0 %vm3934_vm0, %v5563_v58 }
 0x4ab   :  { %3251 = vmatprep.subr.bf16.mxu0 %v5563_v58  ;;  %2051 = vmatpush1.bf16.msra.mxu1 %v4488_v0  ;;  %v5698_v0 = vld [vmem:[#allocation37_spill] sm:$0xff] }
 0x4ac   :  { %2052 = vmatprep.subr.bf16.mxu1 %v4491_v54  ;;  %2082 = vmatprep.mubr.bf16.mxu1 %v5565_v1  ;;  %v5699_v54 = vld [vmem:[#allocation44_spill] sm:$0xff] }
 0x4ae   :  { %3252 = vmatpush3.bf16.msra.mxu0 %v4729_v49 }
 0x4af   :  { %3253 = vmatprep.subr.bf16.mxu0 %v5563_v58  ;;  %2053 = vmatpush1.bf16.msra.mxu1 %v4497_v18  ;;  %v5700_v18 = vld [vmem:[#allocation45_spill] sm:$0xff] }
 0x4b0   :  { %2054 = vmatprep.subr.bf16.mxu1 %v4500_v11  ;;  %v5701_v11 = vld [vmem:[#allocation67_spill] sm:$0xff] }
 0x4b2   :  { %3254 = vmatpush3.bf16.msra.mxu0 %v4735_v52 }
 0x4b3   :  { %3255 = vmatprep.subr.bf16.mxu0 %v5563_v58  ;;  %2055 = vmatpush1.bf16.msra.mxu1 %v4505_v32  ;;  %v5702_v32 = vld [vmem:[#allocation46_spill] sm:$0xff] }
 0x4b4   :  { %2056 = vmatprep.subr.bf16.mxu1 %v4508_v31  ;;  %v5703_v31 = vld [vmem:[#allocation47_spill] sm:$0xff] }
 0x4b6   :  { %3256 = vmatpush3.bf16.msra.mxu0 %v4741_v2 }
 0x4b7   :  { %3257 = vmatprep.subr.bf16.mxu0 %v5563_v58  ;;  %2057 = vmatpush1.bf16.msra.mxu1 %v4513_v9  ;;  %v5704_v9 = vld [vmem:[#allocation68_spill] sm:$0xff] }
 0x4b8   :  { %2058 = vmatprep.subr.bf16.mxu1 %v4516_v24  ;;  %v5705_v24 = vld [vmem:[#allocation48_spill] sm:$0xff] }
 0x4ba   :  { %3258 = vmatpush3.bf16.msra.mxu0 %v4747_v57 }
 0x4bb   :  { %3259 = vmatprep.subr.bf16.mxu0 %v5563_v58  ;;  %2059 = vmatpush1.bf16.msra.mxu1 %v4521_v42  ;;  %v5706_v42 = vld [vmem:[#allocation49_spill] sm:$0xff] }
 0x4bc   :  { %2060 = vmatprep.subr.bf16.mxu1 %v5697_v53  ;;  %v5714_v53 = vld [vmem:[#allocation57_spill] sm:$0xff] }
 0x4be   :  { %3260 = vmatpush3.bf16.msra.mxu0 %v5698_v0 }
 0x4bf   :  { %3261 = vmatprep.subr.bf16.mxu0 %v5563_v58  ;;  %2061 = vmatpush1.bf16.msra.mxu1 %v5699_v54  ;;  %v5715_v54 = vld [vmem:[#allocation33_spill] sm:$0xff] }
 0x4c0   :  { %2062 = vmatprep.subr.bf16.mxu1 %v5700_v18  ;;  %v5716_v18 = vld [vmem:[#allocation35_spill] sm:$0xff] }
 0x4c2   :  { %3262 = vmatpush3.bf16.msra.mxu0 %v5701_v11 }
 0x4c3   :  { %3263 = vmatprep.subr.bf16.mxu0 %v5563_v58  ;;  %2063 = vmatpush1.bf16.msra.mxu1 %v5702_v32  ;;  %v5718_v32 = vld [vmem:[#allocation39_spill] sm:$0xff] }
 0x4c4   :  { %2064 = vmatprep.subr.bf16.mxu1 %v5703_v31  ;;  %v5719_v31 = vld [vmem:[#allocation41_spill] sm:$0xff] }
 0x4c6   :  { %3264 = vmatpush3.bf16.msra.mxu0 %v5704_v9 }
 0x4c7   :  { %2091 = vmatprep.subr.bf16.mxu0 %v5705_v24  ;;  %2065 = vmatpush1.bf16.msra.mxu1 %v5706_v42  ;;  %v5720_v24 = vld [vmem:[#allocation20_spill] sm:$0xff]  ;;  %v5721_v42 = vld [vmem:[#allocation21_spill] sm:$0xff] }
 0x4c8   :  { %2132 = vmatprep.subr.bf16.mxu1 %v5707_v22  ;;  %v5722_v22 = vld [vmem:[#allocation22_spill] sm:$0xff] }
 0x4c9   :  { %3266 = vmatmul.mubr.bf16.vlgmr.msra.gmra.mxu0 %v1902_v46  ;;  %v5717_v46 = vld [vmem:[#allocation19_spill] sm:$0xff] }
 0x4ca   :  { %2092 = vmatpush1.bf16.msra.mxu0 %v5708_v38  ;;  %2123 = vmatprep.mubr.bf16.mxu0 %v5565_v1  ;;  %v5723_v38 = vld [vmem:[#allocation23_spill] sm:$0xff] }
 0x4cb   :  { %2093 = vmatprep.subr.bf16.mxu0 %v5709_v7  ;;  %v2016_v7 = vld [vmem:[#allocation5 + $0xf] sm:$0x7] }
 0x4ce   :  { %2094 = vmatpush1.bf16.msra.mxu0 %v5710_v27  ;;  %v2020_v27 = vunpack.c.l.bf16 %v2016_v7 }
 0x4cf   :  { %2095 = vmatprep.subr.bf16.mxu0 %v5711_v36 }
 0x4d2   :  { %2096 = vmatpush1.bf16.msra.mxu0 %v5712_v30 }
 0x4d3   :  { %2097 = vmatprep.subr.bf16.mxu0 %v5713_v33  ;;  %v5724_v33 = vld [vmem:[#allocation36_spill] sm:$0xff] }
 0x4d6   :  { %2098 = vmatpush1.bf16.msra.mxu0 %v5714_v53 }
 0x4d7   :  { %2099 = vmatprep.subr.bf16.mxu0 %v5715_v54  ;;  %v2029_v54 = vrot.slane %v2016_v7, 1 }
 0x4da   :  { %2100 = vmatpush1.bf16.msra.mxu0 %v5716_v18 }
 0x4db   :  { %2101 = vmatprep.subr.bf16.mxu0 %v5717_v46 }
 0x4de   :  { %2102 = vmatpush1.bf16.msra.mxu0 %v5718_v32 }
 0x4df   :  { %2103 = vmatprep.subr.bf16.mxu0 %v5719_v31 }
 0x4e2   :  { %2104 = vmatpush1.bf16.msra.mxu0 %v5720_v24 }
 0x4e3   :  { %2105 = vmatprep.subr.bf16.mxu0 %v5721_v42  ;;  %v2031_v42 = vunpack.c.l.bf16 %v2029_v54 }
 0x4e6   :  { %2106 = vmatpush1.bf16.msra.mxu0 %v5722_v22 }
 0x4e7   :  { %2177 = vmatprep.subr.bf16.mxu0 %v5723_v38 }
 0x549   :  { %v1810_v36 = vpop.f32.mrf.mxu0  ;;  %v1851_v30 = vpop.f32.mrf.mxu1 }
 0x54a   :  { %v2017_v53 = vadd.f32 %v1810_v36, %v5724_v33  ;;  %v2040_v33 = vrot.slane %v2016_v7, 2 }
 0x54b   :  { %v1812_v18 = vpop.f32.mrf.mxu0  ;;  %v1853_v46 = vpop.f32.mrf.mxu1 }
 0x54c   :  { %v2021_v32 = vadd.f32 %v2020_v27, %v2017_v53  ;;  %v2018_v24 = vadd.f32 %v1812_v18, %v5651_v60  ;;  %v5725_v53 = vld [vmem:[#allocation66_spill] sm:$0xff] }
 0x54d   :  { %v1814_v9 = vpop.f32.mrf.mxu0  ;;  %v1855_v31 = vpop.f32.mrf.mxu1 }
 0x54e   :  { %v3067_v11 = vmul.f32 -1.442695, %v2021_v32  ;;  %v2032_v38 = vadd.f32 %v2031_v42, %v2018_v24  ;;  %v1899_v9 = vadd.f32 %v1853_v46, %v5617_v5 }
 0x54f   :  { %v1815_v0 = vpop.f32.mrf.mxu0  ;;  %v1856_v22 = vpop.f32.mrf.mxu1 }
 0x550   :  { %3576 = vpow2.f32 %v3067_v11  ;;  %v3068_v57 = vmul.f32 -1.442695, %v2032_v38  ;;  %v2019_v0 = vadd.f32 %v1851_v30, %v4098_v43  ;;  %v2042_v11 = vunpack.c.l.bf16 %v2040_v33 }
 0x552   :  { %3578 = vpow2.f32 %v3068_v57 }
 0x55d   :  { %v3577_v2 = vpop.eup %3576 }
 0x55e   :  { %v2025_v52 = vadd.f32 1.0, %v3577_v2 }
 0x55f   :  { %v3579_v36 = vpop.eup %3578 }
 0x560   :  { %3580 = vrcp.f32 %v2025_v52  ;;  %v2036_v27 = vadd.f32 1.0, %v3579_v36 }
 0x562   :  { %3582 = vrcp.f32 %v2036_v27 }
 0x569   :  { %v1892_v49 = vpop.f32.mrf.mxu0  ;;  %v1937_v47 = vpop.f32.mrf.mxu1 }
 0x56a   :  { %v1938_v32 = vadd.f32 %v1937_v47, %v5725_v53  ;;  %v1900_v46 = vadd.f32 %v1892_v49, %v4316_v35 }
 0x56b   :  { %v1894_v18 = vpop.f32.mrf.mxu0  ;;  %v1939_v54 = vpop.f32.mrf.mxu1 }
 0x56c   :  { %v1984_v31 = vadd.f32 %v1938_v32, %v1899_v9  ;;  %v1940_v7 = vadd.f32 %v1939_v54, %v4320_v44 }
 0x56d   :  { %v3581_v24 = vpop.eup %3580  ;;  %v1896_v57 = vpop.f32.mrf.mxu0 }
 0x56e   :  { %v1941_v42 = vpop.f32.mrf.mxu1  ;;  %v2039_v2 = vmul.f32 %v3581_v24, %v2019_v0  ;;  %v3065_v52 = vmul.f32 -1.442695, %v1984_v31  ;;  %v1991_v47 = vadd.f32 %v1940_v7, %v1900_v46  ;;  %v5733_v7 = vld [vmem:[#allocation68_spill] sm:$0xff] }
 0x56f   :  { %v1897_v22 = vpop.f32.mrf.mxu0  ;;  %v3583_v30 = vpop.eup %3582  ;;  %v5017_v46 = vld [vmem:[#allocation10 + $0x158] ss:$24 sps:$4 sm:$0xff]  }
 0x570   :  { %v1942_v38 = vpop.f32.mrf.mxu1  ;;  %v2043_v36 = vadd.f32 %v2042_v11, %v2039_v2  ;;  %3584 = vpow2.f32 %v3065_v52  ;;  %v3066_v53 = vmul.f32 -1.442695, %v1991_v47  ;;  %v2045_v32 = vsub.f32 1.0, %v3583_v30  ;;  %v5001_v2 = vld [vmem:[#allocation10 + $0x30] ss:$24 sps:$4 sm:$0xff]  }
 0x571   :  { %v2047_v0 = vmul.f32 %v3583_v30, %v4796_v19  ;;  %v5004_v52 = vld [vmem:[#allocation10 + $0x4] ss:$24 sps:$4 sm:$0xff]   ;;  %v5011_v38 = vld [vmem:[#allocation10] ss:$24 sps:$4 sm:$0xff]  }
 0x572   :  { %3586 = vtanh.f32 %v2043_v36  ;;  %v5008_v22 = vld [vmem:[#allocation10 + $0x15c] ss:$24 sps:$4 sm:$0xff]   ;;  %v5021_v47 = vld [vmem:[#allocation10 + $0x12c] ss:$24 sps:$4 sm:$0xff]   ;;  %v5024_v30 = vld [vmem:[#allocation10 + $0x128] ss:$24 sps:$4 sm:$0xff]  }
 0x573   :  { %3588 = vpow2.f32 %v3066_v53  ;;  %v5014_v36 = vld [vmem:[#allocation10 + $0x164] ss:$24 sps:$4 sm:$0xff]  }
 0x57d   :  { %v3585_v33 = vpop.eup %3584 }
 0x57e   :  { %v1988_v9 = vadd.f32 1.0, %v3585_v33  ;;  %v5027_v33 = vld [vmem:[#allocation10 + $0xfc] ss:$24 sps:$4 sm:$0xff]  }
 0x57f   :  { %v3587_v57 = vpop.eup %3586 }
 0x580   :  { %3590 = vrcp.f32 %v1988_v9  ;;  %v2046_v27 = vmul.f32 %v3587_v57, %v2045_v32  ;;  %v3589_v49 = vpop.eup %3588  ;;  %v5030_v9 = vld [vmem:[#allocation10 + $0xf8] ss:$24 sps:$4 sm:$0xff]   ;;  %v5033_v32 = vld [vmem:[#allocation10 + $0xcc] ss:$24 sps:$4 sm:$0xff]   ;;  %v5036_v57 = vld [vmem:[#allocation10 + $0xc8] ss:$24 sps:$4 sm:$0xff]  }
 0x581   :  { %v1995_v19 = vadd.f32 1.0, %v3589_v49  ;;  %v5048_v49 = vld [vmem:[#allocation10 + $0x68] ss:$24 sps:$4 sm:$0xff]  }
 0x582   :  { %v4901_v54 = vadd.f32 %v2047_v0, %v2046_v27  ;;  %v5039_v27 = vld [vmem:[#allocation10 + $0x9c] ss:$24 sps:$4 sm:$0xff]   ;;  %v5042_v0 = vld [vmem:[#allocation10 + $0x98] ss:$24 sps:$4 sm:$0xff]  }
 0x583   :  { %3592 = vrcp.f32 %v1995_v19  ;;  %v5054_v19 = vld [vmem:[#allocation10 + $0x38] ss:$24 sps:$4 sm:$0xff]  }
 0x584   :  { %v2049_v11 = vpack.c.bf16 %v4901_v54, %v4901_v54  ;;  %5734 = vst [vmem:[#allocation24_spill] sm:$0xff] %v5054_v19 }
 0x586   :  { %2083 = vmatmul.mubr.bf16.vlgmr.msra.gmra.mxu1 %v2049_v11  ;;  %2124 = vmatmul.mubr.bf16.vlgmr.msra.gmra.mxu0 %v2049_v11 }
 0x587   :  { %2133 = vmatpush1.bf16.msra.mxu1 %v4618_v28  ;;  %2178 = vmatpush1.bf16.msra.mxu0 %v4621_v45 }
 0x588   :  { %2134 = vmatprep.subr.bf16.mxu1 %v4624_v15  ;;  %2179 = vmatprep.subr.bf16.mxu0 %v4627_v20  ;;  %v1901_v15 = vadd.f32 %v1894_v18, %v4340_v61  ;;  %v5732_v18 = vld [vmem:[#allocation67_spill] sm:$0xff] }
 0x589   :  { %v1978_v53 = vpop.f32.mrf.mxu0  ;;  %2164 = vmatprep.mubr.bf16.mxu1 %v5565_v1  ;;  %2209 = vmatprep.mubr.bf16.mxu0 %v5565_v1 }
 0x58a   :  { %v1979_v24 = vadd.f32 %v1978_v53, %v4331_v41  ;;  %v5051_v53 = vld [vmem:[#allocation10 + $0x3c] ss:$24 sps:$4 sm:$0xff]  }
 0x58b   :  { %v3267_v31 = vpop.f32.mrf.mxu0  ;;  %2135 = vmatpush1.bf16.msra.mxu1 %v4632_v12  ;;  %2180 = vmatpush1.bf16.msra.mxu0 %v4635_v51 }
 0x58c   :  { %2136 = vmatprep.subr.bf16.mxu1 %v4639_v63  ;;  %2181 = vmatprep.subr.bf16.mxu0 %v4642_v25  ;;  %v5057_v31 = vld [vmem:[#allocation10 + $0xc] ss:$24 sps:$4 sm:$0xff]  }
 0x58d   :  { %v3591_v28 = vpop.eup %3590  ;;  %v1981_v45 = vpop.f32.mrf.mxu0  ;;  %5735 = vst [vmem:[#allocation25_spill] sm:$0xff] %v5057_v31 }
 0x58e   :  { %v1998_v20 = vmul.f32 %v3591_v28, %v1979_v24  ;;  %v5060_v24 = vld [vmem:[#allocation10 + $0x8] ss:$24 sps:$4 sm:$0xff]   ;;  %v5063_v28 = vld [vmem:[#allocation11 + $0xac] ss:$12 sps:$4 sm:$0xff]  }
 0x58f   :  { %v3268_v42 = vpop.f32.mrf.mxu0  ;;  %2137 = vmatpush1.bf16.msra.mxu1 %v4646_v39  ;;  %2182 = vmatpush1.bf16.msra.mxu0 %v4649_v62  ;;  %5736 = vst [vmem:[#allocation26_spill] sm:$0xff] %v5060_v24  ;;  %5737 = vst [vmem:[#allocation27_spill] sm:$0xff] %v5063_v28  ;;  %v2290_v45 = vld [vmem:[#allocation5 + $0x12] sm:$0x7] }
 0x590   :  { %v1999_v12 = vadd.f32 %v1998_v20, %v1901_v15  ;;  %2138 = vmatprep.subr.bf16.mxu1 %v4652_v8  ;;  %2183 = vmatprep.subr.bf16.mxu0 %v5682_v26  ;;  %v3593_v51 = vpop.eup %3592  ;;  %v2294_v15 = vunpack.c.l.bf16 %v2290_v45 }
 0x591   :  { %v2001_v63 = vsub.f32 1.0, %v3593_v51  ;;  %v2003_v62 = vmul.f32 %v3593_v51, %v4833_v37  ;;  %v4996_v37 = vld [vmem:[#allocation10 + $0x34] ss:$24 sps:$4 sm:$0xff]  }
 0x592   :  { %3594 = vtanh.f32 %v1999_v12  ;;  %v5738_v12 = vld [vmem:[#allocation36_spill] sm:$0xff] }
 0x593   :  { %2139 = vmatpush1.bf16.msra.mxu1 %v5683_v4  ;;  %2184 = vmatpush1.bf16.msra.mxu0 %v5684_v17  ;;  %v4945_v4 = vld [vmem:[#allocation10 + $0x154] ss:$24 sps:$4 sm:$0xff]   ;;  %v4961_v17 = vld [vmem:[#allocation10 + $0x120] ss:$24 sps:$4 sm:$0xff]  }
 0x594   :  { %2140 = vmatprep.subr.bf16.mxu1 %v5685_v16  ;;  %2185 = vmatprep.subr.bf16.mxu0 %v5686_v23  ;;  %v4964_v16 = vld [vmem:[#allocation10 + $0xf4] ss:$24 sps:$4 sm:$0xff]   ;;  %v5728_v23 = vld [vmem:[#allocation62_spill] sm:$0xff] }
 0x597   :  { %2141 = vmatpush1.bf16.msra.mxu1 %v5687_v48  ;;  %2186 = vmatpush1.bf16.msra.mxu0 %v5688_v6  ;;  %v4969_v48 = vld [vmem:[#allocation10 + $0xf0] ss:$24 sps:$4 sm:$0xff]   ;;  %v4972_v6 = vld [vmem:[#allocation10 + $0xc4] ss:$24 sps:$4 sm:$0xff]  }
 0x598   :  { %2142 = vmatprep.subr.bf16.mxu1 %v5689_v56  ;;  %2187 = vmatprep.subr.bf16.mxu0 %v5690_v34  ;;  %v5729_v56 = vld [vmem:[#allocation63_spill] sm:$0xff] }
 0x599   :  { %v4977_v34 = vld [vmem:[#allocation10 + $0xc0] ss:$24 sps:$4 sm:$0xff]  }
 0x59b   :  { %2143 = vmatpush1.bf16.msra.mxu1 %v5691_v3  ;;  %2188 = vmatpush1.bf16.msra.mxu0 %v5692_v13  ;;  %v4980_v3 = vld [vmem:[#allocation10 + $0x94] ss:$24 sps:$4 sm:$0xff]  }
 0x59c   :  { %2144 = vmatprep.subr.bf16.mxu1 %v5693_v50  ;;  %2189 = vmatprep.subr.bf16.mxu0 %v5694_v21  ;;  %v5730_v13 = vld [vmem:[#allocation64_spill] sm:$0xff]  ;;  %v4988_v21 = vld [vmem:[#allocation10 + $0x64] ss:$24 sps:$4 sm:$0xff]  }
 0x59d   :  { %v4985_v50 = vld [vmem:[#allocation10 + $0x90] ss:$24 sps:$4 sm:$0xff]  }
 0x59f   :  { %v3595_v25 = vpop.eup %3594  ;;  %2145 = vmatpush1.bf16.msra.mxu1 %v5695_v29  ;;  %2190 = vmatpush1.bf16.msra.mxu0 %v4697_v40  ;;  %v5726_v40 = vld [vmem:[#allocation60_spill] sm:$0xff]  ;;  %v5731_v29 = vld [vmem:[#allocation37_spill] sm:$0xff] }
 0x5a0   :  { %2146 = vmatprep.subr.bf16.mxu1 %v5696_v55  ;;  %2191 = vmatprep.subr.bf16.mxu0 %v4703_v14  ;;  %v2002_v39 = vmul.f32 %v3595_v25, %v2001_v63  ;;  %v4955_v14 = vld [vmem:[#allocation10 + $0x124] ss:$24 sps:$4 sm:$0xff]   ;;  %v4993_v55 = vld [vmem:[#allocation10 + $0x60] ss:$24 sps:$4 sm:$0xff]   ;;  %v2303_v63 = vrot.slane %v2290_v45, 1 }
 0x5a2   :  { %v4938_v8 = vadd.f32 %v2003_v62, %v2002_v39 }
 0x5a3   :  { %2147 = vmatpush1.bf16.msra.mxu1 %v4709_v59  ;;  %2192 = vmatpush1.bf16.msra.mxu0 %v4712_v10  ;;  %v4952_v59 = vld [vmem:[#allocation10 + $0x150] ss:$24 sps:$4 sm:$0xff]  }
 0x5a4   :  { %v2176_v26 = vpack.c.bf16 %v4938_v8, %v4938_v8  ;;  %3269 = vmatprep.subr.bf16.mxu1 %v5563_v58  ;;  %2324 = vmatprep.subr.bf16.mxu0 %v4945_v4  ;;  %v5727_v10 = vld [vmem:[#allocation61_spill] sm:$0xff] }
 0x5a6   :  { %2165 = vmatmul.mubr.bf16.vlgmr.msra.gmra.mxu1 %v2049_v11  ;;  %2210 = vmatmul.mubr.bf16.vlgmr.msra.gmra.mxu0 %v2176_v26  ;;  %v5045_v11 = vld [vmem:[#allocation10 + $0x6c] ss:$24 sps:$4 sm:$0xff]  }
 0x5a7   :  { %3270 = vmatpush3.bf16.msra.mxu1 %v5726_v40  ;;  %3285 = vmatprep.mubr.msk.bf16.mxu1 %vm3934_vm0, %v5563_v58 }
 0x5a8   :  { %3271 = vmatprep.subr.bf16.mxu1 %v5563_v58  ;;  %2325 = vmatpush1.bf16.msra.mxu0 %v4952_v59 }
 0x5a9   :  { %2326 = vmatprep.subr.bf16.mxu0 %v4955_v14  ;;  %2356 = vmatprep.mubr.bf16.mxu0 %v5565_v1 }
 0x5ab   :  { %3272 = vmatpush3.bf16.msra.mxu1 %v5727_v10 }
 0x5ac   :  { %3273 = vmatprep.subr.bf16.mxu1 %v5563_v58  ;;  %2327 = vmatpush1.bf16.msra.mxu0 %v4961_v17 }
 0x5ad   :  { %2328 = vmatprep.subr.bf16.mxu0 %v4964_v16 }
 0x5af   :  { %3274 = vmatpush3.bf16.msra.mxu1 %v5728_v23 }
 0x5b0   :  { %3275 = vmatprep.subr.bf16.mxu1 %v5563_v58  ;;  %2329 = vmatpush1.bf16.msra.mxu0 %v4969_v48 }
 0x5b1   :  { %2330 = vmatprep.subr.bf16.mxu0 %v4972_v6 }
 0x5b3   :  { %3276 = vmatpush3.bf16.msra.mxu1 %v5729_v56  ;;  %v2305_v56 = vunpack.c.l.bf16 %v2303_v63 }
 0x5b4   :  { %3277 = vmatprep.subr.bf16.mxu1 %v5563_v58  ;;  %2331 = vmatpush1.bf16.msra.mxu0 %v4977_v34 }
 0x5b5   :  { %2332 = vmatprep.subr.bf16.mxu0 %v4980_v3 }
 0x5b7   :  { %3278 = vmatpush3.bf16.msra.mxu1 %v5730_v13 }
 0x5b8   :  { %3279 = vmatprep.subr.bf16.mxu1 %v5563_v58  ;;  %2333 = vmatpush1.bf16.msra.mxu0 %v4985_v50 }
 0x5b9   :  { %2334 = vmatprep.subr.bf16.mxu0 %v4988_v21 }
 0x5bb   :  { %3280 = vmatpush3.bf16.msra.mxu1 %v5731_v29 }
 0x5bc   :  { %3281 = vmatprep.subr.bf16.mxu1 %v5563_v58  ;;  %2335 = vmatpush1.bf16.msra.mxu0 %v4993_v55 }
 0x5bd   :  { %2336 = vmatprep.subr.bf16.mxu0 %v4996_v37 }
 0x5bf   :  { %3282 = vmatpush3.bf16.msra.mxu1 %v5732_v18 }
 0x5c0   :  { %3283 = vmatprep.subr.bf16.mxu1 %v5563_v58  ;;  %2337 = vmatpush1.bf16.msra.mxu0 %v5001_v2 }
 0x5c1   :  { %2338 = vmatprep.subr.bf16.mxu0 %v5004_v52 }
 0x5c3   :  { %3284 = vmatpush3.bf16.msra.mxu1 %v5733_v7 }
 0x5c4   :  { %2365 = vmatprep.subr.bf16.mxu1 %v5008_v22  ;;  %2339 = vmatpush1.bf16.msra.mxu0 %v5011_v38 }
 0x5c5   :  { %2406 = vmatprep.subr.bf16.mxu0 %v5014_v36 }
 0x5c6   :  { %3286 = vmatmul.mubr.bf16.vlgmr.msra.gmra.mxu1 %v2176_v26 }
 0x5c7   :  { %2366 = vmatpush1.bf16.msra.mxu1 %v5017_v46  ;;  %2397 = vmatprep.mubr.bf16.mxu1 %v5565_v1 }
 0x5c8   :  { %2367 = vmatprep.subr.bf16.mxu1 %v5021_v47 }
 0x5cb   :  { %2368 = vmatpush1.bf16.msra.mxu1 %v5024_v30 }
 0x5cc   :  { %2369 = vmatprep.subr.bf16.mxu1 %v5027_v33 }
 0x5cf   :  { %2370 = vmatpush1.bf16.msra.mxu1 %v5030_v9 }
 0x5d0   :  { %2371 = vmatprep.subr.bf16.mxu1 %v5033_v32 }
 0x5d3   :  { %2372 = vmatpush1.bf16.msra.mxu1 %v5036_v57 }
 0x5d4   :  { %2373 = vmatprep.subr.bf16.mxu1 %v5039_v27 }
 0x5d7   :  { %2374 = vmatpush1.bf16.msra.mxu1 %v5042_v0 }
 0x5d8   :  { %2375 = vmatprep.subr.bf16.mxu1 %v5045_v11 }
 0x5db   :  { %2376 = vmatpush1.bf16.msra.mxu1 %v5048_v49 }
 0x5dc   :  { %2377 = vmatprep.subr.bf16.mxu1 %v5051_v53 }
 0x5df   :  { %2378 = vmatpush1.bf16.msra.mxu1 %v5054_v19 }
 0x5e0   :  { %2379 = vmatprep.subr.bf16.mxu1 %v5057_v31 }
 0x5e3   :  { %2380 = vmatpush1.bf16.msra.mxu1 %v5060_v24 }
 0x5e4   :  { %2451 = vmatprep.subr.bf16.mxu1 %v5063_v28 }
 0x646   :  { %v2084_v20 = vpop.f32.mrf.mxu1  ;;  %v2125_v42 = vpop.f32.mrf.mxu0 }
 0x647   :  { %v2291_v51 = vadd.f32 %v2084_v20, %v5738_v12  ;;  %v2314_v12 = vrot.slane %v2290_v45, 2 }
 0x648   :  { %v2086_v25 = vpop.f32.mrf.mxu1  ;;  %v2127_v39 = vpop.f32.mrf.mxu0 }
 0x649   :  { %v2295_v62 = vadd.f32 %v2294_v15, %v2291_v51  ;;  %v2292_v23 = vadd.f32 %v2086_v25, %v5651_v60  ;;  %v2173_v51 = vadd.f32 %v2127_v39, %v5617_v5 }
 0x64a   :  { %v2088_v26 = vpop.f32.mrf.mxu1  ;;  %v2129_v40 = vpop.f32.mrf.mxu0 }
 0x64b   :  { %v3071_v10 = vmul.f32 -1.442695, %v2295_v62  ;;  %v2306_v18 = vadd.f32 %v2305_v56, %v2292_v23  ;;  %v5739_v62 = vld [vmem:[#allocation66_spill] sm:$0xff]  ;;  %v2293_v40 = vadd.f32 %v2125_v42, %v4098_v43 }
 0x64c   :  { %v2089_v13 = vpop.f32.mrf.mxu1  ;;  %v2130_v29 = vpop.f32.mrf.mxu0 }
 0x64d   :  { %3596 = vpow2.f32 %v3071_v10  ;;  %v3072_v7 = vmul.f32 -1.442695, %v2306_v18  ;;  %v2316_v10 = vunpack.c.l.bf16 %v2314_v12 }
 0x64f   :  { %3598 = vpow2.f32 %v3072_v7 }
 0x65a   :  { %v3597_v28 = vpop.eup %3596 }
 0x65b   :  { %v2299_v24 = vadd.f32 1.0, %v3597_v28 }
 0x65c   :  { %v3599_v20 = vpop.eup %3598 }
 0x65d   :  { %3600 = vrcp.f32 %v2299_v24  ;;  %v2310_v15 = vadd.f32 1.0, %v3599_v20 }
 0x65f   :  { %3602 = vrcp.f32 %v2310_v15 }
 0x666   :  { %v2166_v31 = vpop.f32.mrf.mxu1  ;;  %v2211_v19 = vpop.f32.mrf.mxu0 }
 0x667   :  { %v2212_v26 = vadd.f32 %v2211_v19, %v5739_v62  ;;  %v2174_v39 = vadd.f32 %v2166_v31, %v4316_v35 }
 0x668   :  { %v2168_v25 = vpop.f32.mrf.mxu1  ;;  %v2213_v63 = vpop.f32.mrf.mxu0 }
 0x669   :  { %v2258_v23 = vadd.f32 %v2212_v26, %v2173_v51  ;;  %v2214_v45 = vadd.f32 %v2213_v63, %v4320_v44 }
 0x66a   :  { %v3601_v56 = vpop.eup %3600  ;;  %v2170_v13 = vpop.f32.mrf.mxu1 }
 0x66b   :  { %v2215_v29 = vpop.f32.mrf.mxu0  ;;  %v2313_v28 = vmul.f32 %v3601_v56, %v2293_v40  ;;  %v3069_v24 = vmul.f32 -1.442695, %v2258_v23  ;;  %v2265_v19 = vadd.f32 %v2214_v45, %v2174_v39  ;;  %v5085_v23 = vld [vmem:[#allocation11 + $0xa8] ss:$12 sps:$4 sm:$0xff]  }
 0x66c   :  { %v2171_v18 = vpop.f32.mrf.mxu1  ;;  %v3603_v42 = vpop.eup %3602  ;;  %v5091_v56 = vld [vmem:[#allocation11 + $0x94] ss:$12 sps:$4 sm:$0xff]   ;;  %v5096_v45 = vld [vmem:[#allocation10 + $0x130] ss:$24 sps:$4 sm:$0xff]  }
 0x66d   :  { %v2216_v7 = vpop.f32.mrf.mxu0  ;;  %v2317_v20 = vadd.f32 %v2316_v10, %v2313_v28  ;;  %3604 = vpow2.f32 %v3069_v24  ;;  %v3070_v62 = vmul.f32 -1.442695, %v2265_v19  ;;  %v2319_v26 = vsub.f32 1.0, %v3603_v42  ;;  %v5099_v18 = vld [vmem:[#allocation11 + $0x90] ss:$12 sps:$4 sm:$0xff]  }
 0x66e   :  { %v2321_v40 = vmul.f32 %v3603_v42, %v4901_v54  ;;  %v5088_v54 = vld [vmem:[#allocation10 + $0x134] ss:$24 sps:$4 sm:$0xff]   ;;  %v5106_v39 = vld [vmem:[#allocation11 + $0x7c] ss:$12 sps:$4 sm:$0xff]  }
 0x66f   :  { %3606 = vtanh.f32 %v2317_v20  ;;  %v5103_v20 = vld [vmem:[#allocation10 + $0x104] ss:$24 sps:$4 sm:$0xff]  }
 0x670   :  { %3608 = vpow2.f32 %v3070_v62  ;;  %v5082_v62 = vld [vmem:[#allocation10 + $0x160] ss:$24 sps:$4 sm:$0xff]  }
 0x67a   :  { %v3605_v12 = vpop.eup %3604 }
 0x67b   :  { %v2262_v51 = vadd.f32 1.0, %v3605_v12  ;;  %v2175_v12 = vadd.f32 %v2168_v25, %v4340_v61  ;;  %v5122_v25 = vld [vmem:[#allocation10 + $0xd0] ss:$24 sps:$4 sm:$0xff]  }
 0x67c   :  { %v3607_v13 = vpop.eup %3606  ;;  %5741 = vst [vmem:[#allocation29_spill] sm:$0xff] %v5122_v25 }
 0x67d   :  { %3610 = vrcp.f32 %v2262_v51  ;;  %v2320_v15 = vmul.f32 %v3607_v13, %v2319_v26  ;;  %v3609_v31 = vpop.eup %3608  ;;  %v5110_v13 = vld [vmem:[#allocation10 + $0x100] ss:$24 sps:$4 sm:$0xff]  }
 0x67e   :  { %v2269_v28 = vadd.f32 1.0, %v3609_v31  ;;  %v5116_v31 = vld [vmem:[#allocation10 + $0xd4] ss:$24 sps:$4 sm:$0xff]  }
 0x67f   :  { %v5074_v63 = vadd.f32 %v2321_v40, %v2320_v15  ;;  %v5113_v15 = vld [vmem:[#allocation11 + $0x78] ss:$12 sps:$4 sm:$0xff]  }
 0x680   :  { %3612 = vrcp.f32 %v2269_v28  ;;  %v5125_v28 = vld [vmem:[#allocation11 + $0x60] ss:$12 sps:$4 sm:$0xff]  }
 0x681   :  { %v5078_v10 = vpack.c.bf16 %v5074_v63, %v5074_v63  ;;  %5742 = vst [vmem:[#allocation30_spill] sm:$0xff] %v5125_v28 }
 0x683   :  { %2357 = vmatmul.mubr.bf16.vlgmr.msra.gmra.mxu0 %v5078_v10  ;;  %2398 = vmatmul.mubr.bf16.vlgmr.msra.gmra.mxu1 %v5078_v10 }
 0x684   :  { %2407 = vmatpush1.bf16.msra.mxu0 %v5082_v62  ;;  %2452 = vmatpush1.bf16.msra.mxu1 %v5085_v23 }
 0x685   :  { %2408 = vmatprep.subr.bf16.mxu0 %v5088_v54  ;;  %2453 = vmatprep.subr.bf16.mxu1 %v5091_v56 }
 0x686   :  { %v2252_v29 = vpop.f32.mrf.mxu1  ;;  %2438 = vmatprep.mubr.bf16.mxu0 %v5565_v1  ;;  %2483 = vmatprep.mubr.bf16.mxu1 %v5565_v1 }
 0x687   :  { %v2253_v7 = vadd.f32 %v2252_v29, %v4331_v41  ;;  %v5119_v29 = vld [vmem:[#allocation11 + $0x64] ss:$12 sps:$4 sm:$0xff]  }
 0x688   :  { %v3287_v24 = vpop.f32.mrf.mxu1  ;;  %2409 = vmatpush1.bf16.msra.mxu0 %v5096_v45  ;;  %2454 = vmatpush1.bf16.msra.mxu1 %v5099_v18  ;;  %5740 = vst [vmem:[#allocation28_spill] sm:$0xff] %v5119_v29 }
 0x689   :  { %2410 = vmatprep.subr.bf16.mxu0 %v5103_v20  ;;  %2455 = vmatprep.subr.bf16.mxu1 %v5106_v39  ;;  %v5128_v24 = vld [vmem:[#allocation10 + $0xa4] ss:$24 sps:$4 sm:$0xff]  }
 0x68a   :  { %v3611_v19 = vpop.eup %3610  ;;  %v2255_v42 = vpop.f32.mrf.mxu1  ;;  %5743 = vst [vmem:[#allocation31_spill] sm:$0xff] %v5128_v24 }
 0x68b   :  { %v2272_v51 = vmul.f32 %v3611_v19, %v2253_v7  ;;  %v5131_v7 = vld [vmem:[#allocation11 + $0x4c] ss:$12 sps:$4 sm:$0xff]   ;;  %v5137_v42 = vld [vmem:[#allocation11 + $0x48] ss:$12 sps:$4 sm:$0xff]  }
 0x68c   :  { %v3288_v26 = vpop.f32.mrf.mxu1  ;;  %2411 = vmatpush1.bf16.msra.mxu0 %v5110_v13  ;;  %2456 = vmatpush1.bf16.msra.mxu1 %v5113_v15  ;;  %5744 = vst [vmem:[#allocation34_spill] sm:$0xff] %v5131_v7  ;;  %v5134_v19 = vld [vmem:[#allocation10 + $0xa0] ss:$24 sps:$4 sm:$0xff]   ;;  %5746 = vst [vmem:[#allocation40_spill] sm:$0xff] %v5137_v42 }
 0x68d   :  { %v2273_v40 = vadd.f32 %v2272_v51, %v2175_v12  ;;  %2412 = vmatprep.subr.bf16.mxu0 %v5116_v31  ;;  %2457 = vmatprep.subr.bf16.mxu1 %v5119_v29  ;;  %5745 = vst [vmem:[#allocation38_spill] sm:$0xff] %v5134_v19  ;;  %v5140_v12 = vld [vmem:[#allocation10 + $0x74] ss:$24 sps:$4 sm:$0xff]   ;;  %v3613_v26 = vpop.eup %3612  ;;  %v5173_v29 = vld [vmem:[#allocation10 + $0x10] ss:$24 sps:$4 sm:$0xff]  }
 0x68e   :  { %5747 = vst [vmem:[#allocation42_spill] sm:$0xff] %v5140_v12  ;;  %v5143_v51 = vld [vmem:[#allocation11 + $0x34] ss:$12 sps:$4 sm:$0xff]  }
 0x68f   :  { %3614 = vtanh.f32 %v2273_v40  ;;  %5748 = vst [vmem:[#allocation65_spill] sm:$0xff] %v5143_v51  ;;  %v5146_v40 = vld [vmem:[#allocation10 + $0x70] ss:$24 sps:$4 sm:$0xff]  }
 0x690   :  { %2413 = vmatpush1.bf16.msra.mxu0 %v5122_v25  ;;  %2458 = vmatpush1.bf16.msra.mxu1 %v5125_v28  ;;  %5749 = vst [vmem:[#allocation58_spill] sm:$0xff] %v5146_v40  ;;  %v5161_v28 = vld [vmem:[#allocation11 + $0x18] ss:$12 sps:$4 sm:$0xff]  }
 0x691   :  { %2414 = vmatprep.subr.bf16.mxu0 %v5128_v24  ;;  %2459 = vmatprep.subr.bf16.mxu1 %v5131_v7  ;;  %v5149_v7 = vld [vmem:[#allocation11 + $0x30] ss:$12 sps:$4 sm:$0xff]  }
 0x692   :  { %5750 = vst [vmem:[#allocation59_spill] sm:$0xff] %v5149_v7 }
 0x694   :  { %2415 = vmatpush1.bf16.msra.mxu0 %v5134_v19  ;;  %2460 = vmatpush1.bf16.msra.mxu1 %v5137_v42  ;;  %v5152_v19 = vld [vmem:[#allocation10 + $0x44] ss:$24 sps:$4 sm:$0xff]  }
 0x695   :  { %2416 = vmatprep.subr.bf16.mxu0 %v5140_v12  ;;  %2461 = vmatprep.subr.bf16.mxu1 %v5143_v51  ;;  %5751 = vst [vmem:[#allocation43_spill] sm:$0xff] %v5152_v19  ;;  %v5155_v42 = vld [vmem:[#allocation11 + $0x1c] ss:$12 sps:$4 sm:$0xff]   ;;  %v2275_v12 = vsub.f32 1.0, %v3613_v26  ;;  %v5158_v51 = vld [vmem:[#allocation10 + $0x40] ss:$24 sps:$4 sm:$0xff]  }
 0x696   :  { %5752 = vst [vmem:[#allocation44_spill] sm:$0xff] %v5155_v42  ;;  %5753 = vst [vmem:[#allocation45_spill] sm:$0xff] %v5158_v51 }
 0x698   :  { %2417 = vmatpush1.bf16.msra.mxu0 %v5146_v40  ;;  %2462 = vmatpush1.bf16.msra.mxu1 %v5149_v7  ;;  %v5164_v40 = vld [vmem:[#allocation10 + $0x14] ss:$24 sps:$4 sm:$0xff]   ;;  %v5167_v7 = vld [vmem:[#allocation11 + $0x4] ss:$12 sps:$4 sm:$0xff]  }
 0x699   :  { %2418 = vmatprep.subr.bf16.mxu0 %v5152_v19  ;;  %2463 = vmatprep.subr.bf16.mxu1 %v5155_v42  ;;  %5754 = vst [vmem:[#allocation46_spill] sm:$0xff] %v5164_v40  ;;  %v2277_v42 = vmul.f32 %v3613_v26, %v4938_v8  ;;  %v5184_v8 = vld [vmem:[#allocation11 + $0xb0] ss:$12 sps:$4 sm:$0xff]  }
 0x69c   :  { %v3615_v24 = vpop.eup %3614  ;;  %2419 = vmatpush1.bf16.msra.mxu0 %v5158_v51  ;;  %2464 = vmatpush1.bf16.msra.mxu1 %v5161_v28  ;;  %v5176_v51 = vld [vmem:[#allocation11] ss:$12 sps:$4 sm:$0xff]  }
 0x69d   :  { %2420 = vmatprep.subr.bf16.mxu0 %v5164_v40  ;;  %2465 = vmatprep.subr.bf16.mxu1 %v5167_v7  ;;  %v2276_v19 = vmul.f32 %v3615_v24, %v2275_v12  ;;  %v5193_v24 = vld [vmem:[#allocation11 + $0x98] ss:$12 sps:$4 sm:$0xff]  }
 0x69f   :  { %v5171_v25 = vadd.f32 %v2277_v42, %v2276_v19 }
 0x6a0   :  { %2421 = vmatpush1.bf16.msra.mxu0 %v5173_v29  ;;  %2466 = vmatpush1.bf16.msra.mxu1 %v5176_v51 }
 0x6a1   :  { %v2450_v40 = vpack.c.bf16 %v5171_v25, %v5171_v25  ;;  %3289 = vmatprep.subr.bf16.mxu0 %v5563_v58  ;;  %2598 = vmatprep.subr.bf16.mxu1 %v4945_v4  ;;  %v5199_v4 = vld [vmem:[#allocation11 + $0x80] ss:$12 sps:$4 sm:$0xff]  }
 0x6a3   :  { %2439 = vmatmul.mubr.bf16.vlgmr.msra.gmra.mxu0 %v5078_v10  ;;  %2484 = vmatmul.mubr.bf16.vlgmr.msra.gmra.mxu1 %v2450_v40 }
 0x6a4   :  { %3290 = vmatpush3.bf16.msra.mxu0 %v5184_v8  ;;  %3305 = vmatprep.mubr.msk.bf16.mxu0 %vm3934_vm0, %v5563_v58 }
 0x6a5   :  { %3291 = vmatprep.subr.bf16.mxu0 %v5563_v58  ;;  %2599 = vmatpush1.bf16.msra.mxu1 %v4952_v59  ;;  %v5205_v59 = vld [vmem:[#allocation11 + $0x68] ss:$12 sps:$4 sm:$0xff]  }
 0x6a6   :  { %2600 = vmatprep.subr.bf16.mxu1 %v4955_v14  ;;  %2630 = vmatprep.mubr.bf16.mxu1 %v5565_v1  ;;  %v5211_v14 = vld [vmem:[#allocation11 + $0x50] ss:$12 sps:$4 sm:$0xff]  }
 0x6a8   :  { %3292 = vmatpush3.bf16.msra.mxu0 %v5193_v24 }
 0x6a9   :  { %3293 = vmatprep.subr.bf16.mxu0 %v5563_v58  ;;  %2601 = vmatpush1.bf16.msra.mxu1 %v4961_v17  ;;  %v5217_v17 = vld [vmem:[#allocation11 + $0x38] ss:$12 sps:$4 sm:$0xff]  }
 0x6aa   :  { %2602 = vmatprep.subr.bf16.mxu1 %v4964_v16  ;;  %v5223_v16 = vld [vmem:[#allocation11 + $0x20] ss:$12 sps:$4 sm:$0xff]  }
 0x6ac   :  { %3294 = vmatpush3.bf16.msra.mxu0 %v5199_v4 }
 0x6ad   :  { %3295 = vmatprep.subr.bf16.mxu0 %v5563_v58  ;;  %2603 = vmatpush1.bf16.msra.mxu1 %v4969_v48  ;;  %v5229_v48 = vld [vmem:[#allocation11 + $0x8] ss:$12 sps:$4 sm:$0xff]  }
 0x6ae   :  { %2604 = vmatprep.subr.bf16.mxu1 %v4972_v6  ;;  %v5755_v6 = vld [vmem:[#allocation24_spill] sm:$0xff] }
 0x6b0   :  { %3296 = vmatpush3.bf16.msra.mxu0 %v5205_v59 }
 0x6b1   :  { %3297 = vmatprep.subr.bf16.mxu0 %v5563_v58  ;;  %2605 = vmatpush1.bf16.msra.mxu1 %v4977_v34  ;;  %v5756_v34 = vld [vmem:[#allocation25_spill] sm:$0xff] }
 0x6b2   :  { %2606 = vmatprep.subr.bf16.mxu1 %v4980_v3  ;;  %v5757_v3 = vld [vmem:[#allocation26_spill] sm:$0xff] }
 0x6b4   :  { %3298 = vmatpush3.bf16.msra.mxu0 %v5211_v14 }
 0x6b5   :  { %3299 = vmatprep.subr.bf16.mxu0 %v5563_v58  ;;  %2607 = vmatpush1.bf16.msra.mxu1 %v4985_v50  ;;  %v5758_v50 = vld [vmem:[#allocation27_spill] sm:$0xff] }
 0x6b6   :  { %2608 = vmatprep.subr.bf16.mxu1 %v4988_v21  ;;  %v2564_v21 = vld [vmem:[#allocation5 + $0x15] sm:$0x7] }
 0x6b7   :  { %v2588_v42 = vrot.slane %v2564_v21, 2 }
 0x6b8   :  { %3300 = vmatpush3.bf16.msra.mxu0 %v5217_v17 }
 0x6b9   :  { %3301 = vmatprep.subr.bf16.mxu0 %v5563_v58  ;;  %2609 = vmatpush1.bf16.msra.mxu1 %v4993_v55  ;;  %v2568_v55 = vunpack.c.l.bf16 %v2564_v21 }
 0x6ba   :  { %2610 = vmatprep.subr.bf16.mxu1 %v4996_v37 }
 0x6bc   :  { %3302 = vmatpush3.bf16.msra.mxu0 %v5223_v16 }
 0x6bd   :  { %3303 = vmatprep.subr.bf16.mxu0 %v5563_v58  ;;  %2611 = vmatpush1.bf16.msra.mxu1 %v5001_v2 }
 0x6be   :  { %2612 = vmatprep.subr.bf16.mxu1 %v5004_v52  ;;  %v5759_v52 = vld [vmem:[#allocation36_spill] sm:$0xff] }
 0x6c0   :  { %3304 = vmatpush3.bf16.msra.mxu0 %v5229_v48 }
 0x6c1   :  { %2639 = vmatprep.subr.bf16.mxu0 %v5008_v22  ;;  %2613 = vmatpush1.bf16.msra.mxu1 %v5011_v38  ;;  %v2577_v38 = vrot.slane %v2564_v21, 1 }
 0x6c2   :  { %2680 = vmatprep.subr.bf16.mxu1 %v5014_v36 }
 0x6c3   :  { %3306 = vmatmul.mubr.bf16.vlgmr.msra.gmra.mxu0 %v2450_v40 }
 0x6c4   :  { %2640 = vmatpush1.bf16.msra.mxu0 %v5017_v46  ;;  %2671 = vmatprep.mubr.bf16.mxu0 %v5565_v1 }
 0x6c5   :  { %2641 = vmatprep.subr.bf16.mxu0 %v5021_v47 }
 0x6c8   :  { %2642 = vmatpush1.bf16.msra.mxu0 %v5024_v30 }
 0x6c9   :  { %2643 = vmatprep.subr.bf16.mxu0 %v5027_v33 }
 0x6cc   :  { %2644 = vmatpush1.bf16.msra.mxu0 %v5030_v9 }
 0x6cd   :  { %2645 = vmatprep.subr.bf16.mxu0 %v5033_v32 }
 0x6d0   :  { %2646 = vmatpush1.bf16.msra.mxu0 %v5036_v57  ;;  %v2579_v57 = vunpack.c.l.bf16 %v2577_v38 }
 0x6d1   :  { %2647 = vmatprep.subr.bf16.mxu0 %v5039_v27 }
 0x6d4   :  { %2648 = vmatpush1.bf16.msra.mxu0 %v5042_v0 }
 0x6d5   :  { %2649 = vmatprep.subr.bf16.mxu0 %v5045_v11 }
 0x6d8   :  { %2650 = vmatpush1.bf16.msra.mxu0 %v5048_v49 }
 0x6d9   :  { %2651 = vmatprep.subr.bf16.mxu0 %v5051_v53 }
 0x6dc   :  { %2652 = vmatpush1.bf16.msra.mxu0 %v5755_v6 }
 0x6dd   :  { %2653 = vmatprep.subr.bf16.mxu0 %v5756_v34  ;;  %v5760_v34 = vld [vmem:[#allocation66_spill] sm:$0xff] }
 0x6e0   :  { %2654 = vmatpush1.bf16.msra.mxu0 %v5757_v3 }
 0x6e1   :  { %2725 = vmatprep.subr.bf16.mxu0 %v5758_v50 }
 0x743   :  { %v2358_v37 = vpop.f32.mrf.mxu0  ;;  %v2399_v2 = vpop.f32.mrf.mxu1 }
 0x744   :  { %v2565_v22 = vadd.f32 %v2358_v37, %v5759_v52  ;;  %v2590_v37 = vunpack.c.l.bf16 %v2588_v42 }
 0x745   :  { %v2360_v36 = vpop.f32.mrf.mxu0  ;;  %v2401_v46 = vpop.f32.mrf.mxu1 }
 0x746   :  { %v2569_v47 = vadd.f32 %v2568_v55, %v2565_v22  ;;  %v2566_v32 = vadd.f32 %v2360_v36, %v5651_v60  ;;  %v2447_v6 = vadd.f32 %v2401_v46, %v5617_v5  ;;  %v2567_v55 = vadd.f32 %v2399_v2, %v4098_v43 }
 0x747   :  { %v2362_v30 = vpop.f32.mrf.mxu0  ;;  %v2403_v33 = vpop.f32.mrf.mxu1 }
 0x748   :  { %v3075_v9 = vmul.f32 -1.442695, %v2569_v47  ;;  %v2580_v11 = vadd.f32 %v2579_v57, %v2566_v32 }
 0x749   :  { %v2363_v27 = vpop.f32.mrf.mxu0  ;;  %v2404_v0 = vpop.f32.mrf.mxu1 }
 0x74a   :  { %3616 = vpow2.f32 %v3075_v9  ;;  %v3076_v49 = vmul.f32 -1.442695, %v2580_v11 }
 0x74c   :  { %3618 = vpow2.f32 %v3076_v49 }
 0x757   :  { %v3617_v53 = vpop.eup %3616 }
 0x758   :  { %v2573_v10 = vadd.f32 1.0, %v3617_v53 }
 0x759   :  { %v3619_v19 = vpop.eup %3618 }
 0x75a   :  { %3620 = vrcp.f32 %v2573_v10  ;;  %v2584_v40 = vadd.f32 1.0, %v3619_v19 }
 0x75c   :  { %3622 = vrcp.f32 %v2584_v40 }
 0x763   :  { %v2440_v12 = vpop.f32.mrf.mxu0  ;;  %v2485_v26 = vpop.f32.mrf.mxu1 }
 0x764   :  { %v2486_v3 = vadd.f32 %v2485_v26, %v5760_v34  ;;  %v2448_v46 = vadd.f32 %v2440_v12, %v4316_v35 }
 0x765   :  { %v2442_v60 = vpop.f32.mrf.mxu0  ;;  %v2487_v50 = vpop.f32.mrf.mxu1 }
 0x766   :  { %v2532_v52 = vadd.f32 %v2486_v3, %v2447_v6  ;;  %v2488_v21 = vadd.f32 %v2487_v50, %v4320_v44  ;;  %v5766_v50 = vld [vmem:[#allocation38_spill] sm:$0xff] }
 0x767   :  { %v3621_v22 = vpop.eup %3620  ;;  %v2444_v38 = vpop.f32.mrf.mxu0 }
 0x768   :  { %v2489_v36 = vpop.f32.mrf.mxu1  ;;  %v2587_v47 = vmul.f32 %v3621_v22, %v2567_v55  ;;  %v3073_v30 = vmul.f32 -1.442695, %v2532_v52  ;;  %v2539_v57 = vadd.f32 %v2488_v21, %v2448_v46  ;;  %v5767_v55 = vld [vmem:[#allocation40_spill] sm:$0xff]  ;;  %v5771_v52 = vld [vmem:[#allocation59_spill] sm:$0xff]  ;;  %v5775_v21 = vld [vmem:[#allocation46_spill] sm:$0xff] }
 0x769   :  { %v2445_v33 = vpop.f32.mrf.mxu0  ;;  %v3623_v43 = vpop.eup %3622  ;;  %v5772_v22 = vld [vmem:[#allocation43_spill] sm:$0xff]  ;;  %v5773_v38 = vld [vmem:[#allocation44_spill] sm:$0xff] }
 0x76a   :  { %v2490_v9 = vpop.f32.mrf.mxu1  ;;  %v2591_v32 = vadd.f32 %v2590_v37, %v2587_v47  ;;  %3624 = vpow2.f32 %v3073_v30  ;;  %v3074_v27 = vmul.f32 -1.442695, %v2539_v57  ;;  %v2593_v11 = vsub.f32 1.0, %v3623_v43  ;;  %v5770_v37 = vld [vmem:[#allocation58_spill] sm:$0xff]  ;;  %v5774_v30 = vld [vmem:[#allocation45_spill] sm:$0xff] }
 0x76b   :  { %v2595_v10 = vmul.f32 %v3623_v43, %v5074_v63  ;;  %v2865_v57 = vld [vmem:[#allocation13 + $0x10] sm:$0xff]  ;;  %v2863_v43 = vld [vmem:[#allocation13] sm:$0xff] }
 0x76c   :  { %3626 = vtanh.f32 %v2591_v32 }
 0x76d   :  { %3628 = vpow2.f32 %v3074_v27  ;;  %v2864_v27 = vld [vmem:[#allocation13 + $0x8] sm:$0xff] }
 0x777   :  { %v3625_v2 = vpop.eup %3624 }
 0x778   :  { %v2536_v0 = vadd.f32 1.0, %v3625_v2 }
 0x779   :  { %v3627_v49 = vpop.eup %3626 }
 0x77a   :  { %3630 = vrcp.f32 %v2536_v0  ;;  %v2594_v53 = vmul.f32 %v3627_v49, %v2593_v11  ;;  %v3629_v12 = vpop.eup %3628 }
 0x77b   :  { %v2543_v63 = vadd.f32 1.0, %v3629_v12 }
 0x77c   :  { %v2596_v19 = vadd.f32 %v2595_v10, %v2594_v53 }
 0x77d   :  { %3632 = vrcp.f32 %v2543_v63 }
 0x77e   :  { %v2597_v42 = vpack.c.bf16 %v2596_v19, %v2596_v19  ;;  %2837 = vst [vmem:[#allocation2] sm:$0x3] %v2596_v19 }
 0x780   :  { %2631 = vmatmul.mubr.bf16.vlgmr.msra.gmra.mxu1 %v2597_v42  ;;  %2672 = vmatmul.mubr.bf16.vlgmr.msra.gmra.mxu0 %v2597_v42 }
 0x781   :  { %2681 = vmatpush1.bf16.msra.mxu1 %v5082_v62  ;;  %2726 = vmatpush1.bf16.msra.mxu0 %v5085_v23 }
 0x782   :  { %2682 = vmatprep.subr.bf16.mxu1 %v5088_v54  ;;  %2727 = vmatprep.subr.bf16.mxu0 %v5091_v56  ;;  %v2449_v54 = vadd.f32 %v2442_v60, %v4340_v61  ;;  %v5765_v60 = vld [vmem:[#allocation34_spill] sm:$0xff] }
 0x783   :  { %v2526_v26 = vpop.f32.mrf.mxu0  ;;  %2712 = vmatprep.mubr.bf16.mxu1 %v5565_v1  ;;  %2757 = vmatprep.mubr.bf16.mxu0 %v5565_v1 }
 0x784   :  { %v2527_v6 = vadd.f32 %v2526_v26, %v4331_v41 }
 0x785   :  { %v3307_v40 = vpop.f32.mrf.mxu0  ;;  %2683 = vmatpush1.bf16.msra.mxu1 %v5096_v45  ;;  %2728 = vmatpush1.bf16.msra.mxu0 %v5099_v18  ;;  %v5761_v45 = vld [vmem:[#allocation28_spill] sm:$0xff]  ;;  %v5762_v18 = vld [vmem:[#allocation29_spill] sm:$0xff] }
 0x786   :  { %2684 = vmatprep.subr.bf16.mxu1 %v5103_v20  ;;  %2729 = vmatprep.subr.bf16.mxu0 %v5106_v39  ;;  %v5763_v20 = vld [vmem:[#allocation30_spill] sm:$0xff]  ;;  %v5764_v39 = vld [vmem:[#allocation31_spill] sm:$0xff] }
 0x787   :  { %v3631_v62 = vpop.eup %3630  ;;  %v2529_v23 = vpop.f32.mrf.mxu0 }
 0x788   :  { %v2546_v56 = vmul.f32 %v3631_v62, %v2527_v6 }
 0x789   :  { %v3308_v3 = vpop.f32.mrf.mxu0  ;;  %2685 = vmatpush1.bf16.msra.mxu1 %v5110_v13  ;;  %2730 = vmatpush1.bf16.msra.mxu0 %v5113_v15  ;;  %v5768_v13 = vld [vmem:[#allocation42_spill] sm:$0xff]  ;;  %v5769_v15 = vld [vmem:[#allocation65_spill] sm:$0xff] }
 0x78a   :  { %v2547_v1 = vadd.f32 %v2546_v56, %v2449_v54  ;;  %2686 = vmatprep.subr.bf16.mxu1 %v5116_v31  ;;  %2731 = vmatprep.subr.bf16.mxu0 %v5761_v45  ;;  %v3633_v31 = vpop.eup %3632 }
 0x78b   :  { %v2549_v36 = vsub.f32 1.0, %v3633_v31  ;;  %v2551_v9 = vmul.f32 %v3633_v31, %v5171_v25  ;;  %v2877_v25 = vld [vmem:[#allocation13 + $0x70] sm:$0xff] }
 0x78c   :  { %3634 = vtanh.f32 %v2547_v1 }
 0x78d   :  { %2687 = vmatpush1.bf16.msra.mxu1 %v5762_v18  ;;  %2732 = vmatpush1.bf16.msra.mxu0 %v5763_v20 }
 0x78e   :  { %2688 = vmatprep.subr.bf16.mxu1 %v5764_v39  ;;  %2733 = vmatprep.subr.bf16.mxu0 %v5765_v60 }
 0x791   :  { %2689 = vmatpush1.bf16.msra.mxu1 %v5766_v50  ;;  %2734 = vmatpush1.bf16.msra.mxu0 %v5767_v55 }
 0x792   :  { %2690 = vmatprep.subr.bf16.mxu1 %v5768_v13  ;;  %2735 = vmatprep.subr.bf16.mxu0 %v5769_v15 }
 0x795   :  { %2691 = vmatpush1.bf16.msra.mxu1 %v5770_v37  ;;  %2736 = vmatpush1.bf16.msra.mxu0 %v5771_v52 }
 0x796   :  { %2692 = vmatprep.subr.bf16.mxu1 %v5772_v22  ;;  %2737 = vmatprep.subr.bf16.mxu0 %v5773_v38 }
 0x799   :  { %v3635_v47 = vpop.eup %3634  ;;  %2693 = vmatpush1.bf16.msra.mxu1 %v5774_v30  ;;  %2738 = vmatpush1.bf16.msra.mxu0 %v5161_v28  ;;  %v2876_v28 = vld [vmem:[#allocation13 + $0x68] sm:$0xff] }
 0x79a   :  { %2694 = vmatprep.subr.bf16.mxu1 %v5775_v21  ;;  %2739 = vmatprep.subr.bf16.mxu0 %v5167_v7  ;;  %v2550_v33 = vmul.f32 %v3635_v47, %v2549_v36  ;;  %v2875_v7 = vld [vmem:[#allocation13 + $0x60] sm:$0xff] }
 0x79c   :  { %v5293_v32 = vadd.f32 %v2551_v9, %v2550_v33 }
 0x79d   :  { %2695 = vmatpush1.bf16.msra.mxu1 %v5173_v29  ;;  %2740 = vmatpush1.bf16.msra.mxu0 %v5176_v51  ;;  %v2878_v29 = vld [vmem:[#allocation13 + $0x78] sm:$0xff] }
 0x79e   :  { %v2724_v46 = vpack.c.bf16 %v5293_v32, %v5293_v32  ;;  %3309 = vmatprep.subr.bf16.mxu1 %v5563_v58  ;;  %3329 = vmatprep.subr.mxu0 %v5563_v58  ;;  %v2874_v51 = vld [vmem:[#allocation13 + $0x58] sm:$0xff] }
 0x7a0   :  { %2713 = vmatmul.mubr.bf16.vlgmr.msra.gmra.mxu1 %v2597_v42  ;;  %2758 = vmatmul.mubr.bf16.vlgmr.msra.gmra.mxu0 %v2724_v46  ;;  %v5776_v42 = vld [vmem:[#allocation32_spill] sm:$0xff] }
 0x7a1   :  { %3310 = vmatpush3.bf16.msra.mxu1 %v5184_v8  ;;  %3325 = vmatprep.mubr.msk.bf16.mxu1 %vm3934_vm0, %v5563_v58  ;;  %v2873_v8 = vld [vmem:[#allocation13 + $0x50] sm:$0xff] }
 0x7a2   :  { %3311 = vmatprep.subr.bf16.mxu1 %v5563_v58  ;;  %3361 = vmatprep.mubr.msk.f32.mxu0 %vm3934_vm0, %v5563_v58 }
 0x7a3   :  { %3330 = vmatpush3.msra.mxu0 %v2878_v29 }
 0x7a4   :  { %3331 = vmatprep.subr.mxu0 %v5563_v58 }
 0x7a5   :  { %3312 = vmatpush3.bf16.msra.mxu1 %v5193_v24  ;;  %3332 = vmatpush3.msra.mxu0 %v2877_v25  ;;  %v2872_v24 = vld [vmem:[#allocation13 + $0x48] sm:$0xff] }
 0x7a6   :  { %3313 = vmatprep.subr.bf16.mxu1 %v5563_v58  ;;  %3333 = vmatprep.subr.mxu0 %v5563_v58 }
 0x7a7   :  { %3334 = vmatpush3.msra.mxu0 %v2876_v28 }
 0x7a8   :  { %3335 = vmatprep.subr.mxu0 %v5563_v58 }
 0x7a9   :  { %3314 = vmatpush3.bf16.msra.mxu1 %v5199_v4  ;;  %3336 = vmatpush3.msra.mxu0 %v2875_v7  ;;  %v2871_v4 = vld [vmem:[#allocation13 + $0x40] sm:$0xff] }
 0x7aa   :  { %3315 = vmatprep.subr.bf16.mxu1 %v5563_v58  ;;  %3337 = vmatprep.subr.mxu0 %v5563_v58 }
 0x7ab   :  { %3338 = vmatpush3.msra.mxu0 %v2874_v51 }
 0x7ac   :  { %3339 = vmatprep.subr.mxu0 %v5563_v58 }
 0x7ad   :  { %3316 = vmatpush3.bf16.msra.mxu1 %v5205_v59  ;;  %3340 = vmatpush3.msra.mxu0 %v2873_v8  ;;  %v2870_v59 = vld [vmem:[#allocation13 + $0x38] sm:$0xff] }
 0x7ae   :  { %3317 = vmatprep.subr.bf16.mxu1 %v5563_v58  ;;  %3341 = vmatprep.subr.mxu0 %v5563_v58 }
 0x7af   :  { %3342 = vmatpush3.msra.mxu0 %v2872_v24 }
 0x7b0   :  { %3343 = vmatprep.subr.mxu0 %v5563_v58 }
 0x7b1   :  { %3318 = vmatpush3.bf16.msra.mxu1 %v5211_v14  ;;  %3344 = vmatpush3.msra.mxu0 %v2871_v4  ;;  %v2869_v14 = vld [vmem:[#allocation13 + $0x30] sm:$0xff] }
 0x7b2   :  { %3319 = vmatprep.subr.bf16.mxu1 %v5563_v58  ;;  %3345 = vmatprep.subr.mxu0 %v5563_v58 }
 0x7b3   :  { %3346 = vmatpush3.msra.mxu0 %v2870_v59 }
 0x7b4   :  { %3347 = vmatprep.subr.mxu0 %v5563_v58 }
 0x7b5   :  { %3320 = vmatpush3.bf16.msra.mxu1 %v5217_v17  ;;  %v2868_v17 = vld [vmem:[#allocation13 + $0x28] sm:$0xff]  ;;  %3348 = vmatpush3.msra.mxu0 %v2869_v14 }
 0x7b6   :  { %3321 = vmatprep.subr.bf16.mxu1 %v5563_v58  ;;  %3349 = vmatprep.subr.mxu0 %v5563_v58 }
 0x7b7   :  { %3350 = vmatpush3.msra.mxu0 %v2868_v17 }
 0x7b8   :  { %3351 = vmatprep.subr.mxu0 %v5563_v58 }
 0x7b9   :  { %3322 = vmatpush3.bf16.msra.mxu1 %v5223_v16  ;;  %v2867_v16 = vld [vmem:[#allocation13 + $0x20] sm:$0xff] }
 0x7ba   :  { %3323 = vmatprep.subr.bf16.mxu1 %v5563_v58  ;;  %3352 = vmatpush3.msra.mxu0 %v2867_v16 }
 0x7bb   :  { %3353 = vmatprep.subr.mxu0 %v5563_v58 }
 0x7bd   :  { %3324 = vmatpush3.bf16.msra.mxu1 %v5229_v48  ;;  %v2866_v48 = vld [vmem:[#allocation13 + $0x18] sm:$0xff] }
 0x7be   :  { %3354 = vmatpush3.msra.mxu0 %v2866_v48 }
 0x7bf   :  { %3355 = vmatprep.subr.mxu0 %v5563_v58 }
 0x7c0   :  { %3326 = vmatmul.mubr.bf16.vlgmr.msra.gmra.mxu1 %v2724_v46  ;;  %3356 = vmatpush3.msra.mxu0 %v2865_v57 }
 0x7c1   :  { %3357 = vmatprep.subr.mxu0 %v5563_v58 }
 0x7c2   :  { %3358 = vmatpush3.msra.mxu0 %v2864_v27 }
 0x7c3   :  { %3359 = vmatprep.subr.mxu0 %v5563_v58 }
 0x7c4   :  { %3360 = vmatpush3.msra.mxu0 %v2863_v43 }
 0x840   :  { %v2632_v2 = vpop.f32.mrf.mxu1  ;;  %v2673_v0 = vpop.f32.mrf.mxu0 }
 0x841   :  { %v2856_v12 = vrot.slane %v2673_v0, %v5776_v42 }
 0x842   :  { %v2634_v11 = vpop.f32.mrf.mxu1  ;;  %v2675_v49 = vpop.f32.mrf.mxu0 }
 0x843   :  { %v2842_v53 = vcombine.low %v2632_v2, %v2634_v11  ;;  %v2721_v58 = vadd.f32 %v2675_v49, %v5617_v5 }
 0x844   :  { %v2636_v10 = vpop.f32.mrf.mxu1  ;;  %v2677_v19 = vpop.f32.mrf.mxu0 }
 0x845   :  { %v2849_v26 = vrot.slane %v2842_v53, %v5776_v42 }
 0x846   :  { %v2637_v63 = vpop.f32.mrf.mxu1  ;;  %v2678_v40 = vpop.f32.mrf.mxu0 }
 0x847   :  { %v2857_v6 = vcombine.low %v2849_v26, %v2856_v12 }
 0x849   :  { %2859 = vst [vmem:[#allocation4] sm:$0x3f] %v2857_v6 }
 0x860   :  { %v2714_v62 = vpop.f32.mrf.mxu1  ;;  %v2759_v23 = vpop.f32.mrf.mxu0 }
 0x861   :  { %v2760_v54 = vadd.f32 %v2759_v23, %v5760_v34  ;;  %v2722_v55 = vadd.f32 %v2714_v62, %v4316_v35 }
 0x862   :  { %v2716_v56 = vpop.f32.mrf.mxu1  ;;  %v2761_v3 = vpop.f32.mrf.mxu0 }
 0x863   :  { %v2806_v1 = vadd.f32 %v2760_v54, %v2721_v58  ;;  %v2762_v39 = vadd.f32 %v2761_v3, %v4320_v44  ;;  %v2723_v44 = vadd.f32 %v2716_v56, %v4340_v61 }
 0x864   :  { %v2718_v45 = vpop.f32.mrf.mxu1  ;;  %v2763_v18 = vpop.f32.mrf.mxu0 }
 0x865   :  { %v3077_v20 = vmul.f32 -1.442695, %v2806_v1  ;;  %v2813_v13 = vadd.f32 %v2762_v39, %v2722_v55 }
 0x866   :  { %v2719_v60 = vpop.f32.mrf.mxu1  ;;  %v2764_v50 = vpop.f32.mrf.mxu0 }
 0x867   :  { %3636 = vpow2.f32 %v3077_v20  ;;  %v3078_v15 = vmul.f32 -1.442695, %v2813_v13 }
 0x869   :  { %3638 = vpow2.f32 %v3078_v15 }
 0x874   :  { %v3637_v31 = vpop.eup %3636 }
 0x875   :  { %v2810_v5 = vadd.f32 1.0, %v3637_v31 }
 0x876   :  { %v3639_v34 = vpop.eup %3638 }
 0x877   :  { %3640 = vrcp.f32 %v2810_v5  ;;  %v2817_v52 = vadd.f32 1.0, %v3639_v34 }
 0x879   :  { %3642 = vrcp.f32 %v2817_v52 }
 0x880   :  { %v2800_v37 = vpop.f32.mrf.mxu1 }
 0x881   :  { %v2801_v38 = vadd.f32 %v2800_v37, %v4331_v41  ;;  %v3079_v41 = vld [vmem:[%s5357_s7] ss:$0 sm:$0xff] }
 0x882   :  { %v3327_v22 = vpop.f32.mrf.mxu1 }
 0x884   :  { %v3641_v36 = vpop.eup %3640  ;;  %v2803_v47 = vpop.f32.mrf.mxu1 }
 0x885   :  { %v2820_v30 = vmul.f32 %v3641_v36, %v2801_v38 }
 0x886   :  { %v3328_v35 = vpop.f32.mrf.mxu1  ;;  %v3643_v33 = vpop.eup %3642 }
 0x887   :  { %v2821_v21 = vadd.f32 %v2820_v30, %v2723_v44  ;;  %v2823_v9 = vsub.f32 1.0, %v3643_v33  ;;  %v2825_v25 = vmul.f32 %v3643_v33, %v5293_v32 }
 0x889   :  { %3644 = vtanh.f32 %v2821_v21 }
 0x896   :  { %v3645_v46 = vpop.eup %3644 }
 0x897   :  { %v2824_v29 = vmul.f32 %v3645_v46, %v2823_v9 }
 0x899   :  { %v2826_v28 = vadd.f32 %v2825_v25, %v2824_v29 }
 0x89b   :  { %2838 = vst [vmem:[#allocation3] sm:$0x3] %v2826_v28  ;;  %3362 = vmatmul.mubr.f32.vlgmr.msra.gmra.mxu0 %v2826_v28 }
 0x95b   :  { %v2952_v7 = vpop.f32.mrf.mxu0 }
 0x95c   :  { %v2953_v61 = vadd.f32 %v3079_v41, %v2952_v7 }
 0x95d   :  { %v3363_v51 = vpop.f32.mrf.mxu0 }
 0x95e   :  { %v2956_v8 = vmax.f32 %v2953_v61, 0.0 }
 0x960   :  { %2957 = vst [vmem:[#allocation14] sm:$0x3] %v2956_v8 }
 0x961   :  { %3901 = shalt.err (!%p3898_p1)
}
 0x962   :  { %2967 = dma.vmem_to_hbm [thread:$0]  %s2965_s17, 32, %s5358_s8, [#allocation7]  }
 0x963   :  { %3916 = dma.done.wait [#allocation7], 32  }
 0x964   :  { %3917 = vsyncadd [#allocation7], 4294967264 }
 0x965   :  { %2971 = vsyncpa [#allocation6], 1 }
 0x966   :  { %2972 = vsyncpa [#allocation9], 1 }
 0x967   :  { %2973 = vsyncpa [#allocation12], 1 }
 0x968   :  { %2974 = vsyncpa [#allocation7], 1 }

</bundles_post_ra>
